<compile_context>
chip_gen: v7x
topology: tpu7x:2x2x1
jax: 0.10.0
libtpu: 0.0.40
codegen_flags: <defaults>
</compile_context>

<pallas_src>
import functools

import numpy as np
import jax
import jax.numpy as jnp
from jax import lax
from jax.experimental import pallas as pl
from jax.experimental.pallas import tpu as pltpu

BN_EPS = 1e-5


# ---------------------------------------------------------------------------
# Standalone training-mode BN statistics (only needed for the very first BN):
# tiled per-channel sum / sum-of-squares reduction -> (2, C) scale / shift.
# ---------------------------------------------------------------------------
def _bn_stats_kernel(x_ref, gamma_ref, beta_ref, ss_ref, acc_ref, *, inv_count):
    i = pl.program_id(0)

    @pl.when(i == 0)
    def _init():
        acc_ref[...] = jnp.zeros_like(acc_ref)

    x = x_ref[...].astype(jnp.float32)          # upcast per tile (input may be bf16)
    acc_ref[0:1, :] += jnp.sum(x, axis=0, keepdims=True)
    acc_ref[1:2, :] += jnp.sum(x * x, axis=0, keepdims=True)

    @pl.when(i == pl.num_programs(0) - 1)
    def _fin():
        mean = acc_ref[0:1, :] * inv_count
        var = acc_ref[1:2, :] * inv_count - mean * mean   # biased (training BN)
        scale = gamma_ref[...] * lax.rsqrt(var + BN_EPS)
        ss_ref[0:1, :] = scale
        ss_ref[1:2, :] = beta_ref[...] - mean * scale


def _row_tile(rows):
    # Large, mem-bound-friendly tiles; keep them divisors of `rows`.
    for t in (2048, 1024, 512, 256, 128, 64, 32, 16, 8):
        if rows % t == 0:
            return t
    # TODO(synk): ragged row counts fall back to one big tile (no pipelining).
    return rows


def bn_scale_shift(x2d, gamma, beta):
    """(rows, C) activation -> (2, C) [scale; shift] of training-mode BN."""
    rows, chan = x2d.shape
    tr = _row_tile(rows)
    nt = rows // tr
    return pl.pallas_call(
        functools.partial(_bn_stats_kernel, inv_count=1.0 / rows),
        out_shape=jax.ShapeDtypeStruct((2, chan), jnp.float32),
        grid=(nt,),
        in_specs=[
            pl.BlockSpec((tr, chan), lambda i: (i, 0)),
            pl.BlockSpec((1, chan), lambda i: (0, 0)),
            pl.BlockSpec((1, chan), lambda i: (0, 0)),
        ],
        out_specs=pl.BlockSpec((2, chan), lambda i: (0, 0)),
        scratch_shapes=[pltpu.VMEM((2, chan), jnp.float32)],
        compiler_params=pltpu.CompilerParams(dimension_semantics=("arbitrary",)),
    )(x2d,
      gamma.reshape(1, chan).astype(jnp.float32),
      beta.reshape(1, chan).astype(jnp.float32))


# ---------------------------------------------------------------------------
# Fused  relu(bn(x)) -> 3x3 conv (pad 1, stride s) [+ 1x1 shortcut]
#                    [+ residual add] [+ output-BN statistics]
# ---------------------------------------------------------------------------
def _conv_block_kernel(*refs, s, cin, cout, hs, ws, hph, ho, wo, th, n_tiles,
                       has_sc, has_res, do_stats, inv_count):
    """One image per grid step.

    refs (in order):
      x_ref    (hs, s, ws, s*cin)  raw input, phase-split by a free reshape
      ss_ref   (2, cin)            scale / shift of the BN applied to the input
      w_ref    (3, 3*cin, cout)    bf16 taps, kw folded into the K dimension
      [wsc_ref (cin, cout)]        bf16 1x1 shortcut weight      (has_sc)
      [res_ref (ho*wo, cout)]      residual added to the output  (has_res)
      [g_ref, b_ref (1, cout)]     gamma/beta of the *output* BN (do_stats)
      o_ref    (ho*wo, cout)       conv output
      [rout_ref (ho*wo, cout)]     shortcut output               (has_sc)
      [ssout_ref (2, cout)]        output-BN scale/shift         (do_stats)
      aw_ref   VMEM (s, hph, wo, 3*cin) f32    width-unrolled padded activation
      [st_ref  VMEM (2, cout) f32]             sum / sumsq accumulator
    """
    it = iter(refs)
    x_ref = next(it)
    ss_ref = next(it)
    w_ref = next(it)
    wsc_ref = next(it) if has_sc else None
    res_ref = next(it) if has_res else None
    g_ref = next(it) if do_stats else None
    b_ref = next(it) if do_stats else None
    o_ref = next(it)
    rout_ref = next(it) if has_sc else None
    ssout_ref = next(it) if do_stats else None
    aw_ref = next(it)
    st_ref = next(it) if do_stats else None

    pid = pl.program_id(0)

    if do_stats:
        @pl.when(pid == 0)
        def _init_stats():
            st_ref[...] = jnp.zeros_like(st_ref)

    # --- Prologue: a = relu(bn(x)) written straight into the zero-padded,
    #     width-unrolled VMEM scratch (the padded activation never hits HBM):
    #         aw[p, i, j, kw*cin:(kw+1)*cin] = a_pad[s*i + p, s*j + kw, :]
    aw_ref[...] = jnp.zeros_like(aw_ref)                 # pad border = 0
    scale = ss_ref[0:1, :].reshape(1, 1, cin)
    shift = ss_ref[1:2, :].reshape(1, 1, cin)
    for pp in range(s):                                  # input row parity
        for qq in range(s):                              # input col parity
            xph = x_ref[:, pp, :, qq * cin:(qq + 1) * cin].astype(jnp.float32)
            aph = jnp.maximum(xph * scale + shift, 0.0)  # (hs, ws, cin)
            p_t = (pp + 1) % s                           # target kh-phase
            d_i = (p_t - 1 - pp) // s
            i_lo, i_hi = max(0, -d_i), min(hph, hs - d_i)
            for kw in range(3):
                if (kw - 1) % s != qq:
                    continue
                d_j = (kw - 1 - qq) // s
                j_lo, j_hi = max(0, -d_j), min(wo, ws - d_j)
                aw_ref[p_t, i_lo:i_hi, j_lo:j_hi, kw * cin:(kw + 1) * cin] = (
                    aph[i_lo + d_i:i_hi + d_i, j_lo + d_j:j_hi + d_j, :])

    # --- Main loop over output-row tiles: 3 MXU matmuls (kw folded into K),
    #     the f32 accumulator stays register resident across the taps;
    #     residual add, 1x1 shortcut and BN statistics are fused.
    th_rows = th * wo

    def tile_body(t, carry):
        y0 = t * th
        m0 = pl.multiple_of(t * th_rows, th_rows)
        acc = jnp.zeros((th_rows, cout), jnp.float32)
        for kh in range(3):
            lhs = aw_ref[kh % s, pl.ds(y0 + kh // s, th), :, :]
            # (th, wo, 3*cin) -> (th*wo, 3*cin); wo is a multiple of 8 here so
            # the reshape is a clean sublane-block stack.
            lhs = lhs.reshape(th_rows, 3 * cin).astype(jnp.bfloat16)
            acc = acc + jnp.dot(lhs, w_ref[kh],
                                preferred_element_type=jnp.float32)
        if has_res:
            acc = acc + res_ref[pl.ds(m0, th_rows), :].astype(jnp.float32)
        if do_stats:   # per-channel sum / sumsq of this kernel's own output
            st_ref[0:1, :] += jnp.sum(acc, axis=0, keepdims=True)
            st_ref[1:2, :] += jnp.sum(acc * acc, axis=0, keepdims=True)
        o_ref[pl.ds(m0, th_rows), :] = acc.astype(o_ref.dtype)
        if has_sc:     # 1x1 shortcut on the already-resident centre window
            sc_lhs = aw_ref[1 % s, pl.ds(y0 + 1 // s, th), :, cin:2 * cin]
            sc_lhs = sc_lhs.reshape(th_rows, cin).astype(jnp.bfloat16)
            sc = jnp.dot(sc_lhs, wsc_ref[...],
                         preferred_element_type=jnp.float32)
            rout_ref[pl.ds(m0, th_rows), :] = sc.astype(rout_ref.dtype)
        return carry

    lax.fori_loop(0, n_tiles, tile_body, 0)

    if do_stats:
        @pl.when(pid == pl.num_programs(0) - 1)
        def _fin_stats():
            mean = st_ref[0:1, :] * inv_count
            var = st_ref[1:2, :] * inv_count - mean * mean
            scl = g_ref[...] * lax.rsqrt(var + BN_EPS)
            ssout_ref[0:1, :] = scl
            ssout_ref[1:2, :] = b_ref[...] - mean * scl


def conv3x3_block(x_ph, bn_ss, w3, s, *, wsc=None, res=None,
                  out_dtype=jnp.float32, stats=None):
    """Fused  relu(bn(x)) -> conv3x3(stride s, pad 1)  [+ shortcut/res/stats].

    x_ph  : (N, H//s, s, W//s, s*Cin)  free (metadata) reshape of the activation
    bn_ss : (2, Cin)   scale / shift of the BN applied to the input
    w3    : (3, 3*Cin, Cout)  taps with kw folded into K
    wsc   : (Cin, Cout) or None   fused 1x1 shortcut (stride s) on relu(bn(x))
    res   : (N, Ho*Wo, Cout) or None   residual added to the conv output
    stats : (gamma, beta) or None   fuse output-BN statistics as an epilogue
    returns [out(N,Ho*Wo,Cout)] (+ [shortcut bf16]) (+ [(2,Cout) scale/shift])
    """
    n, hs, s_, ws, scin = x_ph.shape
    assert s_ == s and scin == s * (scin // s)
    cin = scin // s
    cout = w3.shape[-1]
    ho, wo = hs, ws                      # pad=1, k=3, stride=s, H,W % s == 0
    hph = ho + (2 // s)                  # padded rows per kh-phase
    r_out = ho * wo

    # Output-row tile: largest divisor of ho keeping the accumulator <=~256 rows.
    th = 1
    for t in range(ho, 0, -1):
        if ho % t == 0 and t * wo <= 256:
            th = t
            break
    n_tiles = ho // th

    has_sc = wsc is not None
    has_res = res is not None
    do_stats = stats is not None

    operands = [x_ph, bn_ss.astype(jnp.float32), w3.astype(jnp.bfloat16)]
    in_specs = [
        pl.BlockSpec((None, hs, s, ws, scin), lambda i: (i, 0, 0, 0, 0)),
        pl.BlockSpec((2, cin), lambda i: (0, 0)),
        pl.BlockSpec((3, 3 * cin, cout), lambda i: (0, 0, 0)),
    ]
    if has_sc:
        operands.append(wsc.astype(jnp.bfloat16))
        in_specs.append(pl.BlockSpec((cin, cout), lambda i: (0, 0)))
    if has_res:
        operands.append(res)
        in_specs.append(pl.BlockSpec((None, r_out, cout), lambda i: (i, 0, 0)))
    if do_stats:
        gamma_n, beta_n = stats
        operands += [gamma_n.reshape(1, cout).astype(jnp.float32),
                     beta_n.reshape(1, cout).astype(jnp.float32)]
        in_specs += [pl.BlockSpec((1, cout), lambda i: (0, 0))] * 2

    out_shape = [jax.ShapeDtypeStruct((n, r_out, cout), out_dtype)]
    out_specs = [pl.BlockSpec((None, r_out, cout), lambda i: (i, 0, 0))]
    if has_sc:
        out_shape.append(jax.ShapeDtypeStruct((n, r_out, cout), jnp.bfloat16))
        out_specs.append(pl.BlockSpec((None, r_out, cout), lambda i: (i, 0, 0)))
    if do_stats:
        out_shape.append(jax.ShapeDtypeStruct((2, cout), jnp.float32))
        out_specs.append(pl.BlockSpec((2, cout), lambda i: (0, 0)))

    scratch = [pltpu.VMEM((s, hph, wo, 3 * cin), jnp.float32)]
    if do_stats:
        scratch.append(pltpu.VMEM((2, cout), jnp.float32))

    kernel = functools.partial(
        _conv_block_kernel, s=s, cin=cin, cout=cout, hs=hs, ws=ws, hph=hph,
        ho=ho, wo=wo, th=th, n_tiles=n_tiles, has_sc=has_sc, has_res=has_res,
        do_stats=do_stats, inv_count=1.0 / (n * r_out))

    # Fused cross-image BN statistics make the grid a reduction ("arbitrary");
    # without them the per-image steps are independent ("parallel" -> megacore).
    sem = ("arbitrary",) if do_stats else ("parallel",)
    outs = pl.pallas_call(
        kernel,
        out_shape=tuple(out_shape),
        grid=(n,),
        in_specs=in_specs,
        out_specs=tuple(out_specs),
        scratch_shapes=scratch,
        compiler_params=pltpu.CompilerParams(dimension_semantics=sem),
    )(*operands)
    return outs if isinstance(outs, (list, tuple)) else (outs,)


# ---------------------------------------------------------------------------
# MetaBasicBlock / MetaNetworkBlock forward
# ---------------------------------------------------------------------------
def init_basic_block_params(key, cin, cout):
    ks = jax.random.split(key, 7)
    p = {
        "bn1_gamma": 1.0 + 0.1 * jax.random.normal(ks[0], (cin,), jnp.float32),
        "bn1_beta": 0.1 * jax.random.normal(ks[1], (cin,), jnp.float32),
        "conv1_w": 0.1 * jax.random.normal(ks[2], (cout, cin, 3, 3), jnp.float32),
        "bn2_gamma": 1.0 + 0.1 * jax.random.normal(ks[3], (cout,), jnp.float32),
        "bn2_beta": 0.1 * jax.random.normal(ks[4], (cout,), jnp.float32),
        "conv2_w": 0.1 * jax.random.normal(ks[5], (cout, cout, 3, 3), jnp.float32),
    }
    if cin != cout:
        p["sc_w"] = 0.1 * jax.random.normal(ks[6], (cout, cin, 1, 1), jnp.float32)
    return p


def init_meta_network_block(key, nb_layers, in_planes, out_planes):
    params = []
    for i in range(nb_layers):
        cin = in_planes if i == 0 else out_planes
        key, sub = jax.random.split(key)
        params.append(init_basic_block_params(sub, cin, out_planes))
    return params


def basic_block_forward(x_rows, p, s, hw, bn1_ss, next_params):
    """x_rows: (N, H*W, Cin) activation; bn1_ss: (2, Cin) precomputed BN1."""
    n, r, cin = x_rows.shape
    h, w = hw
    assert r == h * w and h % s == 0 and w % s == 0
    cout = p["conv1_w"].shape[0]
    has_sc = "sc_w" in p
    assert has_sc or s == 1, "identity residual requires stride 1"
    ho, wo = h // s, w // s

    # conv1: prologue relu(bn1(x)), 3 kw-folded MXU matmuls, fused 1x1 shortcut
    # (expanding blocks), epilogue = BN2 statistics -> (2, Cout) scale/shift.
    w1 = p["conv1_w"].transpose(2, 3, 1, 0).reshape(3, 3 * cin, cout)
    wsc = p["sc_w"].reshape(cout, cin).T if has_sc else None
    x_ph = x_rows.reshape(n, h // s, s, w // s, s * cin)    # free reshape
    outs = conv3x3_block(x_ph, bn1_ss, w1, s, wsc=wsc, res=None,
                         out_dtype=jnp.bfloat16,
                         stats=(p["bn2_gamma"], p["bn2_beta"]))
    if has_sc:
        hmid, res, bn2_ss = outs
    else:
        hmid, bn2_ss = outs
        res = x_rows                      # identity residual (s == 1)

    # TODO(synk): dropRate == 0.0 -> F.dropout is the identity; not emitted.

    # conv2 (stride 1): prologue relu(bn2(hmid)), residual add fused into the
    # accumulator, optional epilogue = next layer's BN1 statistics.
    w2 = p["conv2_w"].transpose(2, 3, 1, 0).reshape(3, 3 * cout, cout)
    h_ph = hmid.reshape(n, ho, 1, wo, cout)                 # free reshape
    stats = (None if next_params is None
             else (next_params["bn1_gamma"], next_params["bn1_beta"]))
    outs = conv3x3_block(h_ph, bn2_ss, w2, 1, wsc=None, res=res,
                         out_dtype=jnp.float32, stats=stats)
    if stats is None:
        (out,) = outs
        next_bn1_ss = None
    else:
        out, next_bn1_ss = outs
    return out, next_bn1_ss, (ho, wo)


def meta_network_block_forward(x_nchw, params, stride):
    # NCHW (PyTorch) -> NHWC row layout used by the kernels.
    x = jnp.transpose(x_nchw, (0, 2, 3, 1)).astype(jnp.float32)
    n, h, w, c = x.shape
    x_rows = x.reshape(n, h * w, c)
    # Only the very first BN needs a standalone stats pass; every following BN's
    # statistics are fused into the producing conv kernel's epilogue.
    bn_ss = bn_scale_shift(x.reshape(n * h * w, c),
                           params[0]["bn1_gamma"], params[0]["bn1_beta"])
    for i, p in enumerate(params):
        s = stride if i == 0 else 1
        nxt = params[i + 1] if i + 1 < len(params) else None
        x_rows, bn_ss, (h, w) = basic_block_forward(x_rows, p, s, (h, w),
                                                    bn_ss, nxt)
    cout = params[-1]["conv1_w"].shape[0]
    y = x_rows.reshape(n, h, w, cout)
    return jnp.transpose(y, (0, 3, 1, 2))     # back to NCHW


# ---------------------------------------------------------------------------
# Pure-JAX reference (f32, HIGHEST precision) for the correctness check
# ---------------------------------------------------------------------------
def _ref_block(x, p, stride):
    def bn(v, g, b):
        mean = v.mean(axis=(0, 2, 3), keepdims=True)
        var = v.var(axis=(0, 2, 3), keepdims=True)   # biased (training-mode BN)
        return ((v - mean) / jnp.sqrt(var + BN_EPS)) * g.reshape(1, -1, 1, 1) \
               + b.reshape(1, -1, 1, 1)

    def conv(v, w, s, pad):
        return lax.conv_general_dilated(
            v, w, (s, s), [(pad, pad), (pad, pad)],
            dimension_numbers=("NCHW", "OIHW", "NCHW"),
            precision=lax.Precision.HIGHEST)

    a = jax.nn.relu(bn(x, p["bn1_gamma"], p["bn1_beta"]))
    h = conv(a, p["conv1_w"], stride, 1)
    h = jax.nn.relu(bn(h, p["bn2_gamma"], p["bn2_beta"]))
    out = conv(h, p["conv2_w"], 1, 1)
    res = x if "sc_w" not in p else conv(a, p["sc_w"], stride, 0)
    return res + out


def _ref_forward(x, params, stride):
    for i, p in enumerate(params):
        x = _ref_block(x, p, stride if i == 0 else 1)
    return x


# ---------------------------------------------------------------------------
if __name__ == "__main__":
    # MetaNetworkBlock(nb_layers=2, in_planes=4, out_planes=8,
    #                  block=MetaBasicBlock, stride=2, dropRate=0.0)
    nb_layers, in_planes, out_planes, stride = 2, 4, 8, 2

    key = jax.random.PRNGKey(0)
    kx, kp = jax.random.split(key)
    x = jax.random.normal(kx, (2, in_planes, 16, 16), jnp.float32)   # NCHW

    params = init_meta_network_block(kp, nb_layers, in_planes, out_planes)

    fwd = jax.jit(meta_network_block_forward, static_argnums=2)
    out = jax.block_until_ready(fwd(x, params, stride))
    assert out.shape == (2, out_planes, 8, 8), out.shape

    ref = jax.block_until_ready(_ref_forward(x, params, stride))
    # bf16 MXU inputs / bf16 hmid (f32 accumulation, f32 BN statistics) vs the
    # pure-f32 reference over two stacked blocks -> relaxed tolerance; any real
    # indexing / padding / stats bug produces O(0.3-1) errors, far above this.
    np.testing.assert_allclose(np.asarray(out), np.asarray(ref),
                               rtol=5e-2, atol=8e-2)

    print("KERNEL_OK")
</pallas_src>

<mosaic_0001>
module attributes {stable_mosaic.version = 11 : i64} {
  func.func @_bn_stats_kernel(%arg0: i32, %arg1: memref<512x4xf32, #tpu.memory_space<vmem>>, %arg2: memref<1x4xf32, #tpu.memory_space<vmem>>, %arg3: memref<1x4xf32, #tpu.memory_space<vmem>>, %arg4: memref<2x4xf32, #tpu.memory_space<vmem>>, %arg5: memref<2x4xf32, #tpu.memory_space<vmem>>) attributes {dimension_semantics = [#tpu.dimension_semantics<arbitrary>], iteration_bounds = array<i64: 1>, scalar_prefetch = 0 : i64, scratch_operands = 1 : i64, tpu.core_type = #tpu.core_type<tc>, window_params = [{transform_indices = @transform_0, window_bounds = array<i64: 512, 4>}, {pipeline_mode = #tpu.pipeline_mode<synchronous>, transform_indices = @transform_1, window_bounds = array<i64: 1, 4>}, {pipeline_mode = #tpu.pipeline_mode<synchronous>, transform_indices = @transform_2, window_bounds = array<i64: 1, 4>}, {pipeline_mode = #tpu.pipeline_mode<synchronous>, transform_indices = @transform_3, window_bounds = array<i64: 2, 4>}]} {
    %c0_i32 = arith.constant 0 : i32
    %0 = arith.cmpi eq, %arg0, %c0_i32 : i32
    %1 = arith.extui %0 : i1 to i32
    %c0_i32_0 = arith.constant 0 : i32
    %2 = arith.cmpi ne, %1, %c0_i32_0 : i32
    scf.if %2 {
      %cst_12 = arith.constant 0.000000e+00 : f32
      %18 = vector.broadcast %cst_12 : f32 to vector<2x4xf32>
      %c0_13 = arith.constant 0 : index
      %c0_14 = arith.constant 0 : index
      %19 = vector.load %arg5[%c0_13, %c0_14] : memref<2x4xf32, #tpu.memory_space<vmem>>, vector<2x4xf32>
      tpu.vector_store %arg5[%c0_13, %c0_14], %18 {strides = array<i32>} : memref<2x4xf32, #tpu.memory_space<vmem>>, vector<2x4xf32>,
    } else {
    }
    %c0 = arith.constant 0 : index
    %c0_1 = arith.constant 0 : index
    %3 = vector.load %arg1[%c0, %c0_1] : memref<512x4xf32, #tpu.memory_space<vmem>>, vector<512x4xf32>
    %c0_2 = arith.constant 0 : index
    %c0_3 = arith.constant 0 : index
    %4 = vector.load %arg5[%c0_2, %c0_3] : memref<2x4xf32, #tpu.memory_space<vmem>>, vector<1x4xf32>
    %cst = arith.constant dense<0.000000e+00> : vector<4xf32>
    %5 = vector.multi_reduction <add>, %3, %cst [0] : vector<512x4xf32> to vector<4xf32>
    %6 = vector.shape_cast %5 : vector<4xf32> to vector<1x4xf32>
    %7 = arith.addf %4, %6 : vector<1x4xf32>
    %c0_4 = arith.constant 0 : index
    %c0_5 = arith.constant 0 : index
    %8 = vector.load %arg5[%c0_4, %c0_5] : memref<2x4xf32, #tpu.memory_space<vmem>>, vector<1x4xf32>
    tpu.vector_store %arg5[%c0_4, %c0_5], %7 {strides = array<i32>} : memref<2x4xf32, #tpu.memory_space<vmem>>, vector<1x4xf32>,
    %c1 = arith.constant 1 : index
    %c0_6 = arith.constant 0 : index
    %9 = vector.load %arg5[%c1, %c0_6] : memref<2x4xf32, #tpu.memory_space<vmem>>, vector<1x4xf32>
    %10 = arith.mulf %3, %3 : vector<512x4xf32>
    %cst_7 = arith.constant dense<0.000000e+00> : vector<4xf32>
    %11 = vector.multi_reduction <add>, %10, %cst_7 [0] : vector<512x4xf32> to vector<4xf32>
    %12 = vector.shape_cast %11 : vector<4xf32> to vector<1x4xf32>
    %13 = arith.addf %9, %12 : vector<1x4xf32>
    %c1_8 = arith.constant 1 : index
    %c0_9 = arith.constant 0 : index
    %14 = vector.load %arg5[%c1_8, %c0_9] : memref<2x4xf32, #tpu.memory_space<vmem>>, vector<1x4xf32>
    tpu.vector_store %arg5[%c1_8, %c0_9], %13 {strides = array<i32>} : memref<2x4xf32, #tpu.memory_space<vmem>>, vector<1x4xf32>,
    %c0_i32_10 = arith.constant 0 : i32
    %15 = arith.cmpi eq, %arg0, %c0_i32_10 : i32
    %16 = arith.extui %15 : i1 to i32
    %c0_i32_11 = arith.constant 0 : i32
    %17 = arith.cmpi ne, %16, %c0_i32_11 : i32
    scf.if %17 {
      %c0_12 = arith.constant 0 : index
      %c0_13 = arith.constant 0 : index
      %18 = vector.load %arg5[%c0_12, %c0_13] : memref<2x4xf32, #tpu.memory_space<vmem>>, vector<1x4xf32>
      %cst_14 = arith.constant 0.001953125 : f32
      %19 = vector.broadcast %cst_14 : f32 to vector<1x4xf32>
      %20 = arith.mulf %18, %19 : vector<1x4xf32>
      %c1_15 = arith.constant 1 : index
      %c0_16 = arith.constant 0 : index
      %21 = vector.load %arg5[%c1_15, %c0_16] : memref<2x4xf32, #tpu.memory_space<vmem>>, vector<1x4xf32>
      %cst_17 = arith.constant 0.001953125 : f32
      %22 = vector.broadcast %cst_17 : f32 to vector<1x4xf32>
      %23 = arith.mulf %21, %22 : vector<1x4xf32>
      %24 = arith.mulf %20, %20 : vector<1x4xf32>
      %25 = arith.subf %23, %24 : vector<1x4xf32>
      %c0_18 = arith.constant 0 : index
      %c0_19 = arith.constant 0 : index
      %26 = vector.load %arg2[%c0_18, %c0_19] : memref<1x4xf32, #tpu.memory_space<vmem>>, vector<1x4xf32>
      %cst_20 = arith.constant 9.99999974E-6 : f32
      %27 = vector.broadcast %cst_20 : f32 to vector<1x4xf32>
      %28 = arith.addf %25, %27 : vector<1x4xf32>
      %29 = math.rsqrt %28 : vector<1x4xf32>
      %30 = arith.mulf %26, %29 : vector<1x4xf32>
      %c0_21 = arith.constant 0 : index
      %c0_22 = arith.constant 0 : index
      %31 = vector.load %arg4[%c0_21, %c0_22] : memref<2x4xf32, #tpu.memory_space<vmem>>, vector<1x4xf32>
      tpu.vector_store %arg4[%c0_21, %c0_22], %30 {strides = array<i32>} : memref<2x4xf32, #tpu.memory_space<vmem>>, vector<1x4xf32>,
      %c0_23 = arith.constant 0 : index
      %c0_24 = arith.constant 0 : index
      %32 = vector.load %arg3[%c0_23, %c0_24] : memref<1x4xf32, #tpu.memory_space<vmem>>, vector<1x4xf32>
      %33 = arith.mulf %20, %30 : vector<1x4xf32>
      %34 = arith.subf %32, %33 : vector<1x4xf32>
      %c1_25 = arith.constant 1 : index
      %c0_26 = arith.constant 0 : index
      %35 = vector.load %arg4[%c1_25, %c0_26] : memref<2x4xf32, #tpu.memory_space<vmem>>, vector<1x4xf32>
      tpu.vector_store %arg4[%c1_25, %c0_26], %34 {strides = array<i32>} : memref<2x4xf32, #tpu.memory_space<vmem>>, vector<1x4xf32>,
    } else {
    }
    return
  }
  func.func @transform_0(%arg0: i32) -> (i32, i32) {
    %c0_i32 = arith.constant 0 : i32
    %c0_i32_0 = arith.constant 0 : i32
    return %arg0, %c0_i32 : i32, i32
  }
  func.func @transform_1(%arg0: i32) -> (i32, i32) {
    %c0_i32 = arith.constant 0 : i32
    %c0_i32_0 = arith.constant 0 : i32
    %c0_i32_1 = arith.constant 0 : i32
    return %c0_i32, %c0_i32_0 : i32, i32
  }
  func.func @transform_2(%arg0: i32) -> (i32, i32) {
    %c0_i32 = arith.constant 0 : i32
    %c0_i32_0 = arith.constant 0 : i32
    %c0_i32_1 = arith.constant 0 : i32
    return %c0_i32, %c0_i32_0 : i32, i32
  }
  func.func @transform_3(%arg0: i32) -> (i32, i32) {
    %c0_i32 = arith.constant 0 : i32
    %c0_i32_0 = arith.constant 0 : i32
    %c0_i32_1 = arith.constant 0 : i32
    return %c0_i32, %c0_i32_0 : i32, i32
  }
}

module attributes {stable_mosaic.version = 11 : i64} {
  func.func @_conv_block_kernel(%arg0: i32, %arg1: memref<1x8x1x8x8xbf16, #tpu.memory_space<vmem>>, %arg2: memref<2x8xf32, #tpu.memory_space<vmem>>, %arg3: memref<3x24x8xbf16, #tpu.memory_space<vmem>>, %arg4: memref<1x64x8xbf16, #tpu.memory_space<vmem>>, %arg5: memref<1x8xf32, #tpu.memory_space<vmem>>, %arg6: memref<1x8xf32, #tpu.memory_space<vmem>>, %arg7: memref<1x64x8xf32, #tpu.memory_space<vmem>>, %arg8: memref<2x8xf32, #tpu.memory_space<vmem>>, %arg9: memref<1x10x8x24xf32, #tpu.memory_space<vmem>>, %arg10: memref<2x8xf32, #tpu.memory_space<vmem>>) attributes {dimension_semantics = [#tpu.dimension_semantics<arbitrary>], iteration_bounds = array<i64: 2>, scalar_prefetch = 0 : i64, scratch_operands = 2 : i64, tpu.core_type = #tpu.core_type<tc>, window_params = [{transform_indices = @transform_0, window_bounds = array<i64: 1, 8, 1, 8, 8>}, {pipeline_mode = #tpu.pipeline_mode<synchronous>, transform_indices = @transform_1, window_bounds = array<i64: 2, 8>}, {pipeline_mode = #tpu.pipeline_mode<synchronous>, transform_indices = @transform_2, window_bounds = array<i64: 3, 24, 8>}, {transform_indices = @transform_3, window_bounds = array<i64: 1, 64, 8>}, {pipeline_mode = #tpu.pipeline_mode<synchronous>, transform_indices = @transform_4, window_bounds = array<i64: 1, 8>}, {pipeline_mode = #tpu.pipeline_mode<synchronous>, transform_indices = @transform_5, window_bounds = array<i64: 1, 8>}, {transform_indices = @transform_6, window_bounds = array<i64: 1, 64, 8>}, {pipeline_mode = #tpu.pipeline_mode<synchronous>, transform_indices = @transform_7, window_bounds = array<i64: 2, 8>}]} {
    %c0_i32 = arith.constant 0 : i32
    %0 = arith.cmpi eq, %arg0, %c0_i32 : i32
    %1 = arith.extui %0 : i1 to i32
    %c0_i32_0 = arith.constant 0 : i32
    %2 = arith.cmpi ne, %1, %c0_i32_0 : i32
    scf.if %2 {
      %cst_63 = arith.constant 0.000000e+00 : f32
      %86 = vector.broadcast %cst_63 : f32 to vector<2x8xf32>
      %c0_64 = arith.constant 0 : index
      %c0_65 = arith.constant 0 : index
      %87 = vector.load %arg10[%c0_64, %c0_65] : memref<2x8xf32, #tpu.memory_space<vmem>>, vector<2x8xf32>
      tpu.vector_store %arg10[%c0_64, %c0_65], %86 {strides = array<i32>} : memref<2x8xf32, #tpu.memory_space<vmem>>, vector<2x8xf32>,
    } else {
    }
    %cst = arith.constant 0.000000e+00 : f32
    %3 = vector.broadcast %cst : f32 to vector<1x10x8x24xf32>
    %c0 = arith.constant 0 : index
    %c0_1 = arith.constant 0 : index
    %c0_2 = arith.constant 0 : index
    %c0_3 = arith.constant 0 : index
    %4 = vector.load %arg9[%c0, %c0_1, %c0_2, %c0_3] : memref<1x10x8x24xf32, #tpu.memory_space<vmem>>, vector<1x10x8x24xf32>
    tpu.vector_store %arg9[%c0, %c0_1, %c0_2, %c0_3], %3 {strides = array<i32>} : memref<1x10x8x24xf32, #tpu.memory_space<vmem>>, vector<1x10x8x24xf32>,
    %c0_4 = arith.constant 0 : index
    %c0_5 = arith.constant 0 : index
    %5 = vector.load %arg2[%c0_4, %c0_5] : memref<2x8xf32, #tpu.memory_space<vmem>>, vector<1x8xf32>
    %6 = vector.shape_cast %5 : vector<1x8xf32> to vector<1x1x8xf32>
    %c1 = arith.constant 1 : index
    %c0_6 = arith.constant 0 : index
    %7 = vector.load %arg2[%c1, %c0_6] : memref<2x8xf32, #tpu.memory_space<vmem>>, vector<1x8xf32>
    %8 = vector.shape_cast %7 : vector<1x8xf32> to vector<1x1x8xf32>
    %c0_7 = arith.constant 0 : index
    %c0_8 = arith.constant 0 : index
    %c0_9 = arith.constant 0 : index
    %c0_10 = arith.constant 0 : index
    %c0_11 = arith.constant 0 : index
    %9 = vector.load %arg1[%c0_7, %c0_8, %c0_9, %c0_10, %c0_11] : memref<1x8x1x8x8xbf16, #tpu.memory_space<vmem>>, vector<1x8x1x8x8xbf16>
    %10 = vector.shape_cast %9 : vector<1x8x1x8x8xbf16> to vector<8x8x8xbf16>
    %11 = arith.extf %10 : vector<8x8x8xbf16> to vector<8x8x8xf32>
    %12 = vector.broadcast %6 : vector<1x1x8xf32> to vector<8x8x8xf32>
    %13 = arith.mulf %11, %12 : vector<8x8x8xf32>
    %14 = vector.broadcast %8 : vector<1x1x8xf32> to vector<8x8x8xf32>
    %15 = arith.addf %13, %14 : vector<8x8x8xf32>
    %cst_12 = arith.constant 0.000000e+00 : f32
    %16 = vector.broadcast %cst_12 : f32 to vector<8x8x8xf32>
    %17 = arith.maximumf %15, %16 : vector<8x8x8xf32>
    %18 = vector.extract_strided_slice %17 {offsets = [0, 0, 0], sizes = [8, 7, 8], strides = [1, 1, 1]} : vector<8x8x8xf32> to vector<8x7x8xf32>
    %c0_13 = arith.constant 0 : index
    %c1_14 = arith.constant 1 : index
    %c1_15 = arith.constant 1 : index
    %c0_16 = arith.constant 0 : index
    %19 = vector.load %arg9[%c0_13, %c1_14, %c1_15, %c0_16] : memref<1x10x8x24xf32, #tpu.memory_space<vmem>>, vector<1x8x7x8xf32>
    %20 = vector.shape_cast %19 : vector<1x8x7x8xf32> to vector<8x7x8xf32>
    %21 = vector.shape_cast %18 : vector<8x7x8xf32> to vector<1x8x7x8xf32>
    tpu.vector_store %arg9[%c0_13, %c1_14, %c1_15, %c0_16], %21 {strides = array<i32>} : memref<1x10x8x24xf32, #tpu.memory_space<vmem>>, vector<1x8x7x8xf32>,
    %c0_17 = arith.constant 0 : index
    %c1_18 = arith.constant 1 : index
    %c0_19 = arith.constant 0 : index
    %c8 = arith.constant 8 : index
    %22 = vector.load %arg9[%c0_17, %c1_18, %c0_19, %c8] : memref<1x10x8x24xf32, #tpu.memory_space<vmem>>, vector<1x8x8x8xf32>
    %23 = vector.shape_cast %22 : vector<1x8x8x8xf32> to vector<8x8x8xf32>
    %24 = vector.shape_cast %17 : vector<8x8x8xf32> to vector<1x8x8x8xf32>
    tpu.vector_store %arg9[%c0_17, %c1_18, %c0_19, %c8], %24 {strides = array<i32>} : memref<1x10x8x24xf32, #tpu.memory_space<vmem>>, vector<1x8x8x8xf32>,
    %25 = vector.extract_strided_slice %17 {offsets = [0, 1, 0], sizes = [8, 7, 8], strides = [1, 1, 1]} : vector<8x8x8xf32> to vector<8x7x8xf32>
    %c0_20 = arith.constant 0 : index
    %c1_21 = arith.constant 1 : index
    %c0_22 = arith.constant 0 : index
    %c16 = arith.constant 16 : index
    %26 = vector.load %arg9[%c0_20, %c1_21, %c0_22, %c16] : memref<1x10x8x24xf32, #tpu.memory_space<vmem>>, vector<1x8x7x8xf32>
    %27 = vector.shape_cast %26 : vector<1x8x7x8xf32> to vector<8x7x8xf32>
    %28 = vector.shape_cast %25 : vector<8x7x8xf32> to vector<1x8x7x8xf32>
    tpu.vector_store %arg9[%c0_20, %c1_21, %c0_22, %c16], %28 {strides = array<i32>} : memref<1x10x8x24xf32, #tpu.memory_space<vmem>>, vector<1x8x7x8xf32>,
    %c0_i32_23 = arith.constant 0 : i32
    %c8_i32 = arith.constant 8 : i32
    %29 = arith.muli %c0_i32_23, %c8_i32 : i32
    %c64_i32 = arith.constant 64 : i32
    %30 = arith.muli %c0_i32_23, %c64_i32 : i32
    %31 = tpu.assume_multiple %30, 64 : i32
    %cst_24 = arith.constant 0.000000e+00 : f32
    %32 = vector.broadcast %cst_24 : f32 to vector<64x8xf32>
    %c0_i32_25 = arith.constant 0 : i32
    %33 = arith.addi %29, %c0_i32_25 : i32
    %c0_26 = arith.constant 0 : index
    %34 = arith.index_cast %33 : i32 to index
    %c0_27 = arith.constant 0 : index
    %c0_28 = arith.constant 0 : index
    %35 = vector.load %arg9[%c0_26, %34, %c0_27, %c0_28] : memref<1x10x8x24xf32, #tpu.memory_space<vmem>>, vector<1x8x8x24xf32>
    %36 = vector.shape_cast %35 : vector<1x8x8x24xf32> to vector<8x8x24xf32>
    %37 = vector.shape_cast %36 : vector<8x8x24xf32> to vector<64x24xf32>
    %38 = arith.truncf %37 : vector<64x24xf32> to vector<64x24xbf16>
    %c0_29 = arith.constant 0 : index
    %c0_30 = arith.constant 0 : index
    %c0_31 = arith.constant 0 : index
    %39 = vector.load %arg3[%c0_29, %c0_30, %c0_31] : memref<3x24x8xbf16, #tpu.memory_space<vmem>>, vector<1x24x8xbf16>
    %40 = vector.shape_cast %39 : vector<1x24x8xbf16> to vector<24x8xbf16>
    %cst_32 = arith.constant dense<0.000000e+00> : vector<64x8xf32>
    %41 = tpu.matmul %38, %40, %cst_32 {dimension_numbers = #tpu.dot_dimension_numbers<[1], [0], [0], [1], [0, 0, 1, 1], [], []>} : vector<64x24xbf16>, vector<24x8xbf16>, vector<64x8xf32> -> vector<64x8xf32>
    %42 = arith.addf %32, %41 : vector<64x8xf32>
    %c1_i32 = arith.constant 1 : i32
    %43 = arith.addi %29, %c1_i32 : i32
    %c0_33 = arith.constant 0 : index
    %44 = arith.index_cast %43 : i32 to index
    %c0_34 = arith.constant 0 : index
    %c0_35 = arith.constant 0 : index
    %45 = vector.load %arg9[%c0_33, %44, %c0_34, %c0_35] : memref<1x10x8x24xf32, #tpu.memory_space<vmem>>, vector<1x8x8x24xf32>
    %46 = vector.shape_cast %45 : vector<1x8x8x24xf32> to vector<8x8x24xf32>
    %47 = vector.shape_cast %46 : vector<8x8x24xf32> to vector<64x24xf32>
    %48 = arith.truncf %47 : vector<64x24xf32> to vector<64x24xbf16>
    %c1_36 = arith.constant 1 : index
    %c0_37 = arith.constant 0 : index
    %c0_38 = arith.constant 0 : index
    %49 = vector.load %arg3[%c1_36, %c0_37, %c0_38] : memref<3x24x8xbf16, #tpu.memory_space<vmem>>, vector<1x24x8xbf16>
    %50 = vector.shape_cast %49 : vector<1x24x8xbf16> to vector<24x8xbf16>
    %cst_39 = arith.constant dense<0.000000e+00> : vector<64x8xf32>
    %51 = tpu.matmul %48, %50, %cst_39 {dimension_numbers = #tpu.dot_dimension_numbers<[1], [0], [0], [1], [0, 0, 1, 1], [], []>} : vector<64x24xbf16>, vector<24x8xbf16>, vector<64x8xf32> -> vector<64x8xf32>
    %52 = arith.addf %42, %51 : vector<64x8xf32>
    %c2_i32 = arith.constant 2 : i32
    %53 = arith.addi %29, %c2_i32 : i32
    %c0_40 = arith.constant 0 : index
    %54 = arith.index_cast %53 : i32 to index
    %c0_41 = arith.constant 0 : index
    %c0_42 = arith.constant 0 : index
    %55 = vector.load %arg9[%c0_40, %54, %c0_41, %c0_42] : memref<1x10x8x24xf32, #tpu.memory_space<vmem>>, vector<1x8x8x24xf32>
    %56 = vector.shape_cast %55 : vector<1x8x8x24xf32> to vector<8x8x24xf32>
    %57 = vector.shape_cast %56 : vector<8x8x24xf32> to vector<64x24xf32>
    %58 = arith.truncf %57 : vector<64x24xf32> to vector<64x24xbf16>
    %c2 = arith.constant 2 : index
    %c0_43 = arith.constant 0 : index
    %c0_44 = arith.constant 0 : index
    %59 = vector.load %arg3[%c2, %c0_43, %c0_44] : memref<3x24x8xbf16, #tpu.memory_space<vmem>>, vector<1x24x8xbf16>
    %60 = vector.shape_cast %59 : vector<1x24x8xbf16> to vector<24x8xbf16>
    %cst_45 = arith.constant dense<0.000000e+00> : vector<64x8xf32>
    %61 = tpu.matmul %58, %60, %cst_45 {dimension_numbers = #tpu.dot_dimension_numbers<[1], [0], [0], [1], [0, 0, 1, 1], [], []>} : vector<64x24xbf16>, vector<24x8xbf16>, vector<64x8xf32> -> vector<64x8xf32>
    %62 = arith.addf %52, %61 : vector<64x8xf32>
    %c0_46 = arith.constant 0 : index
    %63 = arith.index_cast %31 : i32 to index
    %c0_47 = arith.constant 0 : index
    %64 = vector.load %arg4[%c0_46, %63, %c0_47] : memref<1x64x8xbf16, #tpu.memory_space<vmem>>, vector<1x64x8xbf16>
    %65 = vector.shape_cast %64 : vector<1x64x8xbf16> to vector<64x8xbf16>
    %66 = arith.extf %65 : vector<64x8xbf16> to vector<64x8xf32>
    %67 = arith.addf %62, %66 : vector<64x8xf32>
    %c0_48 = arith.constant 0 : index
    %c0_49 = arith.constant 0 : index
    %68 = vector.load %arg10[%c0_48, %c0_49] : memref<2x8xf32, #tpu.memory_space<vmem>>, vector<1x8xf32>
    %cst_50 = arith.constant dense<0.000000e+00> : vector<8xf32>
    %69 = vector.multi_reduction <add>, %67, %cst_50 [0] : vector<64x8xf32> to vector<8xf32>
    %70 = vector.shape_cast %69 : vector<8xf32> to vector<1x8xf32>
    %71 = arith.addf %68, %70 : vector<1x8xf32>
    %c0_51 = arith.constant 0 : index
    %c0_52 = arith.constant 0 : index
    %72 = vector.load %arg10[%c0_51, %c0_52] : memref<2x8xf32, #tpu.memory_space<vmem>>, vector<1x8xf32>
    tpu.vector_store %arg10[%c0_51, %c0_52], %71 {strides = array<i32>} : memref<2x8xf32, #tpu.memory_space<vmem>>, vector<1x8xf32>,
    %c1_53 = arith.constant 1 : index
    %c0_54 = arith.constant 0 : index
    %73 = vector.load %arg10[%c1_53, %c0_54] : memref<2x8xf32, #tpu.memory_space<vmem>>, vector<1x8xf32>
    %74 = arith.mulf %67, %67 : vector<64x8xf32>
    %cst_55 = arith.constant dense<0.000000e+00> : vector<8xf32>
    %75 = vector.multi_reduction <add>, %74, %cst_55 [0] : vector<64x8xf32> to vector<8xf32>
    %76 = vector.shape_cast %75 : vector<8xf32> to vector<1x8xf32>
    %77 = arith.addf %73, %76 : vector<1x8xf32>
    %c1_56 = arith.constant 1 : index
    %c0_57 = arith.constant 0 : index
    %78 = vector.load %arg10[%c1_56, %c0_57] : memref<2x8xf32, #tpu.memory_space<vmem>>, vector<1x8xf32>
    tpu.vector_store %arg10[%c1_56, %c0_57], %77 {strides = array<i32>} : memref<2x8xf32, #tpu.memory_space<vmem>>, vector<1x8xf32>,
    %c0_58 = arith.constant 0 : index
    %79 = arith.index_cast %31 : i32 to index
    %c0_59 = arith.constant 0 : index
    %80 = vector.load %arg7[%c0_58, %79, %c0_59] : memref<1x64x8xf32, #tpu.memory_space<vmem>>, vector<1x64x8xf32>
    %81 = vector.shape_cast %80 : vector<1x64x8xf32> to vector<64x8xf32>
    %82 = vector.shape_cast %67 : vector<64x8xf32> to vector<1x64x8xf32>
    tpu.vector_store %arg7[%c0_58, %79, %c0_59], %82 {strides = array<i32>} : memref<1x64x8xf32, #tpu.memory_space<vmem>>, vector<1x64x8xf32>,
    %c1_i32_60 = arith.constant 1 : i32
    %c1_i32_61 = arith.constant 1 : i32
    %83 = arith.cmpi eq, %arg0, %c1_i32_61 : i32
    %84 = arith.extui %83 : i1 to i32
    %c0_i32_62 = arith.constant 0 : i32
    %85 = arith.cmpi ne, %84, %c0_i32_62 : i32
    scf.if %85 {
      %c0_63 = arith.constant 0 : index
      %c0_64 = arith.constant 0 : index
      %86 = vector.load %arg10[%c0_63, %c0_64] : memref<2x8xf32, #tpu.memory_space<vmem>>, vector<1x8xf32>
      %cst_65 = arith.constant 7.812500e-03 : f32
      %87 = vector.broadcast %cst_65 : f32 to vector<1x8xf32>
      %88 = arith.mulf %86, %87 : vector<1x8xf32>
      %c1_66 = arith.constant 1 : index
      %c0_67 = arith.constant 0 : index
      %89 = vector.load %arg10[%c1_66, %c0_67] : memref<2x8xf32, #tpu.memory_space<vmem>>, vector<1x8xf32>
      %cst_68 = arith.constant 7.812500e-03 : f32
      %90 = vector.broadcast %cst_68 : f32 to vector<1x8xf32>
      %91 = arith.mulf %89, %90 : vector<1x8xf32>
      %92 = arith.mulf %88, %88 : vector<1x8xf32>
      %93 = arith.subf %91, %92 : vector<1x8xf32>
      %c0_69 = arith.constant 0 : index
      %c0_70 = arith.constant 0 : index
      %94 = vector.load %arg5[%c0_69, %c0_70] : memref<1x8xf32, #tpu.memory_space<vmem>>, vector<1x8xf32>
      %cst_71 = arith.constant 9.99999974E-6 : f32
      %95 = vector.broadcast %cst_71 : f32 to vector<1x8xf32>
      %96 = arith.addf %93, %95 : vector<1x8xf32>
      %97 = math.rsqrt %96 : vector<1x8xf32>
      %98 = arith.mulf %94, %97 : vector<1x8xf32>
      %c0_72 = arith.constant 0 : index
      %c0_73 = arith.constant 0 : index
      %99 = vector.load %arg8[%c0_72, %c0_73] : memref<2x8xf32, #tpu.memory_space<vmem>>, vector<1x8xf32>
      tpu.vector_store %arg8[%c0_72, %c0_73], %98 {strides = array<i32>} : memref<2x8xf32, #tpu.memory_space<vmem>>, vector<1x8xf32>,
      %c0_74 = arith.constant 0 : index
      %c0_75 = arith.constant 0 : index
      %100 = vector.load %arg6[%c0_74, %c0_75] : memref<1x8xf32, #tpu.memory_space<vmem>>, vector<1x8xf32>
      %101 = arith.mulf %88, %98 : vector<1x8xf32>
      %102 = arith.subf %100, %101 : vector<1x8xf32>
      %c1_76 = arith.constant 1 : index
      %c0_77 = arith.constant 0 : index
      %103 = vector.load %arg8[%c1_76, %c0_77] : memref<2x8xf32, #tpu.memory_space<vmem>>, vector<1x8xf32>
      tpu.vector_store %arg8[%c1_76, %c0_77], %102 {strides = array<i32>} : memref<2x8xf32, #tpu.memory_space<vmem>>, vector<1x8xf32>,
    } else {
    }
    return
  }
  func.func @transform_0(%arg0: i32) -> (i32, i32, i32, i32, i32) {
    %c0_i32 = arith.constant 0 : i32
    %c0_i32_0 = arith.constant 0 : i32
    %c0_i32_1 = arith.constant 0 : i32
    %c0_i32_2 = arith.constant 0 : i32
    %c0_i32_3 = arith.constant 0 : i32
    return %arg0, %c0_i32, %c0_i32_0, %c0_i32_1, %c0_i32_2 : i32, i32, i32, i32, i32
  }
  func.func @transform_1(%arg0: i32) -> (i32, i32) {
    %c0_i32 = arith.constant 0 : i32
    %c0_i32_0 = arith.constant 0 : i32
    %c0_i32_1 = arith.constant 0 : i32
    return %c0_i32, %c0_i32_0 : i32, i32
  }
  func.func @transform_2(%arg0: i32) -> (i32, i32, i32) {
    %c0_i32 = arith.constant 0 : i32
    %c0_i32_0 = arith.constant 0 : i32
    %c0_i32_1 = arith.constant 0 : i32
    %c0_i32_2 = arith.constant 0 : i32
    return %c0_i32, %c0_i32_0, %c0_i32_1 : i32, i32, i32
  }
  func.func @transform_3(%arg0: i32) -> (i32, i32, i32) {
    %c0_i32 = arith.constant 0 : i32
    %c0_i32_0 = arith.constant 0 : i32
    %c0_i32_1 = arith.constant 0 : i32
    return %arg0, %c0_i32, %c0_i32_0 : i32, i32, i32
  }
  func.func @transform_4(%arg0: i32) -> (i32, i32) {
    %c0_i32 = arith.constant 0 : i32
    %c0_i32_0 = arith.constant 0 : i32
    %c0_i32_1 = arith.constant 0 : i32
    return %c0_i32, %c0_i32_0 : i32, i32
  }
  func.func @transform_5(%arg0: i32) -> (i32, i32) {
    %c0_i32 = arith.constant 0 : i32
    %c0_i32_0 = arith.constant 0 : i32
    %c0_i32_1 = arith.constant 0 : i32
    return %c0_i32, %c0_i32_0 : i32, i32
  }
  func.func @transform_6(%arg0: i32) -> (i32, i32, i32) {
    %c0_i32 = arith.constant 0 : i32
    %c0_i32_0 = arith.constant 0 : i32
    %c0_i32_1 = arith.constant 0 : i32
    return %arg0, %c0_i32, %c0_i32_0 : i32, i32, i32
  }
  func.func @transform_7(%arg0: i32) -> (i32, i32) {
    %c0_i32 = arith.constant 0 : i32
    %c0_i32_0 = arith.constant 0 : i32
    %c0_i32_1 = arith.constant 0 : i32
    return %c0_i32, %c0_i32_0 : i32, i32
  }
}

module attributes {stable_mosaic.version = 11 : i64} {
  func.func @_conv_block_kernel(%arg0: i32, %arg1: memref<1x8x2x8x8xf32, #tpu.memory_space<vmem>>, %arg2: memref<2x4xf32, #tpu.memory_space<vmem>>, %arg3: memref<3x12x8xbf16, #tpu.memory_space<vmem>>, %arg4: memref<4x8xbf16, #tpu.memory_space<vmem>>, %arg5: memref<1x8xf32, #tpu.memory_space<vmem>>, %arg6: memref<1x8xf32, #tpu.memory_space<vmem>>, %arg7: memref<1x64x8xbf16, #tpu.memory_space<vmem>>, %arg8: memref<1x64x8xbf16, #tpu.memory_space<vmem>>, %arg9: memref<2x8xf32, #tpu.memory_space<vmem>>, %arg10: memref<2x9x8x12xf32, #tpu.memory_space<vmem>>, %arg11: memref<2x8xf32, #tpu.memory_space<vmem>>) attributes {dimension_semantics = [#tpu.dimension_semantics<arbitrary>], iteration_bounds = array<i64: 2>, scalar_prefetch = 0 : i64, scratch_operands = 2 : i64, tpu.core_type = #tpu.core_type<tc>, window_params = [{transform_indices = @transform_0, window_bounds = array<i64: 1, 8, 2, 8, 8>}, {pipeline_mode = #tpu.pipeline_mode<synchronous>, transform_indices = @transform_1, window_bounds = array<i64: 2, 4>}, {pipeline_mode = #tpu.pipeline_mode<synchronous>, transform_indices = @transform_2, window_bounds = array<i64: 3, 12, 8>}, {pipeline_mode = #tpu.pipeline_mode<synchronous>, transform_indices = @transform_3, window_bounds = array<i64: 4, 8>}, {pipeline_mode = #tpu.pipeline_mode<synchronous>, transform_indices = @transform_4, window_bounds = array<i64: 1, 8>}, {pipeline_mode = #tpu.pipeline_mode<synchronous>, transform_indices = @transform_5, window_bounds = array<i64: 1, 8>}, {transform_indices = @transform_6, window_bounds = array<i64: 1, 64, 8>}, {transform_indices = @transform_7, window_bounds = array<i64: 1, 64, 8>}, {pipeline_mode = #tpu.pipeline_mode<synchronous>, transform_indices = @transform_8, window_bounds = array<i64: 2, 8>}]} {
    %c0_i32 = arith.constant 0 : i32
    %0 = arith.cmpi eq, %arg0, %c0_i32 : i32
    %1 = arith.extui %0 : i1 to i32
    %c0_i32_0 = arith.constant 0 : i32
    %2 = arith.cmpi ne, %1, %c0_i32_0 : i32
    scf.if %2 {
      %cst_101 = arith.constant 0.000000e+00 : f32
      %127 = vector.broadcast %cst_101 : f32 to vector<2x8xf32>
      %c0_102 = arith.constant 0 : index
      %c0_103 = arith.constant 0 : index
      %128 = vector.load %arg11[%c0_102, %c0_103] : memref<2x8xf32, #tpu.memory_space<vmem>>, vector<2x8xf32>
      tpu.vector_store %arg11[%c0_102, %c0_103], %127 {strides = array<i32>} : memref<2x8xf32, #tpu.memory_space<vmem>>, vector<2x8xf32>,
    } else {
    }
    %cst = arith.constant 0.000000e+00 : f32
    %3 = vector.broadcast %cst : f32 to vector<2x9x8x12xf32>
    %c0 = arith.constant 0 : index
    %c0_1 = arith.constant 0 : index
    %c0_2 = arith.constant 0 : index
    %c0_3 = arith.constant 0 : index
    %4 = vector.load %arg10[%c0, %c0_1, %c0_2, %c0_3] : memref<2x9x8x12xf32, #tpu.memory_space<vmem>>, vector<2x9x8x12xf32>
    tpu.vector_store %arg10[%c0, %c0_1, %c0_2, %c0_3], %3 {strides = array<i32>} : memref<2x9x8x12xf32, #tpu.memory_space<vmem>>, vector<2x9x8x12xf32>,
    %c0_4 = arith.constant 0 : index
    %c0_5 = arith.constant 0 : index
    %5 = vector.load %arg2[%c0_4, %c0_5] : memref<2x4xf32, #tpu.memory_space<vmem>>, vector<1x4xf32>
    %6 = vector.shape_cast %5 : vector<1x4xf32> to vector<1x1x4xf32>
    %c1 = arith.constant 1 : index
    %c0_6 = arith.constant 0 : index
    %7 = vector.load %arg2[%c1, %c0_6] : memref<2x4xf32, #tpu.memory_space<vmem>>, vector<1x4xf32>
    %8 = vector.shape_cast %7 : vector<1x4xf32> to vector<1x1x4xf32>
    %c0_7 = arith.constant 0 : index
    %c0_8 = arith.constant 0 : index
    %c0_9 = arith.constant 0 : index
    %c0_10 = arith.constant 0 : index
    %c0_11 = arith.constant 0 : index
    %9 = vector.load %arg1[%c0_7, %c0_8, %c0_9, %c0_10, %c0_11] : memref<1x8x2x8x8xf32, #tpu.memory_space<vmem>>, vector<1x8x1x8x4xf32>
    %10 = vector.shape_cast %9 : vector<1x8x1x8x4xf32> to vector<8x8x4xf32>
    %11 = vector.broadcast %6 : vector<1x1x4xf32> to vector<8x8x4xf32>
    %12 = arith.mulf %10, %11 : vector<8x8x4xf32>
    %13 = vector.broadcast %8 : vector<1x1x4xf32> to vector<8x8x4xf32>
    %14 = arith.addf %12, %13 : vector<8x8x4xf32>
    %cst_12 = arith.constant 0.000000e+00 : f32
    %15 = vector.broadcast %cst_12 : f32 to vector<8x8x4xf32>
    %16 = arith.maximumf %14, %15 : vector<8x8x4xf32>
    %c1_13 = arith.constant 1 : index
    %c0_14 = arith.constant 0 : index
    %c0_15 = arith.constant 0 : index
    %c4 = arith.constant 4 : index
    %17 = vector.load %arg10[%c1_13, %c0_14, %c0_15, %c4] : memref<2x9x8x12xf32, #tpu.memory_space<vmem>>, vector<1x8x8x4xf32>
    %18 = vector.shape_cast %17 : vector<1x8x8x4xf32> to vector<8x8x4xf32>
    %19 = vector.shape_cast %16 : vector<8x8x4xf32> to vector<1x8x8x4xf32>
    tpu.vector_store %arg10[%c1_13, %c0_14, %c0_15, %c4], %19 {strides = array<i32>} : memref<2x9x8x12xf32, #tpu.memory_space<vmem>>, vector<1x8x8x4xf32>,
    %c0_16 = arith.constant 0 : index
    %c0_17 = arith.constant 0 : index
    %c0_18 = arith.constant 0 : index
    %c0_19 = arith.constant 0 : index
    %c4_20 = arith.constant 4 : index
    %20 = vector.load %arg1[%c0_16, %c0_17, %c0_18, %c0_19, %c4_20] : memref<1x8x2x8x8xf32, #tpu.memory_space<vmem>>, vector<1x8x1x8x4xf32>
    %21 = vector.shape_cast %20 : vector<1x8x1x8x4xf32> to vector<8x8x4xf32>
    %22 = vector.broadcast %6 : vector<1x1x4xf32> to vector<8x8x4xf32>
    %23 = arith.mulf %21, %22 : vector<8x8x4xf32>
    %24 = vector.broadcast %8 : vector<1x1x4xf32> to vector<8x8x4xf32>
    %25 = arith.addf %23, %24 : vector<8x8x4xf32>
    %cst_21 = arith.constant 0.000000e+00 : f32
    %26 = vector.broadcast %cst_21 : f32 to vector<8x8x4xf32>
    %27 = arith.maximumf %25, %26 : vector<8x8x4xf32>
    %28 = vector.extract_strided_slice %27 {offsets = [0, 0, 0], sizes = [8, 7, 4], strides = [1, 1, 1]} : vector<8x8x4xf32> to vector<8x7x4xf32>
    %c1_22 = arith.constant 1 : index
    %c0_23 = arith.constant 0 : index
    %c1_24 = arith.constant 1 : index
    %c0_25 = arith.constant 0 : index
    %29 = vector.load %arg10[%c1_22, %c0_23, %c1_24, %c0_25] : memref<2x9x8x12xf32, #tpu.memory_space<vmem>>, vector<1x8x7x4xf32>
    %30 = vector.shape_cast %29 : vector<1x8x7x4xf32> to vector<8x7x4xf32>
    %31 = vector.shape_cast %28 : vector<8x7x4xf32> to vector<1x8x7x4xf32>
    tpu.vector_store %arg10[%c1_22, %c0_23, %c1_24, %c0_25], %31 {strides = array<i32>} : memref<2x9x8x12xf32, #tpu.memory_space<vmem>>, vector<1x8x7x4xf32>,
    %c1_26 = arith.constant 1 : index
    %c0_27 = arith.constant 0 : index
    %c0_28 = arith.constant 0 : index
    %c8 = arith.constant 8 : index
    %32 = vector.load %arg10[%c1_26, %c0_27, %c0_28, %c8] : memref<2x9x8x12xf32, #tpu.memory_space<vmem>>, vector<1x8x8x4xf32>
    %33 = vector.shape_cast %32 : vector<1x8x8x4xf32> to vector<8x8x4xf32>
    %34 = vector.shape_cast %27 : vector<8x8x4xf32> to vector<1x8x8x4xf32>
    tpu.vector_store %arg10[%c1_26, %c0_27, %c0_28, %c8], %34 {strides = array<i32>} : memref<2x9x8x12xf32, #tpu.memory_space<vmem>>, vector<1x8x8x4xf32>,
    %c0_29 = arith.constant 0 : index
    %c0_30 = arith.constant 0 : index
    %c1_31 = arith.constant 1 : index
    %c0_32 = arith.constant 0 : index
    %c0_33 = arith.constant 0 : index
    %35 = vector.load %arg1[%c0_29, %c0_30, %c1_31, %c0_32, %c0_33] : memref<1x8x2x8x8xf32, #tpu.memory_space<vmem>>, vector<1x8x1x8x4xf32>
    %36 = vector.shape_cast %35 : vector<1x8x1x8x4xf32> to vector<8x8x4xf32>
    %37 = vector.broadcast %6 : vector<1x1x4xf32> to vector<8x8x4xf32>
    %38 = arith.mulf %36, %37 : vector<8x8x4xf32>
    %39 = vector.broadcast %8 : vector<1x1x4xf32> to vector<8x8x4xf32>
    %40 = arith.addf %38, %39 : vector<8x8x4xf32>
    %cst_34 = arith.constant 0.000000e+00 : f32
    %41 = vector.broadcast %cst_34 : f32 to vector<8x8x4xf32>
    %42 = arith.maximumf %40, %41 : vector<8x8x4xf32>
    %c0_35 = arith.constant 0 : index
    %c1_36 = arith.constant 1 : index
    %c0_37 = arith.constant 0 : index
    %c4_38 = arith.constant 4 : index
    %43 = vector.load %arg10[%c0_35, %c1_36, %c0_37, %c4_38] : memref<2x9x8x12xf32, #tpu.memory_space<vmem>>, vector<1x8x8x4xf32>
    %44 = vector.shape_cast %43 : vector<1x8x8x4xf32> to vector<8x8x4xf32>
    %45 = vector.shape_cast %42 : vector<8x8x4xf32> to vector<1x8x8x4xf32>
    tpu.vector_store %arg10[%c0_35, %c1_36, %c0_37, %c4_38], %45 {strides = array<i32>} : memref<2x9x8x12xf32, #tpu.memory_space<vmem>>, vector<1x8x8x4xf32>,
    %c0_39 = arith.constant 0 : index
    %c0_40 = arith.constant 0 : index
    %c1_41 = arith.constant 1 : index
    %c0_42 = arith.constant 0 : index
    %c4_43 = arith.constant 4 : index
    %46 = vector.load %arg1[%c0_39, %c0_40, %c1_41, %c0_42, %c4_43] : memref<1x8x2x8x8xf32, #tpu.memory_space<vmem>>, vector<1x8x1x8x4xf32>
    %47 = vector.shape_cast %46 : vector<1x8x1x8x4xf32> to vector<8x8x4xf32>
    %48 = vector.broadcast %6 : vector<1x1x4xf32> to vector<8x8x4xf32>
    %49 = arith.mulf %47, %48 : vector<8x8x4xf32>
    %50 = vector.broadcast %8 : vector<1x1x4xf32> to vector<8x8x4xf32>
    %51 = arith.addf %49, %50 : vector<8x8x4xf32>
    %cst_44 = arith.constant 0.000000e+00 : f32
    %52 = vector.broadcast %cst_44 : f32 to vector<8x8x4xf32>
    %53 = arith.maximumf %51, %52 : vector<8x8x4xf32>
    %54 = vector.extract_strided_slice %53 {offsets = [0, 0, 0], sizes = [8, 7, 4], strides = [1, 1, 1]} : vector<8x8x4xf32> to vector<8x7x4xf32>
    %c0_45 = arith.constant 0 : index
    %c1_46 = arith.constant 1 : index
    %c1_47 = arith.constant 1 : index
    %c0_48 = arith.constant 0 : index
    %55 = vector.load %arg10[%c0_45, %c1_46, %c1_47, %c0_48] : memref<2x9x8x12xf32, #tpu.memory_space<vmem>>, vector<1x8x7x4xf32>
    %56 = vector.shape_cast %55 : vector<1x8x7x4xf32> to vector<8x7x4xf32>
    %57 = vector.shape_cast %54 : vector<8x7x4xf32> to vector<1x8x7x4xf32>
    tpu.vector_store %arg10[%c0_45, %c1_46, %c1_47, %c0_48], %57 {strides = array<i32>} : memref<2x9x8x12xf32, #tpu.memory_space<vmem>>, vector<1x8x7x4xf32>,
    %c0_49 = arith.constant 0 : index
    %c1_50 = arith.constant 1 : index
    %c0_51 = arith.constant 0 : index
    %c8_52 = arith.constant 8 : index
    %58 = vector.load %arg10[%c0_49, %c1_50, %c0_51, %c8_52] : memref<2x9x8x12xf32, #tpu.memory_space<vmem>>, vector<1x8x8x4xf32>
    %59 = vector.shape_cast %58 : vector<1x8x8x4xf32> to vector<8x8x4xf32>
    %60 = vector.shape_cast %53 : vector<8x8x4xf32> to vector<1x8x8x4xf32>
    tpu.vector_store %arg10[%c0_49, %c1_50, %c0_51, %c8_52], %60 {strides = array<i32>} : memref<2x9x8x12xf32, #tpu.memory_space<vmem>>, vector<1x8x8x4xf32>,
    %c0_i32_53 = arith.constant 0 : i32
    %c8_i32 = arith.constant 8 : i32
    %61 = arith.muli %c0_i32_53, %c8_i32 : i32
    %c64_i32 = arith.constant 64 : i32
    %62 = arith.muli %c0_i32_53, %c64_i32 : i32
    %63 = tpu.assume_multiple %62, 64 : i32
    %cst_54 = arith.constant 0.000000e+00 : f32
    %64 = vector.broadcast %cst_54 : f32 to vector<64x8xf32>
    %c0_i32_55 = arith.constant 0 : i32
    %65 = arith.addi %61, %c0_i32_55 : i32
    %c0_56 = arith.constant 0 : index
    %66 = arith.index_cast %65 : i32 to index
    %c0_57 = arith.constant 0 : index
    %c0_58 = arith.constant 0 : index
    %67 = vector.load %arg10[%c0_56, %66, %c0_57, %c0_58] : memref<2x9x8x12xf32, #tpu.memory_space<vmem>>, vector<1x8x8x12xf32>
    %68 = vector.shape_cast %67 : vector<1x8x8x12xf32> to vector<8x8x12xf32>
    %69 = vector.shape_cast %68 : vector<8x8x12xf32> to vector<64x12xf32>
    %70 = arith.truncf %69 : vector<64x12xf32> to vector<64x12xbf16>
    %c0_59 = arith.constant 0 : index
    %c0_60 = arith.constant 0 : index
    %c0_61 = arith.constant 0 : index
    %71 = vector.load %arg3[%c0_59, %c0_60, %c0_61] : memref<3x12x8xbf16, #tpu.memory_space<vmem>>, vector<1x12x8xbf16>
    %72 = vector.shape_cast %71 : vector<1x12x8xbf16> to vector<12x8xbf16>
    %cst_62 = arith.constant dense<0.000000e+00> : vector<64x8xf32>
    %73 = tpu.matmul %70, %72, %cst_62 {dimension_numbers = #tpu.dot_dimension_numbers<[1], [0], [0], [1], [0, 0, 1, 1], [], []>} : vector<64x12xbf16>, vector<12x8xbf16>, vector<64x8xf32> -> vector<64x8xf32>
    %74 = arith.addf %64, %73 : vector<64x8xf32>
    %c0_i32_63 = arith.constant 0 : i32
    %75 = arith.addi %61, %c0_i32_63 : i32
    %c1_64 = arith.constant 1 : index
    %76 = arith.index_cast %75 : i32 to index
    %c0_65 = arith.constant 0 : index
    %c0_66 = arith.constant 0 : index
    %77 = vector.load %arg10[%c1_64, %76, %c0_65, %c0_66] : memref<2x9x8x12xf32, #tpu.memory_space<vmem>>, vector<1x8x8x12xf32>
    %78 = vector.shape_cast %77 : vector<1x8x8x12xf32> to vector<8x8x12xf32>
    %79 = vector.shape_cast %78 : vector<8x8x12xf32> to vector<64x12xf32>
    %80 = arith.truncf %79 : vector<64x12xf32> to vector<64x12xbf16>
    %c1_67 = arith.constant 1 : index
    %c0_68 = arith.constant 0 : index
    %c0_69 = arith.constant 0 : index
    %81 = vector.load %arg3[%c1_67, %c0_68, %c0_69] : memref<3x12x8xbf16, #tpu.memory_space<vmem>>, vector<1x12x8xbf16>
    %82 = vector.shape_cast %81 : vector<1x12x8xbf16> to vector<12x8xbf16>
    %cst_70 = arith.constant dense<0.000000e+00> : vector<64x8xf32>
    %83 = tpu.matmul %80, %82, %cst_70 {dimension_numbers = #tpu.dot_dimension_numbers<[1], [0], [0], [1], [0, 0, 1, 1], [], []>} : vector<64x12xbf16>, vector<12x8xbf16>, vector<64x8xf32> -> vector<64x8xf32>
    %84 = arith.addf %74, %83 : vector<64x8xf32>
    %c1_i32 = arith.constant 1 : i32
    %85 = arith.addi %61, %c1_i32 : i32
    %c0_71 = arith.constant 0 : index
    %86 = arith.index_cast %85 : i32 to index
    %c0_72 = arith.constant 0 : index
    %c0_73 = arith.constant 0 : index
    %87 = vector.load %arg10[%c0_71, %86, %c0_72, %c0_73] : memref<2x9x8x12xf32, #tpu.memory_space<vmem>>, vector<1x8x8x12xf32>
    %88 = vector.shape_cast %87 : vector<1x8x8x12xf32> to vector<8x8x12xf32>
    %89 = vector.shape_cast %88 : vector<8x8x12xf32> to vector<64x12xf32>
    %90 = arith.truncf %89 : vector<64x12xf32> to vector<64x12xbf16>
    %c2 = arith.constant 2 : index
    %c0_74 = arith.constant 0 : index
    %c0_75 = arith.constant 0 : index
    %91 = vector.load %arg3[%c2, %c0_74, %c0_75] : memref<3x12x8xbf16, #tpu.memory_space<vmem>>, vector<1x12x8xbf16>
    %92 = vector.shape_cast %91 : vector<1x12x8xbf16> to vector<12x8xbf16>
    %cst_76 = arith.constant dense<0.000000e+00> : vector<64x8xf32>
    %93 = tpu.matmul %90, %92, %cst_76 {dimension_numbers = #tpu.dot_dimension_numbers<[1], [0], [0], [1], [0, 0, 1, 1], [], []>} : vector<64x12xbf16>, vector<12x8xbf16>, vector<64x8xf32> -> vector<64x8xf32>
    %94 = arith.addf %84, %93 : vector<64x8xf32>
    %c0_77 = arith.constant 0 : index
    %c0_78 = arith.constant 0 : index
    %95 = vector.load %arg11[%c0_77, %c0_78] : memref<2x8xf32, #tpu.memory_space<vmem>>, vector<1x8xf32>
    %cst_79 = arith.constant dense<0.000000e+00> : vector<8xf32>
    %96 = vector.multi_reduction <add>, %94, %cst_79 [0] : vector<64x8xf32> to vector<8xf32>
    %97 = vector.shape_cast %96 : vector<8xf32> to vector<1x8xf32>
    %98 = arith.addf %95, %97 : vector<1x8xf32>
    %c0_80 = arith.constant 0 : index
    %c0_81 = arith.constant 0 : index
    %99 = vector.load %arg11[%c0_80, %c0_81] : memref<2x8xf32, #tpu.memory_space<vmem>>, vector<1x8xf32>
    tpu.vector_store %arg11[%c0_80, %c0_81], %98 {strides = array<i32>} : memref<2x8xf32, #tpu.memory_space<vmem>>, vector<1x8xf32>,
    %c1_82 = arith.constant 1 : index
    %c0_83 = arith.constant 0 : index
    %100 = vector.load %arg11[%c1_82, %c0_83] : memref<2x8xf32, #tpu.memory_space<vmem>>, vector<1x8xf32>
    %101 = arith.mulf %94, %94 : vector<64x8xf32>
    %cst_84 = arith.constant dense<0.000000e+00> : vector<8xf32>
    %102 = vector.multi_reduction <add>, %101, %cst_84 [0] : vector<64x8xf32> to vector<8xf32>
    %103 = vector.shape_cast %102 : vector<8xf32> to vector<1x8xf32>
    %104 = arith.addf %100, %103 : vector<1x8xf32>
    %c1_85 = arith.constant 1 : index
    %c0_86 = arith.constant 0 : index
    %105 = vector.load %arg11[%c1_85, %c0_86] : memref<2x8xf32, #tpu.memory_space<vmem>>, vector<1x8xf32>
    tpu.vector_store %arg11[%c1_85, %c0_86], %104 {strides = array<i32>} : memref<2x8xf32, #tpu.memory_space<vmem>>, vector<1x8xf32>,
    %106 = arith.truncf %94 : vector<64x8xf32> to vector<64x8xbf16>
    %c0_87 = arith.constant 0 : index
    %107 = arith.index_cast %63 : i32 to index
    %c0_88 = arith.constant 0 : index
    %108 = vector.load %arg7[%c0_87, %107, %c0_88] : memref<1x64x8xbf16, #tpu.memory_space<vmem>>, vector<1x64x8xbf16>
    %109 = vector.shape_cast %108 : vector<1x64x8xbf16> to vector<64x8xbf16>
    %110 = vector.shape_cast %106 : vector<64x8xbf16> to vector<1x64x8xbf16>
    tpu.vector_store %arg7[%c0_87, %107, %c0_88], %110 {strides = array<i32>} : memref<1x64x8xbf16, #tpu.memory_space<vmem>>, vector<1x64x8xbf16>,
    %c0_i32_89 = arith.constant 0 : i32
    %111 = arith.addi %61, %c0_i32_89 : i32
    %c1_90 = arith.constant 1 : index
    %112 = arith.index_cast %111 : i32 to index
    %c0_91 = arith.constant 0 : index
    %c4_92 = arith.constant 4 : index
    %113 = vector.load %arg10[%c1_90, %112, %c0_91, %c4_92] : memref<2x9x8x12xf32, #tpu.memory_space<vmem>>, vector<1x8x8x4xf32>
    %114 = vector.shape_cast %113 : vector<1x8x8x4xf32> to vector<8x8x4xf32>
    %115 = vector.shape_cast %114 : vector<8x8x4xf32> to vector<64x4xf32>
    %116 = arith.truncf %115 : vector<64x4xf32> to vector<64x4xbf16>
    %c0_93 = arith.constant 0 : index
    %c0_94 = arith.constant 0 : index
    %117 = vector.load %arg4[%c0_93, %c0_94] : memref<4x8xbf16, #tpu.memory_space<vmem>>, vector<4x8xbf16>
    %cst_95 = arith.constant dense<0.000000e+00> : vector<64x8xf32>
    %118 = tpu.matmul %116, %117, %cst_95 {dimension_numbers = #tpu.dot_dimension_numbers<[1], [0], [0], [1], [0, 0, 1, 1], [], []>} : vector<64x4xbf16>, vector<4x8xbf16>, vector<64x8xf32> -> vector<64x8xf32>
    %119 = arith.truncf %118 : vector<64x8xf32> to vector<64x8xbf16>
    %c0_96 = arith.constant 0 : index
    %120 = arith.index_cast %63 : i32 to index
    %c0_97 = arith.constant 0 : index
    %121 = vector.load %arg8[%c0_96, %120, %c0_97] : memref<1x64x8xbf16, #tpu.memory_space<vmem>>, vector<1x64x8xbf16>
    %122 = vector.shape_cast %121 : vector<1x64x8xbf16> to vector<64x8xbf16>
    %123 = vector.shape_cast %119 : vector<64x8xbf16> to vector<1x64x8xbf16>
    tpu.vector_store %arg8[%c0_96, %120, %c0_97], %123 {strides = array<i32>} : memref<1x64x8xbf16, #tpu.memory_space<vmem>>, vector<1x64x8xbf16>,
    %c1_i32_98 = arith.constant 1 : i32
    %c1_i32_99 = arith.constant 1 : i32
    %124 = arith.cmpi eq, %arg0, %c1_i32_99 : i32
    %125 = arith.extui %124 : i1 to i32
    %c0_i32_100 = arith.constant 0 : i32
    %126 = arith.cmpi ne, %125, %c0_i32_100 : i32
    scf.if %126 {
      %c0_101 = arith.constant 0 : index
      %c0_102 = arith.constant 0 : index
      %127 = vector.load %arg11[%c0_101, %c0_102] : memref<2x8xf32, #tpu.memory_space<vmem>>, vector<1x8xf32>
      %cst_103 = arith.constant 7.812500e-03 : f32
      %128 = vector.broadcast %cst_103 : f32 to vector<1x8xf32>
      %129 = arith.mulf %127, %128 : vector<1x8xf32>
      %c1_104 = arith.constant 1 : index
      %c0_105 = arith.constant 0 : index
      %130 = vector.load %arg11[%c1_104, %c0_105] : memref<2x8xf32, #tpu.memory_space<vmem>>, vector<1x8xf32>
      %cst_106 = arith.constant 7.812500e-03 : f32
      %131 = vector.broadcast %cst_106 : f32 to vector<1x8xf32>
      %132 = arith.mulf %130, %131 : vector<1x8xf32>
      %133 = arith.mulf %129, %129 : vector<1x8xf32>
      %134 = arith.subf %132, %133 : vector<1x8xf32>
      %c0_107 = arith.constant 0 : index
      %c0_108 = arith.constant 0 : index
      %135 = vector.load %arg5[%c0_107, %c0_108] : memref<1x8xf32, #tpu.memory_space<vmem>>, vector<1x8xf32>
      %cst_109 = arith.constant 9.99999974E-6 : f32
      %136 = vector.broadcast %cst_109 : f32 to vector<1x8xf32>
      %137 = arith.addf %134, %136 : vector<1x8xf32>
      %138 = math.rsqrt %137 : vector<1x8xf32>
      %139 = arith.mulf %135, %138 : vector<1x8xf32>
      %c0_110 = arith.constant 0 : index
      %c0_111 = arith.constant 0 : index
      %140 = vector.load %arg9[%c0_110, %c0_111] : memref<2x8xf32, #tpu.memory_space<vmem>>, vector<1x8xf32>
      tpu.vector_store %arg9[%c0_110, %c0_111], %139 {strides = array<i32>} : memref<2x8xf32, #tpu.memory_space<vmem>>, vector<1x8xf32>,
      %c0_112 = arith.constant 0 : index
      %c0_113 = arith.constant 0 : index
      %141 = vector.load %arg6[%c0_112, %c0_113] : memref<1x8xf32, #tpu.memory_space<vmem>>, vector<1x8xf32>
      %142 = arith.mulf %129, %139 : vector<1x8xf32>
      %143 = arith.subf %141, %142 : vector<1x8xf32>
      %c1_114 = arith.constant 1 : index
      %c0_115 = arith.constant 0 : index
      %144 = vector.load %arg9[%c1_114, %c0_115] : memref<2x8xf32, #tpu.memory_space<vmem>>, vector<1x8xf32>
      tpu.vector_store %arg9[%c1_114, %c0_115], %143 {strides = array<i32>} : memref<2x8xf32, #tpu.memory_space<vmem>>, vector<1x8xf32>,
    } else {
    }
    return
  }
  func.func @transform_0(%arg0: i32) -> (i32, i32, i32, i32, i32) {
    %c0_i32 = arith.constant 0 : i32
    %c0_i32_0 = arith.constant 0 : i32
    %c0_i32_1 = arith.constant 0 : i32
    %c0_i32_2 = arith.constant 0 : i32
    %c0_i32_3 = arith.constant 0 : i32
    return %arg0, %c0_i32, %c0_i32_0, %c0_i32_1, %c0_i32_2 : i32, i32, i32, i32, i32
  }
  func.func @transform_1(%arg0: i32) -> (i32, i32) {
    %c0_i32 = arith.constant 0 : i32
    %c0_i32_0 = arith.constant 0 : i32
    %c0_i32_1 = arith.constant 0 : i32
    return %c0_i32, %c0_i32_0 : i32, i32
  }
  func.func @transform_2(%arg0: i32) -> (i32, i32, i32) {
    %c0_i32 = arith.constant 0 : i32
    %c0_i32_0 = arith.constant 0 : i32
    %c0_i32_1 = arith.constant 0 : i32
    %c0_i32_2 = arith.constant 0 : i32
    return %c0_i32, %c0_i32_0, %c0_i32_1 : i32, i32, i32
  }
  func.func @transform_3(%arg0: i32) -> (i32, i32) {
    %c0_i32 = arith.constant 0 : i32
    %c0_i32_0 = arith.constant 0 : i32
    %c0_i32_1 = arith.constant 0 : i32
    return %c0_i32, %c0_i32_0 : i32, i32
  }
  func.func @transform_4(%arg0: i32) -> (i32, i32) {
    %c0_i32 = arith.constant 0 : i32
    %c0_i32_0 = arith.constant 0 : i32
    %c0_i32_1 = arith.constant 0 : i32
    return %c0_i32, %c0_i32_0 : i32, i32
  }
  func.func @transform_5(%arg0: i32) -> (i32, i32) {
    %c0_i32 = arith.constant 0 : i32
    %c0_i32_0 = arith.constant 0 : i32
    %c0_i32_1 = arith.constant 0 : i32
    return %c0_i32, %c0_i32_0 : i32, i32
  }
  func.func @transform_6(%arg0: i32) -> (i32, i32, i32) {
    %c0_i32 = arith.constant 0 : i32
    %c0_i32_0 = arith.constant 0 : i32
    %c0_i32_1 = arith.constant 0 : i32
    return %arg0, %c0_i32, %c0_i32_0 : i32, i32, i32
  }
  func.func @transform_7(%arg0: i32) -> (i32, i32, i32) {
    %c0_i32 = arith.constant 0 : i32
    %c0_i32_0 = arith.constant 0 : i32
    %c0_i32_1 = arith.constant 0 : i32
    return %arg0, %c0_i32, %c0_i32_0 : i32, i32, i32
  }
  func.func @transform_8(%arg0: i32) -> (i32, i32) {
    %c0_i32 = arith.constant 0 : i32
    %c0_i32_0 = arith.constant 0 : i32
    %c0_i32_1 = arith.constant 0 : i32
    return %c0_i32, %c0_i32_0 : i32, i32
  }
}

module attributes {stable_mosaic.version = 11 : i64} {
  func.func @_conv_block_kernel(%arg0: i32, %arg1: memref<1x8x1x8x8xf32, #tpu.memory_space<vmem>>, %arg2: memref<2x8xf32, #tpu.memory_space<vmem>>, %arg3: memref<3x24x8xbf16, #tpu.memory_space<vmem>>, %arg4: memref<1x8xf32, #tpu.memory_space<vmem>>, %arg5: memref<1x8xf32, #tpu.memory_space<vmem>>, %arg6: memref<1x64x8xbf16, #tpu.memory_space<vmem>>, %arg7: memref<2x8xf32, #tpu.memory_space<vmem>>, %arg8: memref<1x10x8x24xf32, #tpu.memory_space<vmem>>, %arg9: memref<2x8xf32, #tpu.memory_space<vmem>>) attributes {dimension_semantics = [#tpu.dimension_semantics<arbitrary>], iteration_bounds = array<i64: 2>, scalar_prefetch = 0 : i64, scratch_operands = 2 : i64, tpu.core_type = #tpu.core_type<tc>, window_params = [{transform_indices = @transform_0, window_bounds = array<i64: 1, 8, 1, 8, 8>}, {pipeline_mode = #tpu.pipeline_mode<synchronous>, transform_indices = @transform_1, window_bounds = array<i64: 2, 8>}, {pipeline_mode = #tpu.pipeline_mode<synchronous>, transform_indices = @transform_2, window_bounds = array<i64: 3, 24, 8>}, {pipeline_mode = #tpu.pipeline_mode<synchronous>, transform_indices = @transform_3, window_bounds = array<i64: 1, 8>}, {pipeline_mode = #tpu.pipeline_mode<synchronous>, transform_indices = @transform_4, window_bounds = array<i64: 1, 8>}, {transform_indices = @transform_5, window_bounds = array<i64: 1, 64, 8>}, {pipeline_mode = #tpu.pipeline_mode<synchronous>, transform_indices = @transform_6, window_bounds = array<i64: 2, 8>}]} {
    %c0_i32 = arith.constant 0 : i32
    %0 = arith.cmpi eq, %arg0, %c0_i32 : i32
    %1 = arith.extui %0 : i1 to i32
    %c0_i32_0 = arith.constant 0 : i32
    %2 = arith.cmpi ne, %1, %c0_i32_0 : i32
    scf.if %2 {
      %cst_61 = arith.constant 0.000000e+00 : f32
      %81 = vector.broadcast %cst_61 : f32 to vector<2x8xf32>
      %c0_62 = arith.constant 0 : index
      %c0_63 = arith.constant 0 : index
      %82 = vector.load %arg9[%c0_62, %c0_63] : memref<2x8xf32, #tpu.memory_space<vmem>>, vector<2x8xf32>
      tpu.vector_store %arg9[%c0_62, %c0_63], %81 {strides = array<i32>} : memref<2x8xf32, #tpu.memory_space<vmem>>, vector<2x8xf32>,
    } else {
    }
    %cst = arith.constant 0.000000e+00 : f32
    %3 = vector.broadcast %cst : f32 to vector<1x10x8x24xf32>
    %c0 = arith.constant 0 : index
    %c0_1 = arith.constant 0 : index
    %c0_2 = arith.constant 0 : index
    %c0_3 = arith.constant 0 : index
    %4 = vector.load %arg8[%c0, %c0_1, %c0_2, %c0_3] : memref<1x10x8x24xf32, #tpu.memory_space<vmem>>, vector<1x10x8x24xf32>
    tpu.vector_store %arg8[%c0, %c0_1, %c0_2, %c0_3], %3 {strides = array<i32>} : memref<1x10x8x24xf32, #tpu.memory_space<vmem>>, vector<1x10x8x24xf32>,
    %c0_4 = arith.constant 0 : index
    %c0_5 = arith.constant 0 : index
    %5 = vector.load %arg2[%c0_4, %c0_5] : memref<2x8xf32, #tpu.memory_space<vmem>>, vector<1x8xf32>
    %6 = vector.shape_cast %5 : vector<1x8xf32> to vector<1x1x8xf32>
    %c1 = arith.constant 1 : index
    %c0_6 = arith.constant 0 : index
    %7 = vector.load %arg2[%c1, %c0_6] : memref<2x8xf32, #tpu.memory_space<vmem>>, vector<1x8xf32>
    %8 = vector.shape_cast %7 : vector<1x8xf32> to vector<1x1x8xf32>
    %c0_7 = arith.constant 0 : index
    %c0_8 = arith.constant 0 : index
    %c0_9 = arith.constant 0 : index
    %c0_10 = arith.constant 0 : index
    %c0_11 = arith.constant 0 : index
    %9 = vector.load %arg1[%c0_7, %c0_8, %c0_9, %c0_10, %c0_11] : memref<1x8x1x8x8xf32, #tpu.memory_space<vmem>>, vector<1x8x1x8x8xf32>
    %10 = vector.shape_cast %9 : vector<1x8x1x8x8xf32> to vector<8x8x8xf32>
    %11 = vector.broadcast %6 : vector<1x1x8xf32> to vector<8x8x8xf32>
    %12 = arith.mulf %10, %11 : vector<8x8x8xf32>
    %13 = vector.broadcast %8 : vector<1x1x8xf32> to vector<8x8x8xf32>
    %14 = arith.addf %12, %13 : vector<8x8x8xf32>
    %cst_12 = arith.constant 0.000000e+00 : f32
    %15 = vector.broadcast %cst_12 : f32 to vector<8x8x8xf32>
    %16 = arith.maximumf %14, %15 : vector<8x8x8xf32>
    %17 = vector.extract_strided_slice %16 {offsets = [0, 0, 0], sizes = [8, 7, 8], strides = [1, 1, 1]} : vector<8x8x8xf32> to vector<8x7x8xf32>
    %c0_13 = arith.constant 0 : index
    %c1_14 = arith.constant 1 : index
    %c1_15 = arith.constant 1 : index
    %c0_16 = arith.constant 0 : index
    %18 = vector.load %arg8[%c0_13, %c1_14, %c1_15, %c0_16] : memref<1x10x8x24xf32, #tpu.memory_space<vmem>>, vector<1x8x7x8xf32>
    %19 = vector.shape_cast %18 : vector<1x8x7x8xf32> to vector<8x7x8xf32>
    %20 = vector.shape_cast %17 : vector<8x7x8xf32> to vector<1x8x7x8xf32>
    tpu.vector_store %arg8[%c0_13, %c1_14, %c1_15, %c0_16], %20 {strides = array<i32>} : memref<1x10x8x24xf32, #tpu.memory_space<vmem>>, vector<1x8x7x8xf32>,
    %c0_17 = arith.constant 0 : index
    %c1_18 = arith.constant 1 : index
    %c0_19 = arith.constant 0 : index
    %c8 = arith.constant 8 : index
    %21 = vector.load %arg8[%c0_17, %c1_18, %c0_19, %c8] : memref<1x10x8x24xf32, #tpu.memory_space<vmem>>, vector<1x8x8x8xf32>
    %22 = vector.shape_cast %21 : vector<1x8x8x8xf32> to vector<8x8x8xf32>
    %23 = vector.shape_cast %16 : vector<8x8x8xf32> to vector<1x8x8x8xf32>
    tpu.vector_store %arg8[%c0_17, %c1_18, %c0_19, %c8], %23 {strides = array<i32>} : memref<1x10x8x24xf32, #tpu.memory_space<vmem>>, vector<1x8x8x8xf32>,
    %24 = vector.extract_strided_slice %16 {offsets = [0, 1, 0], sizes = [8, 7, 8], strides = [1, 1, 1]} : vector<8x8x8xf32> to vector<8x7x8xf32>
    %c0_20 = arith.constant 0 : index
    %c1_21 = arith.constant 1 : index
    %c0_22 = arith.constant 0 : index
    %c16 = arith.constant 16 : index
    %25 = vector.load %arg8[%c0_20, %c1_21, %c0_22, %c16] : memref<1x10x8x24xf32, #tpu.memory_space<vmem>>, vector<1x8x7x8xf32>
    %26 = vector.shape_cast %25 : vector<1x8x7x8xf32> to vector<8x7x8xf32>
    %27 = vector.shape_cast %24 : vector<8x7x8xf32> to vector<1x8x7x8xf32>
    tpu.vector_store %arg8[%c0_20, %c1_21, %c0_22, %c16], %27 {strides = array<i32>} : memref<1x10x8x24xf32, #tpu.memory_space<vmem>>, vector<1x8x7x8xf32>,
    %c0_i32_23 = arith.constant 0 : i32
    %c8_i32 = arith.constant 8 : i32
    %28 = arith.muli %c0_i32_23, %c8_i32 : i32
    %c64_i32 = arith.constant 64 : i32
    %29 = arith.muli %c0_i32_23, %c64_i32 : i32
    %30 = tpu.assume_multiple %29, 64 : i32
    %cst_24 = arith.constant 0.000000e+00 : f32
    %31 = vector.broadcast %cst_24 : f32 to vector<64x8xf32>
    %c0_i32_25 = arith.constant 0 : i32
    %32 = arith.addi %28, %c0_i32_25 : i32
    %c0_26 = arith.constant 0 : index
    %33 = arith.index_cast %32 : i32 to index
    %c0_27 = arith.constant 0 : index
    %c0_28 = arith.constant 0 : index
    %34 = vector.load %arg8[%c0_26, %33, %c0_27, %c0_28] : memref<1x10x8x24xf32, #tpu.memory_space<vmem>>, vector<1x8x8x24xf32>
    %35 = vector.shape_cast %34 : vector<1x8x8x24xf32> to vector<8x8x24xf32>
    %36 = vector.shape_cast %35 : vector<8x8x24xf32> to vector<64x24xf32>
    %37 = arith.truncf %36 : vector<64x24xf32> to vector<64x24xbf16>
    %c0_29 = arith.constant 0 : index
    %c0_30 = arith.constant 0 : index
    %c0_31 = arith.constant 0 : index
    %38 = vector.load %arg3[%c0_29, %c0_30, %c0_31] : memref<3x24x8xbf16, #tpu.memory_space<vmem>>, vector<1x24x8xbf16>
    %39 = vector.shape_cast %38 : vector<1x24x8xbf16> to vector<24x8xbf16>
    %cst_32 = arith.constant dense<0.000000e+00> : vector<64x8xf32>
    %40 = tpu.matmul %37, %39, %cst_32 {dimension_numbers = #tpu.dot_dimension_numbers<[1], [0], [0], [1], [0, 0, 1, 1], [], []>} : vector<64x24xbf16>, vector<24x8xbf16>, vector<64x8xf32> -> vector<64x8xf32>
    %41 = arith.addf %31, %40 : vector<64x8xf32>
    %c1_i32 = arith.constant 1 : i32
    %42 = arith.addi %28, %c1_i32 : i32
    %c0_33 = arith.constant 0 : index
    %43 = arith.index_cast %42 : i32 to index
    %c0_34 = arith.constant 0 : index
    %c0_35 = arith.constant 0 : index
    %44 = vector.load %arg8[%c0_33, %43, %c0_34, %c0_35] : memref<1x10x8x24xf32, #tpu.memory_space<vmem>>, vector<1x8x8x24xf32>
    %45 = vector.shape_cast %44 : vector<1x8x8x24xf32> to vector<8x8x24xf32>
    %46 = vector.shape_cast %45 : vector<8x8x24xf32> to vector<64x24xf32>
    %47 = arith.truncf %46 : vector<64x24xf32> to vector<64x24xbf16>
    %c1_36 = arith.constant 1 : index
    %c0_37 = arith.constant 0 : index
    %c0_38 = arith.constant 0 : index
    %48 = vector.load %arg3[%c1_36, %c0_37, %c0_38] : memref<3x24x8xbf16, #tpu.memory_space<vmem>>, vector<1x24x8xbf16>
    %49 = vector.shape_cast %48 : vector<1x24x8xbf16> to vector<24x8xbf16>
    %cst_39 = arith.constant dense<0.000000e+00> : vector<64x8xf32>
    %50 = tpu.matmul %47, %49, %cst_39 {dimension_numbers = #tpu.dot_dimension_numbers<[1], [0], [0], [1], [0, 0, 1, 1], [], []>} : vector<64x24xbf16>, vector<24x8xbf16>, vector<64x8xf32> -> vector<64x8xf32>
    %51 = arith.addf %41, %50 : vector<64x8xf32>
    %c2_i32 = arith.constant 2 : i32
    %52 = arith.addi %28, %c2_i32 : i32
    %c0_40 = arith.constant 0 : index
    %53 = arith.index_cast %52 : i32 to index
    %c0_41 = arith.constant 0 : index
    %c0_42 = arith.constant 0 : index
    %54 = vector.load %arg8[%c0_40, %53, %c0_41, %c0_42] : memref<1x10x8x24xf32, #tpu.memory_space<vmem>>, vector<1x8x8x24xf32>
    %55 = vector.shape_cast %54 : vector<1x8x8x24xf32> to vector<8x8x24xf32>
    %56 = vector.shape_cast %55 : vector<8x8x24xf32> to vector<64x24xf32>
    %57 = arith.truncf %56 : vector<64x24xf32> to vector<64x24xbf16>
    %c2 = arith.constant 2 : index
    %c0_43 = arith.constant 0 : index
    %c0_44 = arith.constant 0 : index
    %58 = vector.load %arg3[%c2, %c0_43, %c0_44] : memref<3x24x8xbf16, #tpu.memory_space<vmem>>, vector<1x24x8xbf16>
    %59 = vector.shape_cast %58 : vector<1x24x8xbf16> to vector<24x8xbf16>
    %cst_45 = arith.constant dense<0.000000e+00> : vector<64x8xf32>
    %60 = tpu.matmul %57, %59, %cst_45 {dimension_numbers = #tpu.dot_dimension_numbers<[1], [0], [0], [1], [0, 0, 1, 1], [], []>} : vector<64x24xbf16>, vector<24x8xbf16>, vector<64x8xf32> -> vector<64x8xf32>
    %61 = arith.addf %51, %60 : vector<64x8xf32>
    %c0_46 = arith.constant 0 : index
    %c0_47 = arith.constant 0 : index
    %62 = vector.load %arg9[%c0_46, %c0_47] : memref<2x8xf32, #tpu.memory_space<vmem>>, vector<1x8xf32>
    %cst_48 = arith.constant dense<0.000000e+00> : vector<8xf32>
    %63 = vector.multi_reduction <add>, %61, %cst_48 [0] : vector<64x8xf32> to vector<8xf32>
    %64 = vector.shape_cast %63 : vector<8xf32> to vector<1x8xf32>
    %65 = arith.addf %62, %64 : vector<1x8xf32>
    %c0_49 = arith.constant 0 : index
    %c0_50 = arith.constant 0 : index
    %66 = vector.load %arg9[%c0_49, %c0_50] : memref<2x8xf32, #tpu.memory_space<vmem>>, vector<1x8xf32>
    tpu.vector_store %arg9[%c0_49, %c0_50], %65 {strides = array<i32>} : memref<2x8xf32, #tpu.memory_space<vmem>>, vector<1x8xf32>,
    %c1_51 = arith.constant 1 : index
    %c0_52 = arith.constant 0 : index
    %67 = vector.load %arg9[%c1_51, %c0_52] : memref<2x8xf32, #tpu.memory_space<vmem>>, vector<1x8xf32>
    %68 = arith.mulf %61, %61 : vector<64x8xf32>
    %cst_53 = arith.constant dense<0.000000e+00> : vector<8xf32>
    %69 = vector.multi_reduction <add>, %68, %cst_53 [0] : vector<64x8xf32> to vector<8xf32>
    %70 = vector.shape_cast %69 : vector<8xf32> to vector<1x8xf32>
    %71 = arith.addf %67, %70 : vector<1x8xf32>
    %c1_54 = arith.constant 1 : index
    %c0_55 = arith.constant 0 : index
    %72 = vector.load %arg9[%c1_54, %c0_55] : memref<2x8xf32, #tpu.memory_space<vmem>>, vector<1x8xf32>
    tpu.vector_store %arg9[%c1_54, %c0_55], %71 {strides = array<i32>} : memref<2x8xf32, #tpu.memory_space<vmem>>, vector<1x8xf32>,
    %73 = arith.truncf %61 : vector<64x8xf32> to vector<64x8xbf16>
    %c0_56 = arith.constant 0 : index
    %74 = arith.index_cast %30 : i32 to index
    %c0_57 = arith.constant 0 : index
    %75 = vector.load %arg6[%c0_56, %74, %c0_57] : memref<1x64x8xbf16, #tpu.memory_space<vmem>>, vector<1x64x8xbf16>
    %76 = vector.shape_cast %75 : vector<1x64x8xbf16> to vector<64x8xbf16>
    %77 = vector.shape_cast %73 : vector<64x8xbf16> to vector<1x64x8xbf16>
    tpu.vector_store %arg6[%c0_56, %74, %c0_57], %77 {strides = array<i32>} : memref<1x64x8xbf16, #tpu.memory_space<vmem>>, vector<1x64x8xbf16>,
    %c1_i32_58 = arith.constant 1 : i32
    %c1_i32_59 = arith.constant 1 : i32
    %78 = arith.cmpi eq, %arg0, %c1_i32_59 : i32
    %79 = arith.extui %78 : i1 to i32
    %c0_i32_60 = arith.constant 0 : i32
    %80 = arith.cmpi ne, %79, %c0_i32_60 : i32
    scf.if %80 {
      %c0_61 = arith.constant 0 : index
      %c0_62 = arith.constant 0 : index
      %81 = vector.load %arg9[%c0_61, %c0_62] : memref<2x8xf32, #tpu.memory_space<vmem>>, vector<1x8xf32>
      %cst_63 = arith.constant 7.812500e-03 : f32
      %82 = vector.broadcast %cst_63 : f32 to vector<1x8xf32>
      %83 = arith.mulf %81, %82 : vector<1x8xf32>
      %c1_64 = arith.constant 1 : index
      %c0_65 = arith.constant 0 : index
      %84 = vector.load %arg9[%c1_64, %c0_65] : memref<2x8xf32, #tpu.memory_space<vmem>>, vector<1x8xf32>
      %cst_66 = arith.constant 7.812500e-03 : f32
      %85 = vector.broadcast %cst_66 : f32 to vector<1x8xf32>
      %86 = arith.mulf %84, %85 : vector<1x8xf32>
      %87 = arith.mulf %83, %83 : vector<1x8xf32>
      %88 = arith.subf %86, %87 : vector<1x8xf32>
      %c0_67 = arith.constant 0 : index
      %c0_68 = arith.constant 0 : index
      %89 = vector.load %arg4[%c0_67, %c0_68] : memref<1x8xf32, #tpu.memory_space<vmem>>, vector<1x8xf32>
      %cst_69 = arith.constant 9.99999974E-6 : f32
      %90 = vector.broadcast %cst_69 : f32 to vector<1x8xf32>
      %91 = arith.addf %88, %90 : vector<1x8xf32>
      %92 = math.rsqrt %91 : vector<1x8xf32>
      %93 = arith.mulf %89, %92 : vector<1x8xf32>
      %c0_70 = arith.constant 0 : index
      %c0_71 = arith.constant 0 : index
      %94 = vector.load %arg7[%c0_70, %c0_71] : memref<2x8xf32, #tpu.memory_space<vmem>>, vector<1x8xf32>
      tpu.vector_store %arg7[%c0_70, %c0_71], %93 {strides = array<i32>} : memref<2x8xf32, #tpu.memory_space<vmem>>, vector<1x8xf32>,
      %c0_72 = arith.constant 0 : index
      %c0_73 = arith.constant 0 : index
      %95 = vector.load %arg5[%c0_72, %c0_73] : memref<1x8xf32, #tpu.memory_space<vmem>>, vector<1x8xf32>
      %96 = arith.mulf %83, %93 : vector<1x8xf32>
      %97 = arith.subf %95, %96 : vector<1x8xf32>
      %c1_74 = arith.constant 1 : index
      %c0_75 = arith.constant 0 : index
      %98 = vector.load %arg7[%c1_74, %c0_75] : memref<2x8xf32, #tpu.memory_space<vmem>>, vector<1x8xf32>
      tpu.vector_store %arg7[%c1_74, %c0_75], %97 {strides = array<i32>} : memref<2x8xf32, #tpu.memory_space<vmem>>, vector<1x8xf32>,
    } else {
    }
    return
  }
  func.func @transform_0(%arg0: i32) -> (i32, i32, i32, i32, i32) {
    %c0_i32 = arith.constant 0 : i32
    %c0_i32_0 = arith.constant 0 : i32
    %c0_i32_1 = arith.constant 0 : i32
    %c0_i32_2 = arith.constant 0 : i32
    %c0_i32_3 = arith.constant 0 : i32
    return %arg0, %c0_i32, %c0_i32_0, %c0_i32_1, %c0_i32_2 : i32, i32, i32, i32, i32
  }
  func.func @transform_1(%arg0: i32) -> (i32, i32) {
    %c0_i32 = arith.constant 0 : i32
    %c0_i32_0 = arith.constant 0 : i32
    %c0_i32_1 = arith.constant 0 : i32
    return %c0_i32, %c0_i32_0 : i32, i32
  }
  func.func @transform_2(%arg0: i32) -> (i32, i32, i32) {
    %c0_i32 = arith.constant 0 : i32
    %c0_i32_0 = arith.constant 0 : i32
    %c0_i32_1 = arith.constant 0 : i32
    %c0_i32_2 = arith.constant 0 : i32
    return %c0_i32, %c0_i32_0, %c0_i32_1 : i32, i32, i32
  }
  func.func @transform_3(%arg0: i32) -> (i32, i32) {
    %c0_i32 = arith.constant 0 : i32
    %c0_i32_0 = arith.constant 0 : i32
    %c0_i32_1 = arith.constant 0 : i32
    return %c0_i32, %c0_i32_0 : i32, i32
  }
  func.func @transform_4(%arg0: i32) -> (i32, i32) {
    %c0_i32 = arith.constant 0 : i32
    %c0_i32_0 = arith.constant 0 : i32
    %c0_i32_1 = arith.constant 0 : i32
    return %c0_i32, %c0_i32_0 : i32, i32
  }
  func.func @transform_5(%arg0: i32) -> (i32, i32, i32) {
    %c0_i32 = arith.constant 0 : i32
    %c0_i32_0 = arith.constant 0 : i32
    %c0_i32_1 = arith.constant 0 : i32
    return %arg0, %c0_i32, %c0_i32_0 : i32, i32, i32
  }
  func.func @transform_6(%arg0: i32) -> (i32, i32) {
    %c0_i32 = arith.constant 0 : i32
    %c0_i32_0 = arith.constant 0 : i32
    %c0_i32_1 = arith.constant 0 : i32
    return %c0_i32, %c0_i32_0 : i32, i32
  }
}

module attributes {stable_mosaic.version = 11 : i64} {
  func.func @_conv_block_kernel(%arg0: i32, %arg1: memref<1x8x1x8x8xbf16, #tpu.memory_space<vmem>>, %arg2: memref<2x8xf32, #tpu.memory_space<vmem>>, %arg3: memref<3x24x8xbf16, #tpu.memory_space<vmem>>, %arg4: memref<1x64x8xf32, #tpu.memory_space<vmem>>, %arg5: memref<1x64x8xf32, #tpu.memory_space<vmem>>, %arg6: memref<1x10x8x24xf32, #tpu.memory_space<vmem>>) attributes {dimension_semantics = [#tpu.dimension_semantics<parallel>], iteration_bounds = array<i64: 2>, scalar_prefetch = 0 : i64, scratch_operands = 1 : i64, tpu.core_type = #tpu.core_type<tc>, window_params = [{transform_indices = @transform_0, window_bounds = array<i64: 1, 8, 1, 8, 8>}, {pipeline_mode = #tpu.pipeline_mode<synchronous>, transform_indices = @transform_1, window_bounds = array<i64: 2, 8>}, {pipeline_mode = #tpu.pipeline_mode<synchronous>, transform_indices = @transform_2, window_bounds = array<i64: 3, 24, 8>}, {transform_indices = @transform_3, window_bounds = array<i64: 1, 64, 8>}, {transform_indices = @transform_4, window_bounds = array<i64: 1, 64, 8>}]} {
    %cst = arith.constant 0.000000e+00 : f32
    %0 = vector.broadcast %cst : f32 to vector<1x10x8x24xf32>
    %c0 = arith.constant 0 : index
    %c0_0 = arith.constant 0 : index
    %c0_1 = arith.constant 0 : index
    %c0_2 = arith.constant 0 : index
    %1 = vector.load %arg6[%c0, %c0_0, %c0_1, %c0_2] : memref<1x10x8x24xf32, #tpu.memory_space<vmem>>, vector<1x10x8x24xf32>
    tpu.vector_store %arg6[%c0, %c0_0, %c0_1, %c0_2], %0 {strides = array<i32>} : memref<1x10x8x24xf32, #tpu.memory_space<vmem>>, vector<1x10x8x24xf32>,
    %c0_3 = arith.constant 0 : index
    %c0_4 = arith.constant 0 : index
    %2 = vector.load %arg2[%c0_3, %c0_4] : memref<2x8xf32, #tpu.memory_space<vmem>>, vector<1x8xf32>
    %3 = vector.shape_cast %2 : vector<1x8xf32> to vector<1x1x8xf32>
    %c1 = arith.constant 1 : index
    %c0_5 = arith.constant 0 : index
    %4 = vector.load %arg2[%c1, %c0_5] : memref<2x8xf32, #tpu.memory_space<vmem>>, vector<1x8xf32>
    %5 = vector.shape_cast %4 : vector<1x8xf32> to vector<1x1x8xf32>
    %c0_6 = arith.constant 0 : index
    %c0_7 = arith.constant 0 : index
    %c0_8 = arith.constant 0 : index
    %c0_9 = arith.constant 0 : index
    %c0_10 = arith.constant 0 : index
    %6 = vector.load %arg1[%c0_6, %c0_7, %c0_8, %c0_9, %c0_10] : memref<1x8x1x8x8xbf16, #tpu.memory_space<vmem>>, vector<1x8x1x8x8xbf16>
    %7 = vector.shape_cast %6 : vector<1x8x1x8x8xbf16> to vector<8x8x8xbf16>
    %8 = arith.extf %7 : vector<8x8x8xbf16> to vector<8x8x8xf32>
    %9 = vector.broadcast %3 : vector<1x1x8xf32> to vector<8x8x8xf32>
    %10 = arith.mulf %8, %9 : vector<8x8x8xf32>
    %11 = vector.broadcast %5 : vector<1x1x8xf32> to vector<8x8x8xf32>
    %12 = arith.addf %10, %11 : vector<8x8x8xf32>
    %cst_11 = arith.constant 0.000000e+00 : f32
    %13 = vector.broadcast %cst_11 : f32 to vector<8x8x8xf32>
    %14 = arith.maximumf %12, %13 : vector<8x8x8xf32>
    %15 = vector.extract_strided_slice %14 {offsets = [0, 0, 0], sizes = [8, 7, 8], strides = [1, 1, 1]} : vector<8x8x8xf32> to vector<8x7x8xf32>
    %c0_12 = arith.constant 0 : index
    %c1_13 = arith.constant 1 : index
    %c1_14 = arith.constant 1 : index
    %c0_15 = arith.constant 0 : index
    %16 = vector.load %arg6[%c0_12, %c1_13, %c1_14, %c0_15] : memref<1x10x8x24xf32, #tpu.memory_space<vmem>>, vector<1x8x7x8xf32>
    %17 = vector.shape_cast %16 : vector<1x8x7x8xf32> to vector<8x7x8xf32>
    %18 = vector.shape_cast %15 : vector<8x7x8xf32> to vector<1x8x7x8xf32>
    tpu.vector_store %arg6[%c0_12, %c1_13, %c1_14, %c0_15], %18 {strides = array<i32>} : memref<1x10x8x24xf32, #tpu.memory_space<vmem>>, vector<1x8x7x8xf32>,
    %c0_16 = arith.constant 0 : index
    %c1_17 = arith.constant 1 : index
    %c0_18 = arith.constant 0 : index
    %c8 = arith.constant 8 : index
    %19 = vector.load %arg6[%c0_16, %c1_17, %c0_18, %c8] : memref<1x10x8x24xf32, #tpu.memory_space<vmem>>, vector<1x8x8x8xf32>
    %20 = vector.shape_cast %19 : vector<1x8x8x8xf32> to vector<8x8x8xf32>
    %21 = vector.shape_cast %14 : vector<8x8x8xf32> to vector<1x8x8x8xf32>
    tpu.vector_store %arg6[%c0_16, %c1_17, %c0_18, %c8], %21 {strides = array<i32>} : memref<1x10x8x24xf32, #tpu.memory_space<vmem>>, vector<1x8x8x8xf32>,
    %22 = vector.extract_strided_slice %14 {offsets = [0, 1, 0], sizes = [8, 7, 8], strides = [1, 1, 1]} : vector<8x8x8xf32> to vector<8x7x8xf32>
    %c0_19 = arith.constant 0 : index
    %c1_20 = arith.constant 1 : index
    %c0_21 = arith.constant 0 : index
    %c16 = arith.constant 16 : index
    %23 = vector.load %arg6[%c0_19, %c1_20, %c0_21, %c16] : memref<1x10x8x24xf32, #tpu.memory_space<vmem>>, vector<1x8x7x8xf32>
    %24 = vector.shape_cast %23 : vector<1x8x7x8xf32> to vector<8x7x8xf32>
    %25 = vector.shape_cast %22 : vector<8x7x8xf32> to vector<1x8x7x8xf32>
    tpu.vector_store %arg6[%c0_19, %c1_20, %c0_21, %c16], %25 {strides = array<i32>} : memref<1x10x8x24xf32, #tpu.memory_space<vmem>>, vector<1x8x7x8xf32>,
    %c0_i32 = arith.constant 0 : i32
    %c8_i32 = arith.constant 8 : i32
    %26 = arith.muli %c0_i32, %c8_i32 : i32
    %c64_i32 = arith.constant 64 : i32
    %27 = arith.muli %c0_i32, %c64_i32 : i32
    %28 = tpu.assume_multiple %27, 64 : i32
    %cst_22 = arith.constant 0.000000e+00 : f32
    %29 = vector.broadcast %cst_22 : f32 to vector<64x8xf32>
    %c0_i32_23 = arith.constant 0 : i32
    %30 = arith.addi %26, %c0_i32_23 : i32
    %c0_24 = arith.constant 0 : index
    %31 = arith.index_cast %30 : i32 to index
    %c0_25 = arith.constant 0 : index
    %c0_26 = arith.constant 0 : index
    %32 = vector.load %arg6[%c0_24, %31, %c0_25, %c0_26] : memref<1x10x8x24xf32, #tpu.memory_space<vmem>>, vector<1x8x8x24xf32>
    %33 = vector.shape_cast %32 : vector<1x8x8x24xf32> to vector<8x8x24xf32>
    %34 = vector.shape_cast %33 : vector<8x8x24xf32> to vector<64x24xf32>
    %35 = arith.truncf %34 : vector<64x24xf32> to vector<64x24xbf16>
    %c0_27 = arith.constant 0 : index
    %c0_28 = arith.constant 0 : index
    %c0_29 = arith.constant 0 : index
    %36 = vector.load %arg3[%c0_27, %c0_28, %c0_29] : memref<3x24x8xbf16, #tpu.memory_space<vmem>>, vector<1x24x8xbf16>
    %37 = vector.shape_cast %36 : vector<1x24x8xbf16> to vector<24x8xbf16>
    %cst_30 = arith.constant dense<0.000000e+00> : vector<64x8xf32>
    %38 = tpu.matmul %35, %37, %cst_30 {dimension_numbers = #tpu.dot_dimension_numbers<[1], [0], [0], [1], [0, 0, 1, 1], [], []>} : vector<64x24xbf16>, vector<24x8xbf16>, vector<64x8xf32> -> vector<64x8xf32>
    %39 = arith.addf %29, %38 : vector<64x8xf32>
    %c1_i32 = arith.constant 1 : i32
    %40 = arith.addi %26, %c1_i32 : i32
    %c0_31 = arith.constant 0 : index
    %41 = arith.index_cast %40 : i32 to index
    %c0_32 = arith.constant 0 : index
    %c0_33 = arith.constant 0 : index
    %42 = vector.load %arg6[%c0_31, %41, %c0_32, %c0_33] : memref<1x10x8x24xf32, #tpu.memory_space<vmem>>, vector<1x8x8x24xf32>
    %43 = vector.shape_cast %42 : vector<1x8x8x24xf32> to vector<8x8x24xf32>
    %44 = vector.shape_cast %43 : vector<8x8x24xf32> to vector<64x24xf32>
    %45 = arith.truncf %44 : vector<64x24xf32> to vector<64x24xbf16>
    %c1_34 = arith.constant 1 : index
    %c0_35 = arith.constant 0 : index
    %c0_36 = arith.constant 0 : index
    %46 = vector.load %arg3[%c1_34, %c0_35, %c0_36] : memref<3x24x8xbf16, #tpu.memory_space<vmem>>, vector<1x24x8xbf16>
    %47 = vector.shape_cast %46 : vector<1x24x8xbf16> to vector<24x8xbf16>
    %cst_37 = arith.constant dense<0.000000e+00> : vector<64x8xf32>
    %48 = tpu.matmul %45, %47, %cst_37 {dimension_numbers = #tpu.dot_dimension_numbers<[1], [0], [0], [1], [0, 0, 1, 1], [], []>} : vector<64x24xbf16>, vector<24x8xbf16>, vector<64x8xf32> -> vector<64x8xf32>
    %49 = arith.addf %39, %48 : vector<64x8xf32>
    %c2_i32 = arith.constant 2 : i32
    %50 = arith.addi %26, %c2_i32 : i32
    %c0_38 = arith.constant 0 : index
    %51 = arith.index_cast %50 : i32 to index
    %c0_39 = arith.constant 0 : index
    %c0_40 = arith.constant 0 : index
    %52 = vector.load %arg6[%c0_38, %51, %c0_39, %c0_40] : memref<1x10x8x24xf32, #tpu.memory_space<vmem>>, vector<1x8x8x24xf32>
    %53 = vector.shape_cast %52 : vector<1x8x8x24xf32> to vector<8x8x24xf32>
    %54 = vector.shape_cast %53 : vector<8x8x24xf32> to vector<64x24xf32>
    %55 = arith.truncf %54 : vector<64x24xf32> to vector<64x24xbf16>
    %c2 = arith.constant 2 : index
    %c0_41 = arith.constant 0 : index
    %c0_42 = arith.constant 0 : index
    %56 = vector.load %arg3[%c2, %c0_41, %c0_42] : memref<3x24x8xbf16, #tpu.memory_space<vmem>>, vector<1x24x8xbf16>
    %57 = vector.shape_cast %56 : vector<1x24x8xbf16> to vector<24x8xbf16>
    %cst_43 = arith.constant dense<0.000000e+00> : vector<64x8xf32>
    %58 = tpu.matmul %55, %57, %cst_43 {dimension_numbers = #tpu.dot_dimension_numbers<[1], [0], [0], [1], [0, 0, 1, 1], [], []>} : vector<64x24xbf16>, vector<24x8xbf16>, vector<64x8xf32> -> vector<64x8xf32>
    %59 = arith.addf %49, %58 : vector<64x8xf32>
    %c0_44 = arith.constant 0 : index
    %60 = arith.index_cast %28 : i32 to index
    %c0_45 = arith.constant 0 : index
    %61 = vector.load %arg4[%c0_44, %60, %c0_45] : memref<1x64x8xf32, #tpu.memory_space<vmem>>, vector<1x64x8xf32>
    %62 = vector.shape_cast %61 : vector<1x64x8xf32> to vector<64x8xf32>
    %63 = arith.addf %59, %62 : vector<64x8xf32>
    %c0_46 = arith.constant 0 : index
    %64 = arith.index_cast %28 : i32 to index
    %c0_47 = arith.constant 0 : index
    %65 = vector.load %arg5[%c0_46, %64, %c0_47] : memref<1x64x8xf32, #tpu.memory_space<vmem>>, vector<1x64x8xf32>
    %66 = vector.shape_cast %65 : vector<1x64x8xf32> to vector<64x8xf32>
    %67 = vector.shape_cast %63 : vector<64x8xf32> to vector<1x64x8xf32>
    tpu.vector_store %arg5[%c0_46, %64, %c0_47], %67 {strides = array<i32>} : memref<1x64x8xf32, #tpu.memory_space<vmem>>, vector<1x64x8xf32>,
    %c1_i32_48 = arith.constant 1 : i32
    return
  }
  func.func @transform_0(%arg0: i32) -> (i32, i32, i32, i32, i32) {
    %c0_i32 = arith.constant 0 : i32
    %c0_i32_0 = arith.constant 0 : i32
    %c0_i32_1 = arith.constant 0 : i32
    %c0_i32_2 = arith.constant 0 : i32
    %c0_i32_3 = arith.constant 0 : i32
    return %arg0, %c0_i32, %c0_i32_0, %c0_i32_1, %c0_i32_2 : i32, i32, i32, i32, i32
  }
  func.func @transform_1(%arg0: i32) -> (i32, i32) {
    %c0_i32 = arith.constant 0 : i32
    %c0_i32_0 = arith.constant 0 : i32
    %c0_i32_1 = arith.constant 0 : i32
    return %c0_i32, %c0_i32_0 : i32, i32
  }
  func.func @transform_2(%arg0: i32) -> (i32, i32, i32) {
    %c0_i32 = arith.constant 0 : i32
    %c0_i32_0 = arith.constant 0 : i32
    %c0_i32_1 = arith.constant 0 : i32
    %c0_i32_2 = arith.constant 0 : i32
    return %c0_i32, %c0_i32_0, %c0_i32_1 : i32, i32, i32
  }
  func.func @transform_3(%arg0: i32) -> (i32, i32, i32) {
    %c0_i32 = arith.constant 0 : i32
    %c0_i32_0 = arith.constant 0 : i32
    %c0_i32_1 = arith.constant 0 : i32
    return %arg0, %c0_i32, %c0_i32_0 : i32, i32, i32
  }
  func.func @transform_4(%arg0: i32) -> (i32, i32, i32) {
    %c0_i32 = arith.constant 0 : i32
    %c0_i32_0 = arith.constant 0 : i32
    %c0_i32_1 = arith.constant 0 : i32
    return %arg0, %c0_i32, %c0_i32_0 : i32, i32, i32
  }
}

</mosaic_0001>

<bundles_post_ra>
// kernel: meta_network_block_forward.5
= control target key start
LH: loop header
LB: loop body
LE: loop exit
PB: predicated region body
PF: predicated region fallthrough
CT: control target
= control target key end

     0   :  { %vm18_vm0 = vcmask 25600   ;;  %vm85_vm1 = vcmask 31744   ;;  %v447_v0 = vmov 0.0   ;;  %vm220_vm2 = vcmask 24576   ;;  %s1338_s0 = inlined_call_operand.vmem [shape: f32[512,4], index: 0, kind: input, shape index: {}]   ;;  %s1339_s1 = inlined_call_operand.vmem [shape: f32[1,4], index: 1, kind: input, shape index: {}]   ;;  %s1340_s2 = inlined_call_operand.vmem [shape: f32[1,4], index: 2, kind: input, shape index: {}]   ;;  %s1341_s3 = inlined_call_operand.vmem [shape: f32[2,4], index: 3, kind: output, shape index: {}]  }
   0x1   :  { %19 = vst.msk [vmem:[#allocation2] sm:$0x3] %vm18_vm0, %v447_v0  ;;  %v471_v1 = vld [vmem:[%s1338_s0] sm:$0xff]  ;;  %v476_v2 = vld [vmem:[%s1338_s0 + $0x8] sm:$0xff]  ;;  %v481_v3 = vld [vmem:[%s1338_s0 + $0x10] sm:$0xff] }
   0x2   :  { %v486_v4 = vld [vmem:[%s1338_s0 + $0x18] sm:$0xff]  ;;  %v86_v5 = vsel %vm85_vm1, %v471_v1, 0.0  ;;  %v87_v6 = vsel %vm85_vm1, %v476_v2, 0.0  ;;  %v89_v7 = vsel %vm85_vm1, %v481_v3, 0.0  ;;  %v497_v8 = vld [vmem:[%s1338_s0 + $0x20] sm:$0xff]  ;;  %v504_v11 = vld [vmem:[%s1338_s0 + $0x28] sm:$0xff] }
   0x3   :  { %v88_v9 = vadd.f32 %v87_v6, %v86_v5  ;;  %v91_v10 = vsel %vm85_vm1, %v486_v4, 0.0  ;;  %v93_v13 = vsel %vm85_vm1, %v497_v8, 0.0  ;;  %v511_v14 = vld [vmem:[%s1338_s0 + $0x30] sm:$0xff]  ;;  %v516_v16 = vld [vmem:[%s1338_s0 + $0x38] sm:$0xff]  ;;  %v521_v17 = vld [vmem:[%s1338_s0 + $0x40] sm:$0xff]  ;;  %v95_v18 = vsel %vm85_vm1, %v504_v11, 0.0 }
   0x4   :  { %v528_v19 = vld [vmem:[%s1338_s0 + $0x48] sm:$0xff]  ;;  %v533_v20 = vld [vmem:[%s1338_s0 + $0x50] sm:$0xff]  ;;  %v538_v21 = vld [vmem:[%s1338_s0 + $0x58] sm:$0xff]  ;;  %v97_v23 = vsel %vm85_vm1, %v511_v14, 0.0  ;;  %v99_v25 = vsel %vm85_vm1, %v516_v16, 0.0  ;;  %v101_v26 = vsel %vm85_vm1, %v521_v17, 0.0 }
   0x5   :  { %v90_v12 = vadd.f32 %v89_v7, %v88_v9  ;;  %v549_v27 = vld [vmem:[%s1338_s0 + $0x108] sm:$0xff]  ;;  %v554_v28 = vld [vmem:[%s1338_s0 + $0x110] sm:$0xff]  ;;  %v559_v29 = vld [vmem:[%s1338_s0 + $0x118] sm:$0xff]  ;;  %v103_v30 = vsel %vm85_vm1, %v528_v19, 0.0  ;;  %v105_v31 = vsel %vm85_vm1, %v533_v20, 0.0  ;;  %v567_v32 = vsel %vm85_vm1, %v538_v21, 0.0 }
   0x6   :  { %v572_v33 = vld [vmem:[%s1338_s0 + $0x120] sm:$0xff]  ;;  %v577_v34 = vld [vmem:[%s1338_s0 + $0x128] sm:$0xff]  ;;  %v582_v35 = vld [vmem:[%s1338_s0 + $0x130] sm:$0xff]  ;;  %v586_v37 = vsel %vm85_vm1, %v549_v27, 0.0  ;;  %v590_v38 = vsel %vm85_vm1, %v554_v28, 0.0  ;;  %v594_v39 = vsel %vm85_vm1, %v559_v29, 0.0 }
   0x7   :  { %v92_v15 = vadd.f32 %v91_v10, %v90_v12  ;;  %1364 = vst [vmem:[#allocation3_spill] sm:$0xff] %v586_v37  ;;  %1365 = vst [vmem:[#allocation4_spill] sm:$0xff] %v590_v38  ;;  %v599_v40 = vld [vmem:[%s1338_s0 + $0x138] sm:$0xff]  ;;  %v604_v41 = vld [vmem:[%s1338_s0 + $0x140] sm:$0xff]  ;;  %v613_v43 = vsel %vm85_vm1, %v572_v33, 0.0  ;;  %v617_v44 = vsel %vm85_vm1, %v577_v34, 0.0  ;;  %v225_v37 = vmul.f32 %v481_v3, %v481_v3 }
   0x8   :  { %1366 = vst [vmem:[#allocation5_spill] sm:$0xff] %v594_v39  ;;  %v609_v42 = vld [vmem:[%s1338_s0 + $0x148] sm:$0xff]  ;;  %1367 = vst [vmem:[#allocation6_spill] sm:$0xff] %v613_v43  ;;  %v621_v45 = vsel %vm85_vm1, %v582_v35, 0.0  ;;  %v626_v46 = vld [vmem:[%s1338_s0 + $0x150] sm:$0xff]  ;;  %v640_v50 = vsel %vm85_vm1, %v599_v40, 0.0 }
   0x9   :  { %v94_v22 = vadd.f32 %v93_v13, %v92_v15  ;;  %1368 = vst [vmem:[#allocation7_spill] sm:$0xff] %v617_v44  ;;  %1369 = vst [vmem:[#allocation8_spill] sm:$0xff] %v621_v45  ;;  %v631_v47 = vld [vmem:[%s1338_s0 + $0x158] sm:$0xff]  ;;  %v636_v48 = vld [vmem:[%s1338_s0 + $0x160] sm:$0xff]  ;;  %v644_v51 = vsel %vm85_vm1, %v604_v41, 0.0  ;;  %v648_v52 = vsel %vm85_vm1, %v609_v42, 0.0 }
   0xa   :  { %1370 = vst [vmem:[#allocation9_spill] sm:$0xff] %v640_v50  ;;  %1371 = vst [vmem:[#allocation10_spill] sm:$0xff] %v644_v51  ;;  %v653_v53 = vld [vmem:[%s1338_s0 + $0x168] sm:$0xff]  ;;  %v658_v54 = vld [vmem:[%s1338_s0 + $0x170] sm:$0xff]  ;;  %v667_v56 = vsel %vm85_vm1, %v626_v46, 0.0  ;;  %v671_v57 = vsel %vm85_vm1, %v631_v47, 0.0 }
   0xb   :  { %v96_v24 = vadd.f32 %v95_v18, %v94_v22  ;;  %1372 = vst [vmem:[#allocation11_spill] sm:$0xff] %v648_v52  ;;  %v663_v55 = vld [vmem:[%s1338_s0 + $0x178] sm:$0xff]  ;;  %1373 = vst [vmem:[#allocation12_spill] sm:$0xff] %v667_v56  ;;  %v675_v58 = vsel %vm85_vm1, %v636_v48, 0.0  ;;  %v680_v59 = vld [vmem:[%s1338_s0 + $0x60] sm:$0xff]  ;;  %v699_v0 = vsel %vm85_vm1, %v653_v53, 0.0 }
   0xc   :  { %1374 = vst [vmem:[#allocation13_spill] sm:$0xff] %v671_v57  ;;  %1375 = vst [vmem:[#allocation14_spill] sm:$0xff] %v675_v58  ;;  %v685_v60 = vld [vmem:[%s1338_s0 + $0x180] sm:$0xff]  ;;  %v690_v61 = vld [vmem:[%s1338_s0 + $0x188] sm:$0xff]  ;;  %v703_v5 = vsel %vm85_vm1, %v658_v54, 0.0  ;;  %v707_v6 = vsel %vm85_vm1, %v663_v55, 0.0 }
   0xd   :  { %v98_v36 = vadd.f32 %v97_v23, %v96_v24  ;;  %v695_v62 = vld [vmem:[%s1338_s0 + $0x190] sm:$0xff]  ;;  %1376 = vst [vmem:[#allocation15_spill] sm:$0xff] %v699_v0  ;;  %1377 = vst [vmem:[#allocation16_spill] sm:$0xff] %v703_v5  ;;  %v712_v7 = vld [vmem:[%s1338_s0 + $0x198] sm:$0xff]  ;;  %v726_v12 = vsel %vm85_vm1, %v685_v60, 0.0  ;;  %v730_v13 = vsel %vm85_vm1, %v690_v61, 0.0 }
   0xe   :  { %1378 = vst [vmem:[#allocation17_spill] sm:$0xff] %v707_v6  ;;  %v717_v9 = vld [vmem:[%s1338_s0 + $0x1a0] sm:$0xff]  ;;  %v722_v10 = vld [vmem:[%s1338_s0 + $0x1a8] sm:$0xff]  ;;  %1379 = vst [vmem:[#allocation18_spill] sm:$0xff] %v726_v12  ;;  %v734_v15 = vsel %vm85_vm1, %v695_v62, 0.0 }
   0xf   :  { %v100_v49 = vadd.f32 %v99_v25, %v98_v36  ;;  %1380 = vst [vmem:[#allocation19_spill] sm:$0xff] %v730_v13  ;;  %1381 = vst [vmem:[#allocation20_spill] sm:$0xff] %v734_v15  ;;  %v739_v18 = vld [vmem:[%s1338_s0 + $0x68] sm:$0xff]  ;;  %v744_v22 = vld [vmem:[%s1338_s0 + $0x1b0] sm:$0xff]  ;;  %v762_v36 = vsel %vm85_vm1, %v717_v9, 0.0 }
  0x10   :  { %v749_v23 = vld [vmem:[%s1338_s0 + $0x1b8] sm:$0xff]  ;;  %v754_v24 = vld [vmem:[%s1338_s0 + $0x1c0] sm:$0xff]  ;;  %1383 = vst [vmem:[#allocation22_spill] sm:$0xff] %v762_v36  ;;  %v771_v15 = vld [vmem:[%s1338_s0 + $0x1c8] sm:$0xff]  ;;  %v785_v36 = vsel %vm85_vm1, %v744_v22, 0.0 }
  0x11   :  { %v102_v63 = vadd.f32 %v101_v26, %v100_v49  ;;  %v758_v26 = vsel %vm85_vm1, %v712_v7, 0.0  ;;  %v766_v49 = vsel %vm85_vm1, %v722_v10, 0.0  ;;  %1385 = vst [vmem:[#allocation24_spill] sm:$0xff] %v771_v15  ;;  %1388 = vst [vmem:[#allocation27_spill] sm:$0xff] %v785_v36  ;;  %v798_v13 = vld [vmem:[%s1338_s0 + $0x1e0] sm:$0xff]  ;;  %v803_v12 = vld [vmem:[%s1338_s0 + $0x1e8] sm:$0xff] }
  0x12   :  { %1382 = vst [vmem:[#allocation21_spill] sm:$0xff] %v758_v26  ;;  %1384 = vst [vmem:[#allocation23_spill] sm:$0xff] %v766_v49  ;;  %v789_v49 = vsel %vm85_vm1, %v749_v23, 0.0  ;;  %v793_v26 = vsel %vm85_vm1, %v754_v24, 0.0  ;;  %v808_v36 = vld [vmem:[%s1338_s0 + $0x1f0] sm:$0xff]  ;;  %v812_v6 = vsel %vm85_vm1, %v771_v15, 0.0 }
  0x13   :  { %v104_v25 = vadd.f32 %v103_v30, %v102_v63  ;;  %v776_v30 = vld [vmem:[%s1338_s0 + $0x1d0] sm:$0xff]  ;;  %v781_v63 = vld [vmem:[%s1338_s0 + $0x1d8] sm:$0xff]  ;;  %1389 = vst [vmem:[#allocation28_spill] sm:$0xff] %v789_v49  ;;  %1390 = vst [vmem:[#allocation29_spill] sm:$0xff] %v793_v26 }
  0x14   :  { %1386 = vst [vmem:[#allocation25_spill] sm:$0xff] %v776_v30  ;;  %1387 = vst [vmem:[#allocation26_spill] sm:$0xff] %v781_v63  ;;  %v816_v26 = vsel %vm85_vm1, %v776_v30, 0.0  ;;  %v820_v5 = vsel %vm85_vm1, %v781_v63, 0.0  ;;  %v825_v0 = vld [vmem:[%s1338_s0 + $0x1f8] sm:$0xff]  ;;  %v879_v52 = vld [vmem:[%s1338_s0 + $0xa0] sm:$0xff] }
  0x15   :  { %1391 = vst [vmem:[#allocation30_spill] sm:$0xff] %v798_v13  ;;  %1392 = vst [vmem:[#allocation31_spill] sm:$0xff] %v803_v12  ;;  %v106_v49 = vadd.f32 %v105_v31, %v104_v25  ;;  %v109_v31 = vsel %vm85_vm1, %v680_v59, 0.0  ;;  %v831_v25 = vsel %vm85_vm1, %v798_v13, 0.0  ;;  %v847_v57 = vsel %vm85_vm1, %v825_v0, 0.0  ;;  %v884_v51 = vld [vmem:[%s1338_s0 + $0xa8] sm:$0xff] }
  0x16   :  { %1393 = vst [vmem:[#allocation32_spill] sm:$0xff] %v808_v36  ;;  %1394 = vst [vmem:[#allocation33_spill] sm:$0xff] %v812_v6  ;;  %v835_v6 = vsel %vm85_vm1, %v803_v12, 0.0  ;;  %v889_v50 = vld [vmem:[%s1338_s0 + $0xb0] sm:$0xff]  ;;  %v902_v44 = vld [vmem:[%s1338_s0 + $0xc0] sm:$0xff]  ;;  %v226_v13 = vmul.f32 %v486_v4, %v486_v4 }
  0x17   :  { %1395 = vst [vmem:[#allocation34_spill] sm:$0xff] %v816_v26  ;;  %1396 = vst [vmem:[#allocation35_spill] sm:$0xff] %v820_v5  ;;  %v839_v26 = vsel %vm85_vm1, %v808_v36, 0.0  ;;  %v34_v5 = vld [vmem:[%s1338_s0 + $0x70] sm:$0xff]  ;;  %v108_v58 = vadd.f32 %v567_v32, %v106_v49  ;;  %v864_v32 = vld [vmem:[%s1338_s0 + $0x88] sm:$0xff]  ;;  %v129_v63 = vsel %vm85_vm1, %v889_v50, 0.0 }
  0x18   :  { %1397 = vst [vmem:[#allocation36_spill] sm:$0xff] %v825_v0  ;;  %1398 = vst [vmem:[#allocation37_spill] sm:$0xff] %v831_v25  ;;  %v852_v25 = vld [vmem:[%s1338_s0 + $0x78] sm:$0xff]  ;;  %v869_v49 = vld [vmem:[%s1338_s0 + $0x90] sm:$0xff]  ;;  %v113_v45 = vsel %vm85_vm1, %v34_v5, 0.0  ;;  %v962_v15 = vsel %vm85_vm1, %v902_v44, 0.0 }
  0x19   :  { %1399 = vst [vmem:[#allocation38_spill] sm:$0xff] %v835_v6  ;;  %1400 = vst [vmem:[#allocation39_spill] sm:$0xff] %v839_v26  ;;  %v857_v6 = vld [vmem:[%s1338_s0 + $0x80] sm:$0xff]  ;;  %v111_v26 = vsel %vm85_vm1, %v739_v18, 0.0  ;;  %v110_v56 = vadd.f32 %v109_v31, %v108_v58  ;;  %v223_v58 = vmul.f32 %v471_v1, %v471_v1  ;;  %v897_v31 = vld [vmem:[%s1338_s0 + $0xb8] sm:$0xff]  ;;  %v115_v38 = vsel %vm85_vm1, %v852_v25, 0.0 }
  0x1a   :  { %1401 = vst [vmem:[#allocation40_spill] sm:$0xff] %v847_v57  ;;  %1402 = vst [vmem:[#allocation41_spill] sm:$0xff] %v852_v25  ;;  %v874_v57 = vld [vmem:[%s1338_s0 + $0x98] sm:$0xff]  ;;  %v907_v43 = vld [vmem:[%s1338_s0 + $0xc8] sm:$0xff]  ;;  %v224_v1 = vmul.f32 %v476_v2, %v476_v2  ;;  %v121_v2 = vsel %vm85_vm1, %v869_v49, 0.0  ;;  %v958_v30 = vsel %vm85_vm1, %v897_v31, 0.0 }
  0x1b   :  { %1403 = vst [vmem:[#allocation42_spill] sm:$0xff] %v857_v6  ;;  %1404 = vst [vmem:[#allocation43_spill] sm:$0xff] %v864_v32  ;;  %v112_v39 = vadd.f32 %v111_v26, %v110_v56  ;;  %v918_v0 = vld [vmem:[%s1338_s0 + $0xd0] sm:$0xff]  ;;  %v923_v36 = vld [vmem:[%s1338_s0 + $0xd8] sm:$0xff]  ;;  %v117_v56 = vsel %vm85_vm1, %v857_v6, 0.0  ;;  %v119_v26 = vsel %vm85_vm1, %v864_v32, 0.0 }
  0x1c   :  { %1405 = vst [vmem:[#allocation44_spill] sm:$0xff] %v869_v49  ;;  %1406 = vst [vmem:[#allocation45_spill] sm:$0xff] %v874_v57  ;;  %v123_v3 = vsel %vm85_vm1, %v874_v57, 0.0  ;;  %v936_v25 = vld [vmem:[%s1338_s0 + $0xe0] sm:$0xff]  ;;  %v941_v12 = vld [vmem:[%s1338_s0 + $0xe8] sm:$0xff]  ;;  %v125_v49 = vsel %vm85_vm1, %v879_v52, 0.0 }
  0x1d   :  { %1407 = vst [vmem:[#allocation46_spill] sm:$0xff] %v884_v51  ;;  %1408 = vst [vmem:[#allocation47_spill] sm:$0xff] %v889_v50  ;;  %v946_v32 = vld [vmem:[%s1338_s0 + $0xf0] sm:$0xff]  ;;  %v114_v6 = vadd.f32 %v113_v45, %v112_v39  ;;  %v127_v57 = vsel %vm85_vm1, %v884_v51, 0.0  ;;  %v966_v39 = vsel %vm85_vm1, %v907_v43, 0.0  ;;  %v970_v51 = vsel %vm85_vm1, %v918_v0, 0.0 }
  0x1e   :  { %1409 = vst [vmem:[#allocation48_spill] sm:$0xff] %v897_v31  ;;  %1410 = vst [vmem:[#allocation49_spill] sm:$0xff] %v902_v44  ;;  %v974_v4 = vsel %vm85_vm1, %v923_v36, 0.0  ;;  %v227_v31 = vmul.f32 %v497_v8, %v497_v8  ;;  %v980_v44 = vsel %vm85_vm1, %v936_v25, 0.0  ;;  %v230_v8 = vmul.f32 %v516_v16, %v516_v16 }
  0x1f   :  { %1411 = vst [vmem:[#allocation50_spill] sm:$0xff] %v907_v43  ;;  %1412 = vst [vmem:[#allocation51_spill] sm:$0xff] %v918_v0  ;;  %v116_v45 = vadd.f32 %v115_v38, %v114_v6  ;;  %v984_v43 = vsel %vm85_vm1, %v941_v12, 0.0  ;;  %v988_v38 = vsel %vm85_vm1, %v946_v32, 0.0  ;;  %v228_v6 = vmul.f32 %v504_v11, %v504_v11 }
  0x20   :  { %1413 = vst [vmem:[#allocation52_spill] sm:$0xff] %v923_v36  ;;  %1414 = vst [vmem:[#allocation53_spill] sm:$0xff] %v936_v25  ;;  %v229_v0 = vmul.f32 %v511_v14, %v511_v14  ;;  %v231_v25 = vmul.f32 %v521_v17, %v521_v17  ;;  %v234_v50 = vmul.f32 %v538_v21, %v538_v21 }
  0x21   :  { %1415 = vst [vmem:[#allocation54_spill] sm:$0xff] %v941_v12  ;;  %1416 = vst [vmem:[#allocation55_spill] sm:$0xff] %v946_v32  ;;  %v118_v36 = vadd.f32 %v117_v56, %v116_v45  ;;  %v232_v12 = vmul.f32 %v528_v19, %v528_v19  ;;  %v233_v32 = vmul.f32 %v533_v20, %v533_v20 }
  0x22   :  { %v235_v11 = vmul.f32 %v680_v59, %v680_v59  ;;  %v1008_v14 = vmul.f32 %v739_v18, %v739_v18  ;;  %v1010_v16 = vmul.f32 %v34_v5, %v34_v5  ;;  %v256_v17 = vmul.f32 %v549_v27, %v549_v27 }
  0x23   :  { %v120_v56 = vadd.f32 %v119_v26, %v118_v36  ;;  %v257_v19 = vmul.f32 %v554_v28, %v554_v28  ;;  %v258_v20 = vmul.f32 %v559_v29, %v559_v29  ;;  %v259_v21 = vmul.f32 %v572_v33, %v572_v33 }
  0x24   :  { %v260_v59 = vmul.f32 %v577_v34, %v577_v34  ;;  %v261_v5 = vmul.f32 %v582_v35, %v582_v35  ;;  %v262_v18 = vmul.f32 %v599_v40, %v599_v40  ;;  %v263_v27 = vmul.f32 %v604_v41, %v604_v41 }
  0x25   :  { %v122_v36 = vadd.f32 %v121_v2, %v120_v56  ;;  %v264_v28 = vmul.f32 %v609_v42, %v609_v42  ;;  %v265_v29 = vmul.f32 %v626_v46, %v626_v46  ;;  %v266_v33 = vmul.f32 %v631_v47, %v631_v47 }
  0x26   :  { %v287_v34 = vsel %vm85_vm1, %v223_v58, 0.0  ;;  %v267_v35 = vmul.f32 %v636_v48, %v636_v48  ;;  %v288_v40 = vsel %vm85_vm1, %v224_v1, 0.0  ;;  %v290_v2 = vsel %vm85_vm1, %v225_v37, 0.0 }
  0x27   :  { %v124_v26 = vadd.f32 %v123_v3, %v122_v36  ;;  %v268_v41 = vmul.f32 %v653_v53, %v653_v53  ;;  %v269_v42 = vmul.f32 %v658_v54, %v658_v54  ;;  %v270_v46 = vmul.f32 %v663_v55, %v663_v55 }
  0x28   :  { %v289_v47 = vadd.f32 %v288_v40, %v287_v34  ;;  %v271_v58 = vmul.f32 %v685_v60, %v685_v60  ;;  %v272_v48 = vmul.f32 %v690_v61, %v690_v61  ;;  %v292_v1 = vsel %vm85_vm1, %v226_v13, 0.0 }
  0x29   :  { %v126_v45 = vadd.f32 %v125_v49, %v124_v26  ;;  %v273_v37 = vmul.f32 %v695_v62, %v695_v62  ;;  %v274_v53 = vmul.f32 %v712_v7, %v712_v7  ;;  %v275_v54 = vmul.f32 %v717_v9, %v717_v9  ;;  %v1417_v7 = vld [vmem:[#allocation24_spill] sm:$0xff] }
  0x2a   :  { %v291_v55 = vadd.f32 %v290_v2, %v289_v47  ;;  %v276_v49 = vmul.f32 %v722_v10, %v722_v10  ;;  %v277_v60 = vmul.f32 %v744_v22, %v744_v22  ;;  %v294_v61 = vsel %vm85_vm1, %v227_v31, 0.0  ;;  %v1419_v10 = vld [vmem:[#allocation26_spill] sm:$0xff] }
  0x2b   :  { %v128_v3 = vadd.f32 %v127_v57, %v126_v45  ;;  %v278_v13 = vmul.f32 %v749_v23, %v749_v23  ;;  %v279_v62 = vmul.f32 %v754_v24, %v754_v24  ;;  %v280_v56 = vmul.f32 %v1417_v7, %v1417_v7  ;;  %v1418_v57 = vld [vmem:[#allocation25_spill] sm:$0xff]  ;;  %v1420_v31 = vld [vmem:[#allocation30_spill] sm:$0xff]  ;;  %v1421_v23 = vld [vmem:[#allocation31_spill] sm:$0xff] }
  0x2c   :  { %v293_v9 = vadd.f32 %v292_v1, %v291_v55  ;;  %v281_v34 = vmul.f32 %v1418_v57, %v1418_v57  ;;  %v282_v26 = vmul.f32 %v1419_v10, %v1419_v10  ;;  %v296_v22 = vsel %vm85_vm1, %v228_v6, 0.0  ;;  %v1422_v24 = vld [vmem:[#allocation32_spill] sm:$0xff] }
  0x2d   :  { %v130_v36 = vadd.f32 %v129_v63, %v128_v3  ;;  %v283_v40 = vmul.f32 %v1420_v31, %v1420_v31  ;;  %v284_v2 = vmul.f32 %v1421_v23, %v1421_v23  ;;  %v285_v47 = vmul.f32 %v1422_v24, %v1422_v24  ;;  %v1423_v1 = vld [vmem:[#allocation36_spill] sm:$0xff] }
  0x2e   :  { %v295_v45 = vadd.f32 %v294_v61, %v293_v9  ;;  %v286_v55 = vmul.f32 %v1423_v1, %v1423_v1  ;;  %v298_v3 = vsel %vm85_vm1, %v229_v0, 0.0  ;;  %v300_v7 = vsel %vm85_vm1, %v230_v8, 0.0  ;;  %v1424_v1 = vld [vmem:[#allocation41_spill] sm:$0xff] }
  0x2f   :  { %v132_v63 = vadd.f32 %v958_v30, %v130_v36  ;;  %v302_v57 = vsel %vm85_vm1, %v231_v25, 0.0  ;;  %v304_v10 = vsel %vm85_vm1, %v232_v12, 0.0  ;;  %v306_v31 = vsel %vm85_vm1, %v233_v32, 0.0 }
  0x30   :  { %v297_v6 = vadd.f32 %v296_v22, %v295_v45  ;;  %v308_v61 = vsel %vm85_vm1, %v234_v50, 0.0  ;;  %v310_v30 = vsel %vm85_vm1, %v235_v11, 0.0  ;;  %v1090_v9 = vsel %vm85_vm1, %v256_v17, 0.0 }
  0x31   :  { %v134_v23 = vadd.f32 %v962_v15, %v132_v63  ;;  %v1093_v0 = vsel %vm85_vm1, %v257_v19, 0.0  ;;  %v1096_v8 = vsel %vm85_vm1, %v258_v20, 0.0  ;;  %v1099_v12 = vsel %vm85_vm1, %v259_v21, 0.0 }
  0x32   :  { %v299_v36 = vadd.f32 %v298_v3, %v297_v6  ;;  %v1103_v15 = vsel %vm85_vm1, %v260_v59, 0.0  ;;  %v1106_v50 = vsel %vm85_vm1, %v261_v5, 0.0  ;;  %v1109_v32 = vsel %vm85_vm1, %v262_v18, 0.0  ;;  %v1425_v6 = vld [vmem:[#allocation42_spill] sm:$0xff] }
  0x33   :  { %v136_v25 = vadd.f32 %v966_v39, %v134_v23  ;;  %v1112_v17 = vsel %vm85_vm1, %v263_v27, 0.0  ;;  %v1115_v19 = vsel %vm85_vm1, %v264_v28, 0.0  ;;  %v1118_v20 = vsel %vm85_vm1, %v265_v29, 0.0 }
  0x34   :  { %v301_v11 = vadd.f32 %v300_v7, %v299_v36  ;;  %v1122_v21 = vsel %vm85_vm1, %v266_v33, 0.0  ;;  %v1125_v59 = vsel %vm85_vm1, %v267_v35, 0.0  ;;  %v1128_v5 = vsel %vm85_vm1, %v268_v41, 0.0 }
  0x35   :  { %v138_v39 = vadd.f32 %v970_v51, %v136_v25  ;;  %v1131_v27 = vsel %vm85_vm1, %v269_v42, 0.0  ;;  %v1134_v28 = vsel %vm85_vm1, %v270_v46, 0.0  ;;  %v1137_v29 = vsel %vm85_vm1, %v271_v58, 0.0 }
  0x36   :  { %v303_v18 = vadd.f32 %v302_v57, %v301_v11  ;;  %v1141_v33 = vsel %vm85_vm1, %v272_v48, 0.0  ;;  %v1144_v35 = vsel %vm85_vm1, %v273_v37, 0.0  ;;  %v1147_v41 = vsel %vm85_vm1, %v274_v53, 0.0  ;;  %v1428_v11 = vld [vmem:[#allocation44_spill] sm:$0xff] }
  0x37   :  { %v140_v51 = vadd.f32 %v974_v4, %v138_v39  ;;  %v1150_v42 = vsel %vm85_vm1, %v275_v54, 0.0  ;;  %v1153_v46 = vsel %vm85_vm1, %v276_v49, 0.0  ;;  %v1156_v58 = vsel %vm85_vm1, %v277_v60, 0.0  ;;  %v1161_v4 = vld [vmem:[%s1338_s0 + $0xf8] sm:$0xff] }
  0x38   :  { %v305_v22 = vadd.f32 %v304_v10, %v303_v18  ;;  %v1165_v37 = vsel %vm85_vm1, %v278_v13, 0.0  ;;  %v1168_v53 = vsel %vm85_vm1, %v279_v62, 0.0  ;;  %v1171_v54 = vsel %vm85_vm1, %v280_v56, 0.0 }
  0x39   :  { %v142_v48 = vadd.f32 %v980_v44, %v140_v51  ;;  %v1174_v60 = vsel %vm85_vm1, %v281_v34, 0.0  ;;  %v1177_v24 = vsel %vm85_vm1, %v282_v26, 0.0  ;;  %v1180_v45 = vsel %vm85_vm1, %v283_v40, 0.0  ;;  %v1185_v44 = vld [vmem:[%s1338_s0 + $0x100] sm:$0xff]  ;;  %v1429_v51 = vld [vmem:[#allocation4_spill] sm:$0xff] }
  0x3a   :  { %v307_v49 = vadd.f32 %v306_v31, %v305_v22  ;;  %v1189_v62 = vsel %vm85_vm1, %v284_v2, 0.0  ;;  %v1192_v56 = vsel %vm85_vm1, %v285_v47, 0.0  ;;  %v1195_v34 = vsel %vm85_vm1, %v286_v55, 0.0 }
  0x3b   :  { %v144_v13 = vadd.f32 %v984_v43, %v142_v48  ;;  %v147_v26 = vsel %vm85_vm1, %v1161_v4, 0.0  ;;  %v238_v3 = vmul.f32 %v1424_v1, %v1424_v1  ;;  %v312_v43 = vsel %vm85_vm1, %v1008_v14, 0.0  ;;  %v1427_v14 = vld [vmem:[#allocation3_spill] sm:$0xff]  ;;  %v1430_v48 = vld [vmem:[#allocation45_spill] sm:$0xff] }
  0x3c   :  { %v309_v40 = vadd.f32 %v308_v61, %v307_v49  ;;  %v149_v2 = vsel %vm85_vm1, %v1185_v44, 0.0  ;;  %v239_v55 = vmul.f32 %v1425_v6, %v1425_v6  ;;  %v314_v57 = vsel %vm85_vm1, %v1010_v16, 0.0 }
  0x3d   :  { %v146_v63 = vadd.f32 %v988_v38, %v144_v13  ;;  %v1426_v38 = vld [vmem:[#allocation43_spill] sm:$0xff]  ;;  %v316_v61 = vsel %vm85_vm1, %v238_v3, 0.0  ;;  %v242_v16 = vmul.f32 %v1430_v48, %v1430_v48 }
  0x3e   :  { %v311_v47 = vadd.f32 %v310_v30, %v309_v40  ;;  %v240_v23 = vmul.f32 %v1426_v38, %v1426_v38  ;;  %v241_v30 = vmul.f32 %v1428_v11, %v1428_v11  ;;  %v318_v39 = vsel %vm85_vm1, %v239_v55, 0.0 }
  0x3f   :  { %v148_v7 = vadd.f32 %v147_v26, %v146_v63  ;;  %v1431_v26 = vld [vmem:[#allocation5_spill] sm:$0xff]  ;;  %v243_v63 = vmul.f32 %v879_v52, %v879_v52  ;;  %v324_v6 = vsel %vm85_vm1, %v242_v16, 0.0  ;;  %v1436_v52 = vld [vmem:[#allocation8_spill] sm:$0xff] }
  0x40   :  { %v313_v10 = vadd.f32 %v312_v43, %v311_v47  ;;  %v320_v49 = vsel %vm85_vm1, %v240_v23, 0.0  ;;  %v322_v1 = vsel %vm85_vm1, %v241_v30, 0.0  ;;  %v1432_v43 = vld [vmem:[#allocation6_spill] sm:$0xff] }
  0x41   :  { %v150_v31 = vadd.f32 %v149_v2, %v148_v7  ;;  %v1433_v47 = vld [vmem:[#allocation46_spill] sm:$0xff]  ;;  %v326_v23 = vsel %vm85_vm1, %v243_v63, 0.0 }
  0x42   :  { %v315_v36 = vadd.f32 %v314_v57, %v313_v10  ;;  %v244_v7 = vmul.f32 %v1433_v47, %v1433_v47  ;;  %v1434_v57 = vld [vmem:[#allocation7_spill] sm:$0xff] }
  0x43   :  { %v152_v25 = vadd.f32 %v1427_v14, %v150_v31  ;;  %v1435_v31 = vld [vmem:[#allocation47_spill] sm:$0xff]  ;;  %v1437_v14 = vld [vmem:[#allocation48_spill] sm:$0xff] }
  0x44   :  { %v317_v18 = vadd.f32 %v316_v61, %v315_v36  ;;  %v245_v38 = vmul.f32 %v1435_v31, %v1435_v31  ;;  %v328_v11 = vsel %vm85_vm1, %v244_v7, 0.0 }
  0x45   :  { %v154_v22 = vadd.f32 %v1429_v51, %v152_v25  ;;  %v246_v25 = vmul.f32 %v1437_v14, %v1437_v14  ;;  %v1439_v51 = vld [vmem:[#allocation49_spill] sm:$0xff] }
  0x46   :  { %v319_v13 = vadd.f32 %v318_v39, %v317_v18  ;;  %v1438_v39 = vld [vmem:[#allocation9_spill] sm:$0xff]  ;;  %v330_v48 = vsel %vm85_vm1, %v245_v38, 0.0 }
  0x47   :  { %v156_v40 = vadd.f32 %v1431_v26, %v154_v22  ;;  %v247_v22 = vmul.f32 %v1439_v51, %v1439_v51  ;;  %v1441_v26 = vld [vmem:[#allocation50_spill] sm:$0xff]  ;;  %v332_v63 = vsel %vm85_vm1, %v246_v25, 0.0 }
  0x48   :  { %v321_v3 = vadd.f32 %v320_v49, %v319_v13  ;;  %v1440_v49 = vld [vmem:[#allocation10_spill] sm:$0xff] }
  0x49   :  { %v158_v2 = vadd.f32 %v1432_v43, %v156_v40  ;;  %v248_v40 = vmul.f32 %v1441_v26, %v1441_v26  ;;  %v334_v7 = vsel %vm85_vm1, %v247_v22, 0.0 }
  0x4a   :  { %v323_v55 = vadd.f32 %v322_v1, %v321_v3  ;;  %v1442_v3 = vld [vmem:[#allocation11_spill] sm:$0xff] }
  0x4b   :  { %v160_v10 = vadd.f32 %v1434_v57, %v158_v2  ;;  %v1443_v2 = vld [vmem:[#allocation51_spill] sm:$0xff]  ;;  %v336_v38 = vsel %vm85_vm1, %v248_v40, 0.0 }
  0x4c   :  { %v325_v61 = vadd.f32 %v324_v6, %v323_v55  ;;  %v249_v47 = vmul.f32 %v1443_v2, %v1443_v2  ;;  %v1444_v55 = vld [vmem:[#allocation12_spill] sm:$0xff] }
  0x4d   :  { %v162_v36 = vadd.f32 %v1436_v52, %v160_v10  ;;  %v1445_v10 = vld [vmem:[#allocation52_spill] sm:$0xff] }
  0x4e   :  { %v327_v30 = vadd.f32 %v326_v23, %v325_v61  ;;  %v250_v31 = vmul.f32 %v1445_v10, %v1445_v10  ;;  %v1446_v61 = vld [vmem:[#allocation13_spill] sm:$0xff]  ;;  %v338_v25 = vsel %vm85_vm1, %v249_v47, 0.0 }
  0x4f   :  { %v164_v18 = vadd.f32 %v1438_v39, %v162_v36  ;;  %v1447_v36 = vld [vmem:[#allocation53_spill] sm:$0xff] }
  0x50   :  { %v329_v16 = vadd.f32 %v328_v11, %v327_v30  ;;  %v251_v14 = vmul.f32 %v1447_v36, %v1447_v36  ;;  %v1448_v30 = vld [vmem:[#allocation14_spill] sm:$0xff]  ;;  %v340_v22 = vsel %vm85_vm1, %v250_v31, 0.0 }
  0x51   :  { %v166_v13 = vadd.f32 %v1440_v49, %v164_v18  ;;  %v1449_v18 = vld [vmem:[#allocation54_spill] sm:$0xff] }
  0x52   :  { %v331_v1 = vadd.f32 %v330_v48, %v329_v16  ;;  %v252_v51 = vmul.f32 %v1449_v18, %v1449_v18  ;;  %v1450_v16 = vld [vmem:[#allocation15_spill] sm:$0xff]  ;;  %v342_v40 = vsel %vm85_vm1, %v251_v14, 0.0  ;;  %v1454_v31 = vld [vmem:[#allocation18_spill] sm:$0xff] }
  0x53   :  { %v168_v43 = vadd.f32 %v1442_v3, %v166_v13  ;;  %v1451_v13 = vld [vmem:[#allocation55_spill] sm:$0xff] }
  0x54   :  { %v333_v6 = vadd.f32 %v332_v63, %v331_v1  ;;  %v253_v26 = vmul.f32 %v1451_v13, %v1451_v13  ;;  %v1452_v1 = vld [vmem:[#allocation16_spill] sm:$0xff]  ;;  %v344_v2 = vsel %vm85_vm1, %v252_v51, 0.0  ;;  %v1458_v51 = vld [vmem:[#allocation22_spill] sm:$0xff] }
  0x55   :  { %v170_v57 = vadd.f32 %v1444_v55, %v168_v43  ;;  %v254_v43 = vmul.f32 %v1161_v4, %v1161_v4  ;;  %v255_v55 = vmul.f32 %v1185_v44, %v1185_v44 }
  0x56   :  { %v335_v23 = vadd.f32 %v334_v7, %v333_v6  ;;  %v1453_v7 = vld [vmem:[#allocation17_spill] sm:$0xff] }
  0x57   :  { %v172_v52 = vadd.f32 %v1446_v61, %v170_v57  ;;  %v346_v57 = vsel %vm85_vm1, %v253_v26, 0.0  ;;  %v350_v4 = vsel %vm85_vm1, %v255_v55, 0.0  ;;  %v1460_v26 = vld [vmem:[#allocation27_spill] sm:$0xff]  ;;  %v1464_v55 = vld [vmem:[#allocation34_spill] sm:$0xff] }
  0x58   :  { %v337_v11 = vadd.f32 %v336_v38, %v335_v23  ;;  %v348_v23 = vsel %vm85_vm1, %v254_v43, 0.0 }
  0x59   :  { %v174_v39 = vadd.f32 %v1448_v30, %v172_v52  ;;  %v1455_v52 = vld [vmem:[#allocation19_spill] sm:$0xff] }
  0x5a   :  { %v339_v48 = vadd.f32 %v338_v25, %v337_v11  ;;  %v1456_v25 = vld [vmem:[#allocation20_spill] sm:$0xff] }
  0x5b   :  { %v176_v49 = vadd.f32 %v1450_v16, %v174_v39  ;;  %v1457_v39 = vld [vmem:[#allocation21_spill] sm:$0xff]  ;;  %v1459_v16 = vld [vmem:[#allocation23_spill] sm:$0xff] }
  0x5c   :  { %v341_v63 = vadd.f32 %v340_v22, %v339_v48 }
  0x5d   :  { %v178_v3 = vadd.f32 %v1452_v1, %v176_v49  ;;  %v1461_v1 = vld [vmem:[#allocation28_spill] sm:$0xff] }
  0x5e   :  { %v343_v47 = vadd.f32 %v342_v40, %v341_v63 }
  0x5f   :  { %v180_v6 = vadd.f32 %v1453_v7, %v178_v3  ;;  %v1463_v7 = vld [vmem:[#allocation33_spill] sm:$0xff] }
  0x60   :  { %v345_v10 = vadd.f32 %v344_v2, %v343_v47  ;;  %v1462_v2 = vld [vmem:[#allocation29_spill] sm:$0xff] }
  0x61   :  { %v182_v38 = vadd.f32 %v1454_v31, %v180_v6 }
  0x62   :  { %v347_v61 = vadd.f32 %v346_v57, %v345_v10  ;;  %v1465_v10 = vld [vmem:[#allocation35_spill] sm:$0xff] }
  0x63   :  { %v184_v36 = vadd.f32 %v1455_v52, %v182_v38  ;;  %v1466_v38 = vld [vmem:[#allocation37_spill] sm:$0xff] }
  0x64   :  { %v349_v14 = vadd.f32 %v348_v23, %v347_v61  ;;  %v1467_v61 = vld [vmem:[#allocation38_spill] sm:$0xff] }
  0x65   :  { %v186_v11 = vadd.f32 %v1456_v25, %v184_v36  ;;  %v1468_v36 = vld [vmem:[#allocation39_spill] sm:$0xff] }
  0x66   :  { %v351_v30 = vadd.f32 %v350_v4, %v349_v14  ;;  %v1469_v14 = vld [vmem:[#allocation40_spill] sm:$0xff] }
  0x67   :  { %v188_v18 = vadd.f32 %v1457_v39, %v186_v11 }
  0x68   :  { %v353_v44 = vadd.f32 %v1090_v9, %v351_v30 }
  0x69   :  { %v190_v22 = vadd.f32 %v1458_v51, %v188_v18 }
  0x6a   :  { %v355_v48 = vadd.f32 %v1093_v0, %v353_v44 }
  0x6b   :  { %v192_v49 = vadd.f32 %v1459_v16, %v190_v22  ;;  %v84_v22 = vld [vmem:[#allocation2] sm:$0x1] }
  0x6c   :  { %v357_v13 = vadd.f32 %v1096_v8, %v355_v48 }
  0x6d   :  { %v194_v40 = vadd.f32 %v1460_v26, %v192_v49 }
  0x6e   :  { %v359_v63 = vadd.f32 %v1099_v12, %v357_v13 }
  0x6f   :  { %v196_v3 = vadd.f32 %v1461_v1, %v194_v40 }
  0x70   :  { %v361_v43 = vadd.f32 %v1103_v15, %v359_v63 }
  0x71   :  { %v198_v47 = vadd.f32 %v1462_v2, %v196_v3 }
  0x72   :  { %v363_v9 = vadd.f32 %v1106_v50, %v361_v43  ;;  %v222_v43 = vld [vmem:[#allocation2 + $0x1] sm:$0x1] }
  0x73   :  { %v200_v6 = vadd.f32 %v1463_v7, %v198_v47 }
  0x74   :  { %v365_v0 = vadd.f32 %v1109_v32, %v363_v9 }
  0x75   :  { %v202_v57 = vadd.f32 %v1464_v55, %v200_v6  ;;  %v436_v6 = vld [vmem:[%s1340_s2] sm:$0x1] }
  0x76   :  { %v367_v8 = vadd.f32 %v1112_v17, %v365_v0 }
  0x77   :  { %v204_v31 = vadd.f32 %v1465_v10, %v202_v57 }
  0x78   :  { %v369_v12 = vadd.f32 %v1115_v19, %v367_v8 }
  0x79   :  { %v206_v23 = vadd.f32 %v1466_v38, %v204_v31 }
  0x7a   :  { %v371_v15 = vadd.f32 %v1118_v20, %v369_v12 }
  0x7b   :  { %v208_v52 = vadd.f32 %v1467_v61, %v206_v23 }
  0x7c   :  { %v373_v50 = vadd.f32 %v1122_v21, %v371_v15 }
  0x7d   :  { %v210_v4 = vadd.f32 %v1468_v36, %v208_v52 }
  0x7e   :  { %v375_v32 = vadd.f32 %v1125_v59, %v373_v50 }
  0x7f   :  { %v212_v25 = vadd.f32 %v1469_v14, %v210_v4 }
  0x80   :  { %v377_v17 = vadd.f32 %v1128_v5, %v375_v32 }
  0x81   :  { %v213_v11 = vrot.slane %v212_v25, 4 }
  0x82   :  { %v379_v30 = vadd.f32 %v1131_v27, %v377_v17 }
  0x83   :  { %v214_v19 = vadd.f32 %v213_v11, %v212_v25 }
  0x84   :  { %v381_v39 = vadd.f32 %v1134_v28, %v379_v30 }
  0x85   :  { %v215_v18 = vrot.slane %v214_v19, 2 }
  0x86   :  { %v383_v20 = vadd.f32 %v1137_v29, %v381_v39 }
  0x87   :  { %v216_v44 = vadd.f32 %v215_v18, %v214_v19 }
  0x88   :  { %v385_v21 = vadd.f32 %v1141_v33, %v383_v20 }
  0x89   :  { %v217_v51 = vrot.slane %v216_v44, 1 }
  0x8a   :  { %v387_v59 = vadd.f32 %v1144_v35, %v385_v21 }
  0x8b   :  { %v218_v48 = vadd.f32 %v217_v51, %v216_v44 }
  0x8c   :  { %v389_v5 = vadd.f32 %v1147_v41, %v387_v59 }
  0x8d   :  { %v219_v16 = vadd.f32 %v218_v48, %v84_v22 }
  0x8e   :  { %v391_v27 = vadd.f32 %v1150_v42, %v389_v5 }
  0x8f   :  { %221 = vst.msk [vmem:[#allocation2] sm:$0x1] %vm220_vm2, %v219_v16 }
  0x90   :  { %v393_v28 = vadd.f32 %v1153_v46, %v391_v27 }
  0x92   :  { %v395_v29 = vadd.f32 %v1156_v58, %v393_v28 }
  0x94   :  { %v397_v49 = vadd.f32 %v1165_v37, %v395_v29 }
  0x96   :  { %v399_v33 = vadd.f32 %v1168_v53, %v397_v49  ;;  %v425_v2 = vld [vmem:[#allocation2] sm:$0x1] }
  0x98   :  { %v401_v13 = vadd.f32 %v1171_v54, %v399_v33 }
  0x9a   :  { %v403_v35 = vadd.f32 %v1174_v60, %v401_v13  ;;  %v426_v60 = vmul.f32 0.001953125, %v425_v2 }
  0x9c   :  { %v405_v26 = vadd.f32 %v1177_v24, %v403_v35  ;;  %v429_v24 = vmul.f32 %v426_v60, %v426_v60 }
  0x9e   :  { %v407_v41 = vadd.f32 %v1180_v45, %v405_v26 }
  0xa0   :  { %v409_v42 = vadd.f32 %v1189_v62, %v407_v41 }
  0xa2   :  { %v411_v40 = vadd.f32 %v1192_v56, %v409_v42  ;;  %v431_v56 = vld [vmem:[%s1339_s1] sm:$0x1] }
  0xa4   :  { %v413_v46 = vadd.f32 %v1195_v34, %v411_v40 }
  0xa6   :  { %v414_v63 = vrot.slane %v413_v46, 4 }
  0xa8   :  { %v415_v58 = vadd.f32 %v414_v63, %v413_v46 }
  0xaa   :  { %v416_v1 = vrot.slane %v415_v58, 2 }
  0xac   :  { %v417_v37 = vadd.f32 %v416_v1, %v415_v58 }
  0xae   :  { %v418_v3 = vrot.slane %v417_v37, 1 }
  0xb0   :  { %v419_v53 = vadd.f32 %v418_v3, %v417_v37 }
  0xb2   :  { %v420_v54 = vadd.f32 %v419_v53, %v222_v43 }
  0xb4   :  { %421 = vst.msk [vmem:[#allocation2 + $0x1] sm:$0x1] %vm220_vm2, %v420_v54 }
  0xbb   :  { %v427_v45 = vld [vmem:[#allocation2 + $0x1] sm:$0x1] }
  0xbc   :  { %v428_v47 = vmul.f32 0.001953125, %v427_v45 }
  0xbe   :  { %v430_v62 = vsub.f32 %v428_v47, %v429_v24 }
  0xc0   :  { %v432_v9 = vadd.f32 1e-05, %v430_v62 }
  0xc2   :  { %445 = vrsqrt.f32 %v432_v9 }
  0xcc   :  { %v446_v34 = vpop.eup %445 }
  0xcd   :  { %v434_v7 = vmul.f32 %v446_v34, %v431_v56 }
  0xcf   :  { %435 = vst.msk [vmem:[%s1341_s3] sm:$0x1] %vm220_vm2, %v434_v7  ;;  %v437_v0 = vmul.f32 %v434_v7, %v426_v60 }
  0xd1   :  { %v438_v55 = vsub.f32 %v436_v6, %v437_v0 }
  0xd3   :  { %439 = vst.msk [vmem:[%s1341_s3 + $0x1] sm:$0x1] %vm220_vm2, %v438_v55 }

// kernel: meta_network_block_forward.7
= control target key start
LH: loop header
LB: loop body
LE: loop exit
PB: predicated region body
PF: predicated region fallthrough
CT: control target
= control target key end

     0   :  { %s1187_s24 = smov 0   ;;  %s1369_s0 = inlined_call_operand.vmem [shape: bf16[2,8,1,8,8], index: 0, kind: input, shape index: {}]   ;;  %s1370_s1 = inlined_call_operand.vmem [shape: f32[2,8], index: 1, kind: input, shape index: {}]   ;;  %s1371_s2 = inlined_call_operand.vmem [shape: bf16[3,24,8], index: 2, kind: input, shape index: {}]   ;;  %s1372_s3 = inlined_call_operand.vmem [shape: bf16[2,64,8], index: 3, kind: input, shape index: {}]   ;;  %s1373_s4 = inlined_call_operand.vmem [shape: f32[1,8], index: 4, kind: input, shape index: {}]   ;;  %s1374_s5 = inlined_call_operand.vmem [shape: f32[1,8], index: 5, kind: input, shape index: {}]   ;;  %s1375_s6 = inlined_call_operand.vmem [shape: f32[2,64,8], index: 6, kind: output, shape index: {0}]   ;;  %s1376_s7 = inlined_call_operand.vmem [shape: f32[2,8], index: 7, kind: output, shape index: {1}]  }
   0x1 LB: > { %s1193_s25 = sadd.s32 4294967295, %s1141_s24   ;;  %p959_p0 = scmp.ge.s32.totalorder %s1141_s24, 1  ;;  %s1141_s24 = sphi %s1187_s24, %s18_s24  }
   0x2   : > { %p245_p1 = scmp.lt.s32.totalorder %s1141_s24, 3 }
   0x4   : > { %p246_p2 = pnand %p959_p0, %p245_p1 }
   0x5   : > { %p282_p3 = scmp.lt.s32.totalorder (!%p246_p2), %s1193_s25, 1  ;;  %p966_p4 = scmp.ne.s32.totalorder (!%p246_p2), %s1193_s25, 0 }
   0x6   : > { %249 = sbr.rel (%p246_p2) target bundleno = 470 (0x1d6), region = 44 }
   0xd   : > { %s283_s26 = scalar_select %p282_p3, %s1193_s25, 1 }
   0xe   : > { %301 = sbr.rel (%p966_p4) target bundleno = 21 (0x15), region = 48  ;;  %vm302_vm0 = vcmask (!%p966_p4), 58368   ;;  %v1143_v0 = vmov (!%p966_p4), 0.0  }
   0xf   : > { %s996_s27 = sshll.u32 %s283_s26, 5  ;;  %s998_s28 = sshll.u32 %s283_s26, 6  ;;  %303 = vst.msk [vmem:[#allocation3] sm:$0x3] (!%p966_p4), %vm302_vm0, %v1143_v0 }
  0x10   : > { %s286_s8 = scalar_lea.vmem %s1369_s0, %s996_s27  ;;  %s1205_s11 = scalar_lea.vmem %s1372_s3, %s996_s27 }
  0x11   : > { %s1210_s14 = scalar_lea.vmem %s1375_s6, %s998_s28 }
  0x15 PF: > { %v967_v1 = vld [vmem:[%s1370_s1] ss:$0 sm:$0xff]  ;;  %v968_v2 = vld [vmem:[%s1370_s1 + $0x1] ss:$0 sm:$0xff]  ;;  %v1031_v3 = vld [vmem:[%s286_s8 + $0x8] sm:$0xff]   ;;  %vm366_vm1 = vcmask 63488  }
  0x16   : > { %v1005_v4 = vunpack.c.l.bf16 %v1031_v3  ;;  %v1000_v5 = vld [vmem:[%s286_s8] sm:$0xff]   ;;  %v1006_v6 = vunpack.c.h.bf16 %v1031_v3  ;;  %v1032_v7 = vld [vmem:[%s286_s8 + $0x10] sm:$0xff]   ;;  %v1033_v8 = vld [vmem:[%s286_s8 + $0x18] sm:$0xff]   ;;  %s1144_s19 = smov 8   ;;  %vm304_vm2 = vcmask 195584   ;;  %v1145_v41 = vmov 0.0  }
  0x17   : > { %v1001_v9 = vunpack.c.l.bf16 %v1000_v5  ;;  %v1002_v10 = vunpack.c.h.bf16 %v1000_v5  ;;  %v1010_v11 = vunpack.c.h.bf16 %v1032_v7  ;;  %v1009_v12 = vunpack.c.l.bf16 %v1032_v7  ;;  %v1127_v39 = vld [vmem:[%s1371_s2 + $0xc] sm:$0xff]   ;;  %v1226_v40 = vld [vmem:[%s1371_s2] sm:$0xff]   ;;  %308 = vst.msk [vmem:[#allocation2 + $0x18] sm:$0xff] %vm304_vm2, %v1145_v41  ;;  %305 = vst.msk [vmem:[#allocation2] sm:$0xff] %vm304_vm2, %v1145_v41  ;;  %s1146_s30 = smov 16   ;;  %p993_p5 = scmp.ne.s32.totalorder %s1193_s25, 1 }
  0x18   : > { %v339_v13 = vmul.f32 %v1005_v4, %v967_v1  ;;  %v340_v14 = vmul.f32 %v1006_v6, %v967_v1  ;;  %v1014_v15 = vunpack.c.h.bf16 %v1033_v8  ;;  %v1013_v16 = vunpack.c.l.bf16 %v1033_v8  ;;  %306 = vst.msk [vmem:[#allocation2 + $0x8] sm:$0xff] %vm304_vm2, %v1145_v41  ;;  %307 = vst.msk [vmem:[#allocation2 + $0x10] sm:$0xff] %vm304_vm2, %v1145_v41  ;;  %1055 = vmatprep.subr.bf16.mxu1 %v1127_v39  ;;  %v1129_v42 = vld [vmem:[%s1371_s2 + $0x14] ss:$0 sps:$4 sm:$0xff]   ;;  %v1256_v43 = vld [vmem:[%s1371_s2 + $0x8] ss:$0 sps:$4 sm:$0xff]  }
  0x19   : > { %v337_v17 = vmul.f32 %v1001_v9, %v967_v1  ;;  %v338_v18 = vmul.f32 %v1002_v10, %v967_v1  ;;  %v342_v19 = vmul.f32 %v1010_v11, %v967_v1  ;;  %v341_v20 = vmul.f32 %v1009_v12, %v967_v1  ;;  %309 = vst.msk [vmem:[#allocation2 + $0x20] sm:$0xff] %vm304_vm2, %v1145_v41  ;;  %v1131_v46 = vld [vmem:[%s1371_s2 + $0x18] sm:$0xff]   ;;  %v1132_v4 = vld [vmem:[%s1371_s2 + $0x20] ss:$0 sps:$4 sm:$0xff]  }
  0x1a   : > { %v351_v21 = vadd.f32 %v968_v2, %v339_v13  ;;  %v352_v22 = vadd.f32 %v968_v2, %v340_v14  ;;  %v344_v23 = vmul.f32 %v1014_v15, %v967_v1  ;;  %v343_v24 = vmul.f32 %v1013_v16, %v967_v1  ;;  %310 = vst.msk [vmem:[#allocation2 + $0x28] sm:$0xff] %vm304_vm2, %v1145_v41 }
  0x1b   : > { %v349_v25 = vadd.f32 %v968_v2, %v337_v17  ;;  %v350_v26 = vadd.f32 %v968_v2, %v338_v18  ;;  %v354_v27 = vadd.f32 %v968_v2, %v342_v19  ;;  %v353_v28 = vadd.f32 %v968_v2, %v341_v20  ;;  %311 = vst.msk [vmem:[#allocation2 + $0x30] sm:$0xff] %vm304_vm2, %v1145_v41 }
  0x1c   : > { %v359_v29 = vmax.f32 %v351_v21, 0.0  ;;  %v360_v30 = vmax.f32 %v352_v22, 0.0  ;;  %v356_v31 = vadd.f32 %v968_v2, %v344_v23  ;;  %v355_v32 = vadd.f32 %v968_v2, %v343_v24  ;;  %312 = vst.msk [vmem:[#allocation2 + $0x38] sm:$0xff] %vm304_vm2, %v1145_v41  ;;  %313 = vst.msk [vmem:[#allocation2 + $0x40] sm:$0xff] %vm304_vm2, %v1145_v41  ;;  %1067 = vmatprep.subr.bf16.mxu0 %v1226_v40  ;;  %v1034_v24 = vld [vmem:[%s1205_s11 + $0x8] sm:$0xff]  }
  0x1d   : > { %v357_v33 = vmax.f32 %v349_v25, 0.0  ;;  %v358_v34 = vmax.f32 %v350_v26, 0.0  ;;  %v362_v35 = vmax.f32 %v354_v27, 0.0  ;;  %v361_v36 = vmax.f32 %v353_v28, 0.0  ;;  %314 = vst.msk [vmem:[#allocation2 + $0x48] sm:$0xff] %vm304_vm2, %v1145_v41  ;;  %1056 = vmatpush3.bf16.msra.mxu1 %v1127_v39  ;;  %1068 = vmatpush3.bf16.msra.mxu0 %v1226_v40  ;;  %v1016_v25 = vld [vmem:[%s1205_s11] sm:$0xff]  }
  0x1e   : > { %387 = vrot.lane.b32.xlu1 %v359_v29, %s1144_s19  ;;  %v364_v37 = vmax.f32 %v356_v31, 0.0  ;;  %v363_v38 = vmax.f32 %v355_v32, 0.0  ;;  %369 = vst.msk [vmem:[#allocation2 + $0x19] sm:$0x7f] %vm366_vm1, %v359_v29  ;;  %370 = vst.msk [vmem:[#allocation2 + $0x21] sm:$0x7f] %vm366_vm1, %v360_v30  ;;  %v1021_v26 = vunpack.c.l.bf16 %v1034_v24  ;;  %v1017_v28 = vunpack.c.l.bf16 %v1016_v25 }
  0x1f   : > { %383 = vrot.lane.b32.xlu0 %v357_v33, %s1144_s19  ;;  %367 = vst.msk [vmem:[#allocation2 + $0x9] sm:$0x7f] %vm366_vm1, %v357_v33  ;;  %368 = vst.msk [vmem:[#allocation2 + $0x11] sm:$0x7f] %vm366_vm1, %v358_v34  ;;  %vm501_vm3 = vcmask 1043456   ;;  %vm407_vm4 = vcmask 130112   ;;  %v1022_v31 = vunpack.c.h.bf16 %v1034_v24 }
  0x20   : > { %371 = vst.msk [vmem:[#allocation2 + $0x29] sm:$0x7f] %vm366_vm1, %v361_v36  ;;  %372 = vst.msk [vmem:[#allocation2 + $0x31] sm:$0x7f] %vm366_vm1, %v362_v35  ;;  %1111 = vmatprep.subr.msk.bf16.mxu1 %vm501_vm3, %v1129_v42  ;;  %1112 = vmatprep.subr.msk.bf16.mxu0 %vm501_vm3, %v1256_v43  ;;  %v503_v44 = vsel %vm501_vm3, %v1129_v42, 0  ;;  %v1265_v45 = vsel %vm501_vm3, %v1256_v43, 0 }
  0x21   : > { %373 = vst.msk [vmem:[#allocation2 + $0x39] sm:$0x7f] %vm366_vm1, %v363_v38  ;;  %374 = vst.msk [vmem:[#allocation2 + $0x41] sm:$0x7f] %vm366_vm1, %v364_v37  ;;  %1058 = vmatpush3.bf16.msra.mxu1 %v503_v44  ;;  %1070 = vmatpush3.bf16.msra.mxu0 %v1265_v45  ;;  %vm440_vm5 = vcmask 195713   ;;  %v449_v55 = vld [vmem:[#allocation2] sm:$0xff] }
  0x22   : > { %389 = vrot.lane.b32.xlu1 %v360_v30, %s1144_s19  ;;  %1091 = vmatprep.subr.bf16.mxu1 %v1226_v40  ;;  %v698_v7 = vsel %vm501_vm3, %v1132_v4, 0  ;;  %vm798_vm6 = vcmask 64512   ;;  %vm821_vm7 = vcmask 57344  }
  0x23   : > { %385 = vrot.lane.b32.xlu0 %v358_v34, %s1144_s19  ;;  %1079 = vmatprep.subr.bf16.mxu0 %v1131_v46 }
  0x24   : > { %v667_v18 = vld [vmem:[#allocation2 + $0x48] sm:$0xff] }
  0x26   : > { %418 = vrot.lane.b32.xlu1 %v358_v34, %s1146_s30  ;;  %v1018_v34 = vunpack.c.h.bf16 %v1016_v25 }
  0x27   : > { %416 = vrot.lane.b32.xlu0 %v357_v33, %s1146_s30 }
  0x2a   : > { %422 = vrot.lane.b32.xlu1 %v360_v30, %s1146_s30 }
  0x2b   : > { %420 = vrot.lane.b32.xlu0 %v359_v29, %s1146_s30 }
  0x2e   : > { %393 = vrot.lane.b32.xlu1 %v362_v35, %s1144_s19 }
  0x2f   : > { %391 = vrot.lane.b32.xlu0 %v361_v36, %s1144_s19 }
  0x32   : > { %397 = vrot.lane.b32.xlu1 %v364_v37, %s1144_s19 }
  0x33   : > { %395 = vrot.lane.b32.xlu0 %v363_v38, %s1144_s19 }
  0x36   : > { %426 = vrot.lane.b32.xlu1 %v362_v35, %s1146_s30 }
  0x37   : > { %424 = vrot.lane.b32.xlu0 %v361_v36, %s1146_s30 }
  0x3a   : > { %430 = vrot.lane.b32.xlu1 %v364_v37, %s1146_s30 }
  0x3b   : > { %428 = vrot.lane.b32.xlu0 %v363_v38, %s1146_s30 }
  0x90   : > { %v388_v47 = vpop.permute.xlu1 %387 }
  0x91   : > { %410 = vst.msk [vmem:[#allocation2 + $0x18] sm:$0xff] %vm407_vm4, %v388_v47  ;;  %v384_v48 = vpop.permute.xlu0 %383 }
  0x92   : > { %408 = vst.msk [vmem:[#allocation2 + $0x8] sm:$0xff] %vm407_vm4, %v384_v48 }
  0x94   : > { %v390_v49 = vpop.permute.xlu1 %389 }
  0x95   : > { %411 = vst.msk [vmem:[#allocation2 + $0x20] sm:$0xff] %vm407_vm4, %v390_v49  ;;  %v386_v50 = vpop.permute.xlu0 %385 }
  0x96   : > { %409 = vst.msk [vmem:[#allocation2 + $0x10] sm:$0xff] %vm407_vm4, %v386_v50 }
  0x98   : > { %v419_v51 = vpop.permute.xlu1 %418 }
  0x99   : > { %442 = vst.msk [vmem:[#allocation2 + $0xf] sm:$0xfe] %vm440_vm5, %v419_v51  ;;  %v417_v52 = vpop.permute.xlu0 %416 }
  0x9a   : > { %441 = vst.msk [vmem:[#allocation2 + $0x7] sm:$0xfe] %vm440_vm5, %v417_v52 }
  0x9c   : > { %v423_v53 = vpop.permute.xlu1 %422 }
  0x9d   : > { %444 = vst.msk [vmem:[#allocation2 + $0x1f] sm:$0xfe] %vm440_vm5, %v423_v53  ;;  %v421_v54 = vpop.permute.xlu0 %420 }
  0x9e   : > { %443 = vst.msk [vmem:[#allocation2 + $0x17] sm:$0xfe] %vm440_vm5, %v421_v54 }
  0xa0   : > { %v394_v56 = vpop.permute.xlu1 %393  ;;  %v465_v57 = vld [vmem:[#allocation2 + $0x10] sm:$0xff] }
  0xa1   : > { %413 = vst.msk [vmem:[#allocation2 + $0x30] sm:$0xff] %vm407_vm4, %v394_v56  ;;  %v392_v58 = vpop.permute.xlu0 %391  ;;  %v464_v59 = vld [vmem:[#allocation2 + $0x8] sm:$0xff] }
  0xa2   : > { %412 = vst.msk [vmem:[#allocation2 + $0x28] sm:$0xff] %vm407_vm4, %v392_v58  ;;  %v472_v60 = vpack.c.bf16 %v465_v57, %v464_v59  ;;  %v457_v61 = vpack.c.bf16 %v464_v59, %v449_v55 }
  0xa4   : > { %1059 = vmatprep.mubr.msk.bf16.mxu1 %vm304_vm2, %v472_v60  ;;  %1071 = vmatprep.mubr.msk.bf16.mxu0 %vm304_vm2, %v457_v61  ;;  %v398_v62 = vpop.permute.xlu1 %397  ;;  %v467_v63 = vld [vmem:[#allocation2 + $0x20] sm:$0xff]  ;;  %v1036_v60 = vld [vmem:[%s1205_s11 + $0x18] sm:$0xff]  }
  0xa5   : > { %415 = vst.msk [vmem:[#allocation2 + $0x40] sm:$0xff] %vm407_vm4, %v398_v62  ;;  %v396_v0 = vpop.permute.xlu0 %395  ;;  %v466_v1 = vld [vmem:[#allocation2 + $0x18] sm:$0xff]  ;;  %v1035_v62 = vld [vmem:[%s1205_s11 + $0x10] sm:$0xff]  }
  0xa6   : > { %414 = vst.msk [vmem:[#allocation2 + $0x38] sm:$0xff] %vm407_vm4, %v396_v0  ;;  %v473_v2 = vpack.c.bf16 %v467_v63, %v466_v1  ;;  %v458_v3 = vpack.c.bf16 %v466_v1, %v465_v57  ;;  %v1029_v1 = vunpack.c.l.bf16 %v1036_v60 }
  0xa8   : > { %1060 = vmatmul.mubr.msk.bf16.vlgmr.msra.gmra.mrb[0].mxu1 %vm304_vm2, %v473_v2  ;;  %1072 = vmatmul.mubr.msk.bf16.vlgmr.msra.gmra.mrb[0].mxu0 %vm304_vm2, %v458_v3  ;;  %v427_v5 = vpop.permute.xlu1 %426 }
  0xa9   : > { %446 = vst.msk [vmem:[#allocation2 + $0x2f] sm:$0xfe] %vm440_vm5, %v427_v5  ;;  %v425_v6 = vpop.permute.xlu0 %424  ;;  %1083 = vmatprep.mubr.msk.bf16.mxu0 %vm304_vm2, %v458_v3  ;;  %1080 = vmatpush3.bf16.msra.mxu0 %v1131_v46 }
  0xaa   : > { %445 = vst.msk [vmem:[#allocation2 + $0x27] sm:$0xfe] %vm440_vm5, %v425_v6  ;;  %1093 = vmatpush3.bf16.msra.mxu1 %v1226_v40  ;;  %1114 = vmatprep.subr.msk.bf16.mxu0 %vm501_vm3, %v1132_v4  ;;  %v1025_v4 = vunpack.c.l.bf16 %v1035_v62 }
  0xab   : > { %1113 = vmatprep.subr.msk.bf16.mxu1 %vm501_vm3, %v1256_v43 }
  0xac   : > { %v431_v8 = vpop.permute.xlu1 %430 }
  0xad   : > { %448 = vst.msk [vmem:[#allocation2 + $0x3f] sm:$0xfe] %vm440_vm5, %v431_v8  ;;  %v429_v9 = vpop.permute.xlu0 %428  ;;  %1082 = vmatpush3.bf16.msra.mxu0 %v698_v7  ;;  %v1030_v7 = vunpack.c.h.bf16 %v1036_v60 }
  0xae   : > { %447 = vst.msk [vmem:[#allocation2 + $0x37] sm:$0xfe] %vm440_vm5, %v429_v9  ;;  %1094 = vmatpush3.bf16.msra.mxu1 %v1265_v45 }
  0xb0   : > { %v469_v10 = vld [vmem:[#allocation2 + $0x30] sm:$0xff] }
  0xb1   : > { %v468_v11 = vld [vmem:[#allocation2 + $0x28] sm:$0xff] }
  0xb2   : > { %v474_v12 = vpack.c.bf16 %v469_v10, %v468_v11  ;;  %v669_v13 = vpack.c.bf16 %v468_v11, %v467_v63 }
  0xb4   : > { %1063 = vmatprep.mubr.msk.bf16.mxu1 %vm304_vm2, %v474_v12  ;;  %1084 = vmatmul.mubr.msk.bf16.vlgmr.msra.gmra.mrb[0].mxu0 %vm304_vm2, %v669_v13  ;;  %v471_v14 = vld [vmem:[#allocation2 + $0x40] sm:$0xff] }
  0xb5   : > { %v470_v15 = vld [vmem:[#allocation2 + $0x38] sm:$0xff]  ;;  %v671_v19 = vpack.c.bf16 %v667_v18, %v471_v14 }
  0xb6   : > { %v475_v16 = vpack.c.bf16 %v471_v14, %v470_v15  ;;  %v670_v17 = vpack.c.bf16 %v470_v15, %v469_v10  ;;  %v1026_v10 = vunpack.c.h.bf16 %v1035_v62 }
  0xb8   : > { %1064 = vmatmul.mubr.msk.bf16.gmra.mrb[4].mxu1 %vm304_vm2, %v475_v16  ;;  %1087 = vmatprep.mubr.msk.bf16.mxu0 %vm304_vm2, %v670_v17 }
  0xb9   : > { %1075 = vmatprep.mubr.msk.bf16.mxu1 %vm304_vm2, %v669_v13 }
  0xbc   : > { %1088 = vmatmul.mubr.msk.bf16.gmra.mrb[4].mxu0 %vm304_vm2, %v671_v19 }
  0xc4   : > { %1076 = vmatmul.mubr.msk.bf16.vlgmr.msra.gmra.mrb[4].mxu1 %vm304_vm2, %v670_v17 }
 0x17b   : > { %v1061_v20 = vpop.f32.mrb[0].mxu1 }
 0x17c   : > { %v539_v21 = vpop.f32.mrb[1].mxu1 }
 0x17d   : > { %v1062_v22 = vpop.f32.mrb[2].mxu1 }
 0x17e   : > { %v542_v23 = vpop.f32.mrb[3].mxu1 }
 0x187   : > { %v1085_v27 = vpop.f32.mrb[0].mxu0 }
 0x188   : > { %v1095_v29 = vadd.f32 %v1085_v27, %v1061_v20  ;;  %v734_v30 = vpop.f32.mrb[1].mxu0 }
 0x189   : > { %v1096_v32 = vadd.f32 %v734_v30, %v539_v21  ;;  %v1086_v33 = vpop.f32.mrb[2].mxu0 }
 0x18a   : > { %v791_v35 = vadd.f32 %v1095_v29, %v1021_v26  ;;  %v1097_v36 = vadd.f32 %v1086_v33, %v1062_v22  ;;  %v737_v37 = vpop.f32.mrb[3].mxu0 }
 0x18b   : > { %v789_v38 = vadd.f32 %v1096_v32, %v1017_v28  ;;  %v1098_v39 = vadd.f32 %v737_v37, %v542_v23 }
 0x18c   : > { %857 = vst.msk [vmem:[%s1210_s14 + $0x10] sm:$0xff] %vm798_vm6, %v791_v35  ;;  %v792_v40 = vadd.f32 %v1097_v36, %v1022_v31  ;;  %v826_v43 = vmul.f32 %v791_v35, %v791_v35  ;;  %v802_v50 = vsel %vm798_vm6, %v791_v35, 0.0 }
 0x18d   : > { %v824_v41 = vmul.f32 %v789_v38, %v789_v38  ;;  %855 = vst.msk [vmem:[%s1210_s14] sm:$0xff] %vm798_vm6, %v789_v38  ;;  %v790_v42 = vadd.f32 %v1098_v39, %v1018_v34  ;;  %v799_v44 = vsel %vm798_vm6, %v789_v38, 0.0 }
 0x18e   : > { %858 = vst.msk [vmem:[%s1210_s14 + $0x18] sm:$0xff] %vm798_vm6, %v792_v40  ;;  %v827_v52 = vmul.f32 %v792_v40, %v792_v40  ;;  %v835_v58 = vsel %vm798_vm6, %v826_v43, 0.0  ;;  %v804_v59 = vsel %vm798_vm6, %v792_v40, 0.0 }
 0x18f   : > { %v800_v45 = vsel %vm798_vm6, %v790_v42, 0.0  ;;  %v825_v46 = vmul.f32 %v790_v42, %v790_v42  ;;  %856 = vst.msk [vmem:[%s1210_s14 + $0x8] sm:$0xff] %vm798_vm6, %v790_v42  ;;  %v1089_v47 = vpop.f32.mrb[4].mxu0  ;;  %v832_v51 = vsel %vm798_vm6, %v824_v41, 0.0 }
 0x190   : > { %v801_v48 = vadd.f32 %v800_v45, %v799_v44  ;;  %v750_v49 = vpop.f32.mrb[5].mxu0  ;;  %v837_v0 = vsel %vm798_vm6, %v827_v52, 0.0 }
 0x191   : > { %v833_v53 = vsel %vm798_vm6, %v825_v46, 0.0  ;;  %v1090_v54 = vpop.f32.mrb[6].mxu0 }
 0x192   : > { %v803_v55 = vadd.f32 %v802_v50, %v801_v48  ;;  %v834_v56 = vadd.f32 %v833_v53, %v832_v51  ;;  %v753_v57 = vpop.f32.mrb[7].mxu0  ;;  %v823_v50 = vld [vmem:[#allocation3 + $0x1] sm:$0x1] }
 0x194   : > { %v836_v61 = vadd.f32 %v835_v58, %v834_v56  ;;  %v805_v63 = vadd.f32 %v804_v59, %v803_v55 }
 0x196   : > { %v838_v2 = vadd.f32 %v837_v0, %v836_v61  ;;  %v873_v61 = vld [vmem:[%s1373_s4] sm:$0x1] (!%p993_p5) }
 0x197   : > { %v1077_v3 = vpop.f32.mrb[4].mxu1  ;;  %v878_v0 = vld [vmem:[%s1374_s5] sm:$0x1] (!%p993_p5) }
 0x198   : > { %v1099_v5 = vadd.f32 %v1089_v47, %v1077_v3  ;;  %v644_v6 = vpop.f32.mrb[5].mxu1  ;;  %v797_v47 = vld [vmem:[#allocation3] sm:$0x1] }
 0x199   : > { %v1100_v8 = vadd.f32 %v750_v49, %v644_v6  ;;  %v1078_v9 = vpop.f32.mrb[6].mxu1 }
 0x19a   : > { %v795_v11 = vadd.f32 %v1099_v5, %v1029_v1  ;;  %v1101_v12 = vadd.f32 %v1090_v54, %v1078_v9  ;;  %v647_v13 = vpop.f32.mrb[7].mxu1 }
 0x19b   : > { %v793_v14 = vadd.f32 %v1100_v8, %v1025_v4  ;;  %v1102_v15 = vadd.f32 %v753_v57, %v647_v13 }
 0x19c   : > { %861 = vst.msk [vmem:[%s1210_s14 + $0x30] sm:$0xff] %vm798_vm6, %v795_v11  ;;  %v796_v16 = vadd.f32 %v1101_v12, %v1030_v7  ;;  %v830_v21 = vmul.f32 %v795_v11, %v795_v11  ;;  %v810_v27 = vsel %vm798_vm6, %v795_v11, 0.0 }
 0x19d   : > { %v806_v17 = vsel %vm798_vm6, %v793_v14, 0.0  ;;  %v828_v18 = vmul.f32 %v793_v14, %v793_v14  ;;  %859 = vst.msk [vmem:[%s1210_s14 + $0x20] sm:$0xff] %vm798_vm6, %v793_v14  ;;  %v794_v19 = vadd.f32 %v1102_v15, %v1026_v10 }
 0x19e   : > { %v807_v20 = vadd.f32 %v806_v17, %v805_v63  ;;  %862 = vst.msk [vmem:[%s1210_s14 + $0x38] sm:$0xff] %vm798_vm6, %v796_v16  ;;  %v831_v28 = vmul.f32 %v796_v16, %v796_v16  ;;  %v843_v32 = vsel %vm798_vm6, %v830_v21, 0.0  ;;  %v812_v33 = vsel %vm798_vm6, %v796_v16, 0.0 }
 0x19f   : > { %v839_v22 = vsel %vm798_vm6, %v828_v18, 0.0  ;;  %v808_v23 = vsel %vm798_vm6, %v794_v19, 0.0  ;;  %v829_v24 = vmul.f32 %v794_v19, %v794_v19  ;;  %860 = vst.msk [vmem:[%s1210_s14 + $0x28] sm:$0xff] %vm798_vm6, %v794_v19 }
 0x1a0   : > { %v840_v25 = vadd.f32 %v839_v22, %v838_v2  ;;  %v809_v26 = vadd.f32 %v808_v23, %v807_v20  ;;  %v845_v36 = vsel %vm798_vm6, %v831_v28, 0.0 }
 0x1a1   : > { %v841_v29 = vsel %vm798_vm6, %v829_v24, 0.0 }
 0x1a2   : > { %v811_v30 = vadd.f32 %v810_v27, %v809_v26  ;;  %v842_v31 = vadd.f32 %v841_v29, %v840_v25 }
 0x1a4   : > { %v813_v34 = vadd.f32 %v812_v33, %v811_v30  ;;  %v844_v35 = vadd.f32 %v843_v32, %v842_v31 }
 0x1a6   : > { %v814_v37 = vrot.slane %v813_v34, 4  ;;  %v846_v38 = vadd.f32 %v845_v36, %v844_v35 }
 0x1a8   : > { %v815_v39 = vadd.f32 %v814_v37, %v813_v34  ;;  %v847_v40 = vrot.slane %v846_v38, 4 }
 0x1aa   : > { %v816_v41 = vrot.slane %v815_v39, 2  ;;  %v848_v42 = vadd.f32 %v847_v40, %v846_v38 }
 0x1ac   : > { %v817_v43 = vadd.f32 %v816_v41, %v815_v39  ;;  %v849_v44 = vrot.slane %v848_v42, 2 }
 0x1ae   : > { %v818_v45 = vrot.slane %v817_v43, 1  ;;  %v850_v46 = vadd.f32 %v849_v44, %v848_v42 }
 0x1b0   : > { %v819_v48 = vadd.f32 %v818_v45, %v817_v43  ;;  %v851_v49 = vrot.slane %v850_v46, 1  ;;  %866 = sbr.rel (%p993_p5) target bundleno = 470 (0x1d6), region = 52 }
 0x1b2   : > { %v820_v51 = vadd.f32 %v819_v48, %v797_v47  ;;  %v852_v52 = vadd.f32 %v851_v49, %v850_v46 }
 0x1b4   : > { %822 = vst.msk [vmem:[#allocation3] sm:$0x1] %vm821_vm7, %v820_v51  ;;  %v853_v53 = vadd.f32 %v852_v52, %v823_v50 }
 0x1b6   : > { %854 = vst.msk [vmem:[#allocation3 + $0x1] sm:$0x1] %vm821_vm7, %v853_v53 }
 0x1bb   : > { %v867_v54 = vld [vmem:[#allocation3] sm:$0x1] }
 0x1bc   : > { %v868_v56 = vmul.f32 0.0078125, %v867_v54 }
 0x1bd   : > { %v869_v55 = vld [vmem:[#allocation3 + $0x1] sm:$0x1] }
 0x1be   : > { %v870_v57 = vmul.f32 0.0078125, %v869_v55  ;;  %v871_v58 = vmul.f32 %v868_v56, %v868_v56 }
 0x1c0   : > { %v872_v59 = vsub.f32 %v870_v57, %v871_v58 }
 0x1c2   : > { %v874_v60 = vadd.f32 1e-05, %v872_v59 }
 0x1c4   : > { %1133 = vrsqrt.f32 %v874_v60 }
 0x1ce   : > { %v1134_v62 = vpop.eup %1133 }
 0x1cf   : > { %v876_v63 = vmul.f32 %v1134_v62, %v873_v61 }
 0x1d1   : > { %877 = vst.msk [vmem:[%s1376_s7] sm:$0x1] %vm821_vm7, %v876_v63  ;;  %v879_v1 = vmul.f32 %v876_v63, %v868_v56 }
 0x1d3   : > { %v880_v2 = vsub.f32 %v878_v0, %v879_v1 }
 0x1d5   : > { %881 = vst.msk [vmem:[%s1376_s7 + $0x1] sm:$0x1] %vm821_vm7, %v880_v2 }
 0x1d6 PF: > { %s18_s24 = sadd.s32 1, %s1141_s24  }
 0x1d7   : > { %p15_p6 = scmp.ge.s32.totalorder %s18_s24, 4  }
 0x1d9   :  { %17 = sbr.rel (!%p15_p6) target bundleno = 1 (0x1), region = 97 }

// kernel: meta_network_block_forward.8
= control target key start
LH: loop header
LB: loop body
LE: loop exit
PB: predicated region body
PF: predicated region fallthrough
CT: control target
= control target key end

     0   :  { %s1099_s21 = smov 0   ;;  %s1272_s0 = inlined_call_operand.vmem [shape: f32[2,8,1,8,8], index: 0, kind: input, shape index: {}]   ;;  %s1273_s1 = inlined_call_operand.vmem [shape: f32[2,8], index: 1, kind: input, shape index: {}]   ;;  %s1274_s2 = inlined_call_operand.vmem [shape: bf16[3,24,8], index: 2, kind: input, shape index: {}]   ;;  %s1275_s3 = inlined_call_operand.vmem [shape: f32[1,8], index: 3, kind: input, shape index: {}]   ;;  %s1276_s4 = inlined_call_operand.vmem [shape: f32[1,8], index: 4, kind: input, shape index: {}]   ;;  %s1277_s5 = inlined_call_operand.vmem [shape: bf16[2,64,8], index: 5, kind: output, shape index: {0}]   ;;  %s1278_s6 = inlined_call_operand.vmem [shape: f32[2,8], index: 6, kind: output, shape index: {1}]  }
   0x1 LB: > { %s1105_s22 = sadd.s32 4294967295, %s1058_s21   ;;  %p901_p0 = scmp.ge.s32.totalorder %s1058_s21, 1  ;;  %s1058_s21 = sphi %s1099_s21, %s17_s21  }
   0x2   : > { %p210_p1 = scmp.lt.s32.totalorder %s1058_s21, 3 }
   0x4   : > { %p211_p2 = pnand %p901_p0, %p210_p1 }
   0x5   : > { %p240_p3 = scmp.lt.s32.totalorder (!%p211_p2), %s1105_s22, 1  ;;  %p906_p4 = scmp.ne.s32.totalorder (!%p211_p2), %s1105_s22, 0 }
   0x6   : > { %214 = sbr.rel (%p211_p2) target bundleno = 466 (0x1d2), region = 40 }
   0xd   : > { %s241_s23 = scalar_select %p240_p3, %s1105_s22, 1 }
   0xe   : > { %254 = sbr.rel (%p906_p4) target bundleno = 21 (0x15), region = 44  ;;  %vm255_vm0 = vcmask (!%p906_p4), 58368   ;;  %v1060_v0 = vmov (!%p906_p4), 0.0  }
   0xf   : > { %s944_s24 = sshll.u32 %s241_s23, 6  ;;  %s945_s25 = sshll.u32 %s241_s23, 5  ;;  %256 = vst.msk [vmem:[#allocation3] sm:$0x3] (!%p906_p4), %vm255_vm0, %v1060_v0 }
  0x10   : > { %s244_s28 = scalar_lea.vmem %s1272_s0, %s944_s24  ;;  %s1117_s7 = scalar_lea.vmem %s1277_s5, %s945_s25 }
  0x15 PF: > { %v907_v1 = vld [vmem:[%s1273_s1] ss:$0 sm:$0xff]  ;;  %v908_v2 = vld [vmem:[%s1273_s1 + $0x1] ss:$0 sm:$0xff]  ;;  %v272_v3 = vld [vmem:[%s244_s28 + $0x10] sm:$0xff]  ;;  %vm311_vm1 = vcmask 63488  }
  0x16   : > { %v284_v4 = vmul.f32 %v907_v1, %v272_v3  ;;  %v270_v5 = vld [vmem:[%s244_s28] sm:$0xff]  ;;  %v273_v6 = vld [vmem:[%s244_s28 + $0x18] sm:$0xff]  ;;  %v271_v7 = vld [vmem:[%s244_s28 + $0x8] sm:$0xff]  ;;  %vm257_vm2 = vcmask 195584   ;;  %s1061_s12 = smov 8   ;;  %v1062_v37 = vmov 0.0  }
  0x17   : > { %v282_v8 = vmul.f32 %v907_v1, %v270_v5  ;;  %v285_v9 = vmul.f32 %v907_v1, %v273_v6  ;;  %v283_v10 = vmul.f32 %v907_v1, %v271_v7  ;;  %v275_v11 = vld [vmem:[%s244_s28 + $0x28] sm:$0xff]  ;;  %v274_v12 = vld [vmem:[%s244_s28 + $0x20] sm:$0xff]  ;;  %v277_v13 = vld [vmem:[%s244_s28 + $0x38] sm:$0xff]  ;;  %261 = vst.msk [vmem:[#allocation2 + $0x18] sm:$0xff] %vm257_vm2, %v1062_v37  ;;  %vm446_vm3 = vcmask 1043456   ;;  %s1063_s23 = smov 16  }
  0x18   : > { %v296_v14 = vadd.f32 %v908_v2, %v284_v4  ;;  %v287_v15 = vmul.f32 %v907_v1, %v275_v11  ;;  %v286_v16 = vmul.f32 %v907_v1, %v274_v12  ;;  %v289_v17 = vmul.f32 %v907_v1, %v277_v13  ;;  %v276_v18 = vld [vmem:[%s244_s28 + $0x30] sm:$0xff]  ;;  %v1133_v35 = vld [vmem:[%s1274_s2] sm:$0xff]   ;;  %258 = vst.msk [vmem:[#allocation2] sm:$0xff] %vm257_vm2, %v1062_v37  ;;  %v1163_v39 = vld [vmem:[%s1274_s2 + $0x8] ss:$0 sps:$4 sm:$0xff]   ;;  %p941_p5 = scmp.ne.s32.totalorder %s1105_s22, 1 }
  0x19   : > { %v294_v19 = vadd.f32 %v908_v2, %v282_v8  ;;  %v297_v20 = vadd.f32 %v908_v2, %v285_v9  ;;  %v295_v21 = vadd.f32 %v908_v2, %v283_v10  ;;  %v288_v22 = vmul.f32 %v907_v1, %v276_v18  ;;  %v1044_v34 = vld [vmem:[%s1274_s2 + $0xc] sm:$0xff]   ;;  %259 = vst.msk [vmem:[#allocation2 + $0x8] sm:$0xff] %vm257_vm2, %v1062_v37  ;;  %v1046_v38 = vld [vmem:[%s1274_s2 + $0x14] ss:$0 sps:$4 sm:$0xff]   ;;  %v1048_v42 = vld [vmem:[%s1274_s2 + $0x18] sm:$0xff]  }
  0x1a   : > { %v304_v23 = vmax.f32 %v296_v14, 0.0  ;;  %v299_v24 = vadd.f32 %v908_v2, %v287_v15  ;;  %v298_v25 = vadd.f32 %v908_v2, %v286_v16  ;;  %v301_v26 = vadd.f32 %v908_v2, %v289_v17  ;;  %260 = vst.msk [vmem:[#allocation2 + $0x10] sm:$0xff] %vm257_vm2, %v1062_v37  ;;  %262 = vst.msk [vmem:[#allocation2 + $0x20] sm:$0xff] %vm257_vm2, %v1062_v37  ;;  %v1049_v0 = vld [vmem:[%s1274_s2 + $0x20] ss:$0 sps:$4 sm:$0xff]  }
  0x1b   : > { %v302_v27 = vmax.f32 %v294_v19, 0.0  ;;  %v305_v28 = vmax.f32 %v297_v20, 0.0  ;;  %v303_v29 = vmax.f32 %v295_v21, 0.0  ;;  %v300_v30 = vadd.f32 %v908_v2, %v288_v22  ;;  %263 = vst.msk [vmem:[#allocation2 + $0x28] sm:$0xff] %vm257_vm2, %v1062_v37  ;;  %264 = vst.msk [vmem:[#allocation2 + $0x30] sm:$0xff] %vm257_vm2, %v1062_v37  ;;  %972 = vmatprep.subr.bf16.mxu1 %v1044_v34  ;;  %984 = vmatprep.subr.bf16.mxu0 %v1133_v35 }
  0x1c   : > { %332 = vrot.lane.b32.xlu1 %v304_v23, %s1061_s12  ;;  %v307_v31 = vmax.f32 %v299_v24, 0.0  ;;  %v306_v32 = vmax.f32 %v298_v25, 0.0  ;;  %v309_v33 = vmax.f32 %v301_v26, 0.0  ;;  %265 = vst.msk [vmem:[#allocation2 + $0x38] sm:$0xff] %vm257_vm2, %v1062_v37  ;;  %266 = vst.msk [vmem:[#allocation2 + $0x40] sm:$0xff] %vm257_vm2, %v1062_v37  ;;  %973 = vmatpush3.bf16.msra.mxu1 %v1044_v34  ;;  %v448_v40 = vsel %vm446_vm3, %v1046_v38, 0 }
  0x1d   : > { %328 = vrot.lane.b32.xlu0 %v302_v27, %s1061_s12  ;;  %v308_v36 = vmax.f32 %v300_v30, 0.0  ;;  %267 = vst.msk [vmem:[#allocation2 + $0x48] sm:$0xff] %vm257_vm2, %v1062_v37  ;;  %985 = vmatpush3.bf16.msra.mxu0 %v1133_v35  ;;  %v1172_v41 = vsel %vm446_vm3, %v1163_v39, 0  ;;  %vm352_vm4 = vcmask 130112   ;;  %vm385_vm5 = vcmask 195713  }
  0x1e   : > { %314 = vst.msk [vmem:[#allocation2 + $0x19] sm:$0x7f] %vm311_vm1, %v304_v23  ;;  %312 = vst.msk [vmem:[#allocation2 + $0x9] sm:$0x7f] %vm311_vm1, %v302_v27  ;;  %1028 = vmatprep.subr.msk.bf16.mxu1 %vm446_vm3, %v1046_v38  ;;  %1029 = vmatprep.subr.msk.bf16.mxu0 %vm446_vm3, %v1163_v39  ;;  %v643_v3 = vsel %vm446_vm3, %v1049_v0, 0  ;;  %vm808_vm6 = vcmask 60416  }
  0x1f   : > { %313 = vst.msk [vmem:[#allocation2 + $0x11] sm:$0x7f] %vm311_vm1, %v303_v29  ;;  %315 = vst.msk [vmem:[#allocation2 + $0x21] sm:$0x7f] %vm311_vm1, %v305_v28  ;;  %v394_v51 = vld [vmem:[#allocation2] sm:$0xff]  ;;  %vm719_vm7 = vcmask 64512  }
  0x20   : > { %316 = vst.msk [vmem:[#allocation2 + $0x29] sm:$0x7f] %vm311_vm1, %v306_v32  ;;  %317 = vst.msk [vmem:[#allocation2 + $0x31] sm:$0x7f] %vm311_vm1, %v307_v31  ;;  %334 = vrot.lane.b32.xlu1 %v305_v28, %s1061_s12  ;;  %975 = vmatpush3.bf16.msra.mxu1 %v448_v40  ;;  %vm742_vm8 = vcmask 57344  }
  0x21   : > { %319 = vst.msk [vmem:[#allocation2 + $0x41] sm:$0x7f] %vm311_vm1, %v309_v33  ;;  %318 = vst.msk [vmem:[#allocation2 + $0x39] sm:$0x7f] %vm311_vm1, %v308_v36  ;;  %330 = vrot.lane.b32.xlu0 %v303_v29, %s1061_s12  ;;  %987 = vmatpush3.bf16.msra.mxu0 %v1172_v41 }
  0x22   : > { %1008 = vmatprep.subr.bf16.mxu1 %v1133_v35  ;;  %996 = vmatprep.subr.bf16.mxu0 %v1048_v42 }
  0x24   : > { %363 = vrot.lane.b32.xlu1 %v303_v29, %s1063_s23  ;;  %v612_v14 = vld [vmem:[#allocation2 + $0x48] sm:$0xff] }
  0x25   : > { %361 = vrot.lane.b32.xlu0 %v302_v27, %s1063_s23 }
  0x28   : > { %367 = vrot.lane.b32.xlu1 %v305_v28, %s1063_s23 }
  0x29   : > { %365 = vrot.lane.b32.xlu0 %v304_v23, %s1063_s23 }
  0x2c   : > { %338 = vrot.lane.b32.xlu1 %v307_v31, %s1061_s12 }
  0x2d   : > { %336 = vrot.lane.b32.xlu0 %v306_v32, %s1061_s12 }
  0x30   : > { %342 = vrot.lane.b32.xlu1 %v309_v33, %s1061_s12 }
  0x31   : > { %340 = vrot.lane.b32.xlu0 %v308_v36, %s1061_s12 }
  0x34   : > { %371 = vrot.lane.b32.xlu1 %v307_v31, %s1063_s23 }
  0x35   : > { %369 = vrot.lane.b32.xlu0 %v306_v32, %s1063_s23 }
  0x38   : > { %375 = vrot.lane.b32.xlu1 %v309_v33, %s1063_s23 }
  0x39   : > { %373 = vrot.lane.b32.xlu0 %v308_v36, %s1063_s23 }
  0x8e   : > { %v333_v43 = vpop.permute.xlu1 %332 }
  0x8f   : > { %355 = vst.msk [vmem:[#allocation2 + $0x18] sm:$0xff] %vm352_vm4, %v333_v43  ;;  %v329_v44 = vpop.permute.xlu0 %328 }
  0x90   : > { %353 = vst.msk [vmem:[#allocation2 + $0x8] sm:$0xff] %vm352_vm4, %v329_v44 }
  0x92   : > { %v335_v45 = vpop.permute.xlu1 %334 }
  0x93   : > { %356 = vst.msk [vmem:[#allocation2 + $0x20] sm:$0xff] %vm352_vm4, %v335_v45  ;;  %v331_v46 = vpop.permute.xlu0 %330 }
  0x94   : > { %354 = vst.msk [vmem:[#allocation2 + $0x10] sm:$0xff] %vm352_vm4, %v331_v46 }
  0x96   : > { %v364_v47 = vpop.permute.xlu1 %363 }
  0x97   : > { %387 = vst.msk [vmem:[#allocation2 + $0xf] sm:$0xfe] %vm385_vm5, %v364_v47  ;;  %v362_v48 = vpop.permute.xlu0 %361 }
  0x98   : > { %386 = vst.msk [vmem:[#allocation2 + $0x7] sm:$0xfe] %vm385_vm5, %v362_v48 }
  0x9a   : > { %v368_v49 = vpop.permute.xlu1 %367 }
  0x9b   : > { %389 = vst.msk [vmem:[#allocation2 + $0x1f] sm:$0xfe] %vm385_vm5, %v368_v49  ;;  %v366_v50 = vpop.permute.xlu0 %365 }
  0x9c   : > { %388 = vst.msk [vmem:[#allocation2 + $0x17] sm:$0xfe] %vm385_vm5, %v366_v50 }
  0x9e   : > { %v339_v52 = vpop.permute.xlu1 %338  ;;  %v410_v53 = vld [vmem:[#allocation2 + $0x10] sm:$0xff] }
  0x9f   : > { %358 = vst.msk [vmem:[#allocation2 + $0x30] sm:$0xff] %vm352_vm4, %v339_v52  ;;  %v337_v54 = vpop.permute.xlu0 %336  ;;  %v409_v55 = vld [vmem:[#allocation2 + $0x8] sm:$0xff] }
  0xa0   : > { %357 = vst.msk [vmem:[#allocation2 + $0x28] sm:$0xff] %vm352_vm4, %v337_v54  ;;  %v417_v56 = vpack.c.bf16 %v410_v53, %v409_v55  ;;  %v402_v57 = vpack.c.bf16 %v409_v55, %v394_v51 }
  0xa2   : > { %976 = vmatprep.mubr.msk.bf16.mxu1 %vm257_vm2, %v417_v56  ;;  %988 = vmatprep.mubr.msk.bf16.mxu0 %vm257_vm2, %v402_v57  ;;  %v343_v58 = vpop.permute.xlu1 %342  ;;  %v412_v59 = vld [vmem:[#allocation2 + $0x20] sm:$0xff] }
  0xa3   : > { %360 = vst.msk [vmem:[#allocation2 + $0x40] sm:$0xff] %vm352_vm4, %v343_v58  ;;  %v341_v60 = vpop.permute.xlu0 %340  ;;  %v411_v61 = vld [vmem:[#allocation2 + $0x18] sm:$0xff] }
  0xa4   : > { %359 = vst.msk [vmem:[#allocation2 + $0x38] sm:$0xff] %vm352_vm4, %v341_v60  ;;  %v418_v62 = vpack.c.bf16 %v412_v59, %v411_v61  ;;  %v403_v63 = vpack.c.bf16 %v411_v61, %v410_v53 }
  0xa6   : > { %977 = vmatmul.mubr.msk.bf16.vlgmr.msra.gmra.mrb[0].mxu1 %vm257_vm2, %v418_v62  ;;  %989 = vmatmul.mubr.msk.bf16.vlgmr.msra.gmra.mrb[0].mxu0 %vm257_vm2, %v403_v63  ;;  %v372_v1 = vpop.permute.xlu1 %371 }
  0xa7   : > { %391 = vst.msk [vmem:[#allocation2 + $0x2f] sm:$0xfe] %vm385_vm5, %v372_v1  ;;  %v370_v2 = vpop.permute.xlu0 %369  ;;  %1000 = vmatprep.mubr.msk.bf16.mxu0 %vm257_vm2, %v403_v63  ;;  %997 = vmatpush3.bf16.msra.mxu0 %v1048_v42 }
  0xa8   : > { %390 = vst.msk [vmem:[#allocation2 + $0x27] sm:$0xfe] %vm385_vm5, %v370_v2  ;;  %1010 = vmatpush3.bf16.msra.mxu1 %v1133_v35  ;;  %1031 = vmatprep.subr.msk.bf16.mxu0 %vm446_vm3, %v1049_v0 }
  0xa9   : > { %1030 = vmatprep.subr.msk.bf16.mxu1 %vm446_vm3, %v1163_v39 }
  0xaa   : > { %v376_v4 = vpop.permute.xlu1 %375 }
  0xab   : > { %393 = vst.msk [vmem:[#allocation2 + $0x3f] sm:$0xfe] %vm385_vm5, %v376_v4  ;;  %v374_v5 = vpop.permute.xlu0 %373  ;;  %999 = vmatpush3.bf16.msra.mxu0 %v643_v3 }
  0xac   : > { %392 = vst.msk [vmem:[#allocation2 + $0x37] sm:$0xfe] %vm385_vm5, %v374_v5  ;;  %1011 = vmatpush3.bf16.msra.mxu1 %v1172_v41 }
  0xae   : > { %v414_v6 = vld [vmem:[#allocation2 + $0x30] sm:$0xff] }
  0xaf   : > { %v413_v7 = vld [vmem:[#allocation2 + $0x28] sm:$0xff] }
  0xb0   : > { %v419_v8 = vpack.c.bf16 %v414_v6, %v413_v7  ;;  %v614_v9 = vpack.c.bf16 %v413_v7, %v412_v59 }
  0xb2   : > { %980 = vmatprep.mubr.msk.bf16.mxu1 %vm257_vm2, %v419_v8  ;;  %1001 = vmatmul.mubr.msk.bf16.vlgmr.msra.gmra.mrb[0].mxu0 %vm257_vm2, %v614_v9  ;;  %v416_v10 = vld [vmem:[#allocation2 + $0x40] sm:$0xff] }
  0xb3   : > { %v415_v11 = vld [vmem:[#allocation2 + $0x38] sm:$0xff]  ;;  %v616_v15 = vpack.c.bf16 %v612_v14, %v416_v10 }
  0xb4   : > { %v420_v12 = vpack.c.bf16 %v416_v10, %v415_v11  ;;  %v615_v13 = vpack.c.bf16 %v415_v11, %v414_v6 }
  0xb6   : > { %981 = vmatmul.mubr.msk.bf16.gmra.mrb[4].mxu1 %vm257_vm2, %v420_v12  ;;  %1004 = vmatprep.mubr.msk.bf16.mxu0 %vm257_vm2, %v615_v13 }
  0xb7   : > { %992 = vmatprep.mubr.msk.bf16.mxu1 %vm257_vm2, %v614_v9 }
  0xba   : > { %1005 = vmatmul.mubr.msk.bf16.gmra.mrb[4].mxu0 %vm257_vm2, %v616_v15 }
  0xc2   : > { %993 = vmatmul.mubr.msk.bf16.vlgmr.msra.gmra.mrb[4].mxu1 %vm257_vm2, %v615_v13 }
 0x179   : > { %v978_v16 = vpop.f32.mrb[0].mxu1 }
 0x17a   : > { %v484_v17 = vpop.f32.mrb[1].mxu1 }
 0x17b   : > { %v979_v18 = vpop.f32.mrb[2].mxu1 }
 0x17c   : > { %v487_v19 = vpop.f32.mrb[3].mxu1 }
 0x185   : > { %v1002_v20 = vpop.f32.mrb[0].mxu0 }
 0x186   : > { %v1012_v21 = vadd.f32 %v1002_v20, %v978_v16  ;;  %v679_v22 = vpop.f32.mrb[1].mxu0 }
 0x187   : > { %v1013_v23 = vadd.f32 %v679_v22, %v484_v17  ;;  %v1003_v24 = vpop.f32.mrb[2].mxu0 }
 0x188   : > { %v948_v25 = vpack.c.bf16 %v1012_v21, %v1012_v21  ;;  %v1014_v26 = vadd.f32 %v1003_v24, %v979_v18  ;;  %v682_v27 = vpop.f32.mrb[3].mxu0  ;;  %v747_v31 = vmul.f32 %v1012_v21, %v1012_v21  ;;  %v723_v38 = vsel %vm719_vm7, %v1012_v21, 0.0 }
 0x189   : > { %v745_v28 = vmul.f32 %v1013_v23, %v1013_v23  ;;  %v946_v29 = vpack.c.bf16 %v1013_v23, %v1013_v23  ;;  %v1015_v30 = vadd.f32 %v682_v27, %v487_v19  ;;  %v720_v33 = vsel %vm719_vm7, %v1013_v23, 0.0 }
 0x18a   : > { %811 = vst.msk [vmem:[%s1117_s7 + $0x8] sm:$0xf] %vm808_vm6, %v948_v25  ;;  %v949_v32 = vpack.c.bf16 %v1014_v26, %v1014_v26  ;;  %v748_v40 = vmul.f32 %v1014_v26, %v1014_v26  ;;  %v756_v46 = vsel %vm719_vm7, %v747_v31, 0.0  ;;  %v725_v47 = vsel %vm719_vm7, %v1014_v26, 0.0  ;;  %v718_v31 = vld [vmem:[#allocation3] sm:$0x1] }
 0x18b   : > { %809 = vst.msk [vmem:[%s1117_s7] sm:$0xf] %vm808_vm6, %v946_v29  ;;  %v721_v34 = vsel %vm719_vm7, %v1015_v30, 0.0  ;;  %v746_v35 = vmul.f32 %v1015_v30, %v1015_v30  ;;  %v947_v36 = vpack.c.bf16 %v1015_v30, %v1015_v30  ;;  %v753_v39 = vsel %vm719_vm7, %v745_v28, 0.0 }
 0x18c   : > { %812 = vst.msk [vmem:[%s1117_s7 + $0xc] sm:$0xf] %vm808_vm6, %v949_v32  ;;  %v722_v37 = vadd.f32 %v721_v34, %v720_v33  ;;  %v758_v52 = vsel %vm719_vm7, %v748_v40, 0.0  ;;  %v744_v34 = vld [vmem:[#allocation3 + $0x1] sm:$0x1] }
 0x18d   : > { %v754_v41 = vsel %vm719_vm7, %v746_v35, 0.0  ;;  %810 = vst.msk [vmem:[%s1117_s7 + $0x4] sm:$0xf] %vm808_vm6, %v947_v36  ;;  %v1006_v42 = vpop.f32.mrb[4].mxu0 }
 0x18e   : > { %v724_v43 = vadd.f32 %v723_v38, %v722_v37  ;;  %v755_v44 = vadd.f32 %v754_v41, %v753_v39  ;;  %v695_v45 = vpop.f32.mrb[5].mxu0 }
 0x18f   : > { %v1007_v48 = vpop.f32.mrb[6].mxu0 }
 0x190   : > { %v757_v49 = vadd.f32 %v756_v46, %v755_v44  ;;  %v698_v50 = vpop.f32.mrb[7].mxu0  ;;  %v726_v51 = vadd.f32 %v725_v47, %v724_v43 }
 0x192   : > { %v759_v53 = vadd.f32 %v758_v52, %v757_v49 }
 0x195   : > { %v994_v54 = vpop.f32.mrb[4].mxu1 }
 0x196   : > { %v1016_v55 = vadd.f32 %v1006_v42, %v994_v54  ;;  %v589_v56 = vpop.f32.mrb[5].mxu1 }
 0x197   : > { %v1017_v57 = vadd.f32 %v695_v45, %v589_v56  ;;  %v995_v58 = vpop.f32.mrb[6].mxu1  ;;  %v827_v45 = vld [vmem:[%s1275_s3] sm:$0x1] (!%p941_p5) }
 0x198   : > { %v952_v59 = vpack.c.bf16 %v1016_v55, %v1016_v55  ;;  %v1018_v60 = vadd.f32 %v1007_v48, %v995_v58  ;;  %v592_v61 = vpop.f32.mrb[7].mxu1  ;;  %v751_v2 = vmul.f32 %v1016_v55, %v1016_v55  ;;  %v731_v11 = vsel %vm719_vm7, %v1016_v55, 0.0  ;;  %v832_v48 = vld [vmem:[%s1276_s4] sm:$0x1] (!%p941_p5) }
 0x199   : > { %v727_v62 = vsel %vm719_vm7, %v1017_v57, 0.0  ;;  %v749_v63 = vmul.f32 %v1017_v57, %v1017_v57  ;;  %v950_v0 = vpack.c.bf16 %v1017_v57, %v1017_v57  ;;  %v1019_v1 = vadd.f32 %v698_v50, %v592_v61 }
 0x19a   : > { %815 = vst.msk [vmem:[%s1117_s7 + $0x18] sm:$0xf] %vm808_vm6, %v952_v59  ;;  %v728_v3 = vadd.f32 %v727_v62, %v726_v51  ;;  %v953_v5 = vpack.c.bf16 %v1018_v60, %v1018_v60  ;;  %v752_v12 = vmul.f32 %v1018_v60, %v1018_v60  ;;  %v764_v16 = vsel %vm719_vm7, %v751_v2, 0.0 }
 0x19b   : > { %v760_v4 = vsel %vm719_vm7, %v749_v63, 0.0  ;;  %813 = vst.msk [vmem:[%s1117_s7 + $0x10] sm:$0xf] %vm808_vm6, %v950_v0  ;;  %v729_v6 = vsel %vm719_vm7, %v1019_v1, 0.0  ;;  %v750_v7 = vmul.f32 %v1019_v1, %v1019_v1  ;;  %v951_v10 = vpack.c.bf16 %v1019_v1, %v1019_v1 }
 0x19c   : > { %v761_v8 = vadd.f32 %v760_v4, %v759_v53  ;;  %v730_v9 = vadd.f32 %v729_v6, %v728_v3  ;;  %816 = vst.msk [vmem:[%s1117_s7 + $0x1c] sm:$0xf] %vm808_vm6, %v953_v5  ;;  %v733_v17 = vsel %vm719_vm7, %v1018_v60, 0.0  ;;  %v766_v20 = vsel %vm719_vm7, %v752_v12, 0.0 }
 0x19d   : > { %v762_v13 = vsel %vm719_vm7, %v750_v7, 0.0  ;;  %814 = vst.msk [vmem:[%s1117_s7 + $0x14] sm:$0xf] %vm808_vm6, %v951_v10 }
 0x19e   : > { %v732_v14 = vadd.f32 %v731_v11, %v730_v9  ;;  %v763_v15 = vadd.f32 %v762_v13, %v761_v8 }
 0x1a0   : > { %v734_v18 = vadd.f32 %v733_v17, %v732_v14  ;;  %v765_v19 = vadd.f32 %v764_v16, %v763_v15 }
 0x1a2   : > { %v735_v21 = vrot.slane %v734_v18, 4  ;;  %v767_v22 = vadd.f32 %v766_v20, %v765_v19 }
 0x1a4   : > { %v736_v23 = vadd.f32 %v735_v21, %v734_v18  ;;  %v768_v24 = vrot.slane %v767_v22, 4 }
 0x1a6   : > { %v737_v25 = vrot.slane %v736_v23, 2  ;;  %v769_v26 = vadd.f32 %v768_v24, %v767_v22 }
 0x1a8   : > { %v738_v27 = vadd.f32 %v737_v25, %v736_v23  ;;  %v770_v28 = vrot.slane %v769_v26, 2 }
 0x1aa   : > { %v739_v29 = vrot.slane %v738_v27, 1  ;;  %v771_v30 = vadd.f32 %v770_v28, %v769_v26 }
 0x1ac   : > { %v740_v32 = vadd.f32 %v739_v29, %v738_v27  ;;  %v772_v33 = vrot.slane %v771_v30, 1  ;;  %820 = sbr.rel (%p941_p5) target bundleno = 466 (0x1d2), region = 48 }
 0x1ae   : > { %v741_v35 = vadd.f32 %v740_v32, %v718_v31  ;;  %v773_v36 = vadd.f32 %v772_v33, %v771_v30 }
 0x1b0   : > { %743 = vst.msk [vmem:[#allocation3] sm:$0x1] %vm742_vm8, %v741_v35  ;;  %v774_v37 = vadd.f32 %v773_v36, %v744_v34 }
 0x1b2   : > { %775 = vst.msk [vmem:[#allocation3 + $0x1] sm:$0x1] %vm742_vm8, %v774_v37 }
 0x1b7   : > { %v821_v38 = vld [vmem:[#allocation3] sm:$0x1] }
 0x1b8   : > { %v822_v40 = vmul.f32 0.0078125, %v821_v38 }
 0x1b9   : > { %v823_v39 = vld [vmem:[#allocation3 + $0x1] sm:$0x1] }
 0x1ba   : > { %v824_v41 = vmul.f32 0.0078125, %v823_v39  ;;  %v825_v42 = vmul.f32 %v822_v40, %v822_v40 }
 0x1bc   : > { %v826_v43 = vsub.f32 %v824_v41, %v825_v42 }
 0x1be   : > { %v828_v44 = vadd.f32 1e-05, %v826_v43 }
 0x1c0   : > { %1050 = vrsqrt.f32 %v828_v44 }
 0x1ca   : > { %v1051_v46 = vpop.eup %1050 }
 0x1cb   : > { %v830_v47 = vmul.f32 %v1051_v46, %v827_v45 }
 0x1cd   : > { %831 = vst.msk [vmem:[%s1278_s6] sm:$0x1] %vm742_vm8, %v830_v47  ;;  %v833_v49 = vmul.f32 %v830_v47, %v822_v40 }
 0x1cf   : > { %v834_v50 = vsub.f32 %v832_v48, %v833_v49 }
 0x1d1   : > { %835 = vst.msk [vmem:[%s1278_s6 + $0x1] sm:$0x1] %vm742_vm8, %v834_v50 }
 0x1d2 PF: > { %s17_s21 = sadd.s32 1, %s1058_s21  }
 0x1d3   : > { %p14_p6 = scmp.ge.s32.totalorder %s17_s21, 4  }
 0x1d5   :  { %16 = sbr.rel (!%p14_p6) target bundleno = 1 (0x1), region = 90 }

// kernel: meta_network_block_forward.6
= control target key start
LH: loop header
LB: loop body
LE: loop exit
PB: predicated region body
PF: predicated region fallthrough
CT: control target
= control target key end

     0   :  { %s1630_s27 = smov 0   ;;  %s2041_s0 = inlined_call_operand.vmem [shape: f32[2,8,2,8,8], index: 0, kind: input, shape index: {}]   ;;  %s2042_s1 = inlined_call_operand.vmem [shape: f32[2,4], index: 1, kind: input, shape index: {}]   ;;  %s2043_s2 = inlined_call_operand.vmem [shape: bf16[3,12,8], index: 2, kind: input, shape index: {}]   ;;  %s2044_s3 = inlined_call_operand.vmem [shape: bf16[4,8], index: 3, kind: input, shape index: {}]   ;;  %s2045_s4 = inlined_call_operand.vmem [shape: f32[1,8], index: 4, kind: input, shape index: {}]   ;;  %s2046_s5 = inlined_call_operand.vmem [shape: f32[1,8], index: 5, kind: input, shape index: {}]   ;;  %s2047_s6 = inlined_call_operand.vmem [shape: bf16[2,64,8], index: 6, kind: output, shape index: {0}]   ;;  %s2048_s7 = inlined_call_operand.vmem [shape: bf16[2,64,8], index: 7, kind: output, shape index: {1}]   ;;  %s2049_s8 = inlined_call_operand.vmem [shape: f32[2,8], index: 8, kind: output, shape index: {2}]  }
   0x1 LB: > { %s1636_s28 = sadd.s32 4294967295, %s1579_s27   ;;  %p1389_p0 = scmp.ge.s32.totalorder %s1579_s27, 1  ;;  %s1579_s27 = sphi %s1630_s27, %s19_s27  }
   0x2   : > { %p262_p1 = scmp.lt.s32.totalorder %s1579_s27, 3 }
   0x4   : > { %p263_p2 = pnand %p1389_p0, %p262_p1 }
   0x5   : > { %p301_p3 = scmp.lt.s32.totalorder (!%p263_p2), %s1636_s28, 1  ;;  %p1396_p4 = scmp.ne.s32.totalorder (!%p263_p2), %s1636_s28, 0 }
   0x6   : > { %266 = sbr.rel (%p263_p2) target bundleno = 631 (0x277), region = 44 }
   0xd   : > { %s302_s29 = scalar_select %p301_p3, %s1636_s28, 1 }
   0xe   : > { %320 = sbr.rel (%p1396_p4) target bundleno = 21 (0x15), region = 48  ;;  %vm321_vm0 = vcmask (!%p1396_p4), 58368   ;;  %v1581_v0 = vmov (!%p1396_p4), 0.0  }
   0xf   : > { %s1457_s30 = sshll.u32 %s302_s29, 7  ;;  %s1458_s9 = sshll.u32 %s302_s29, 5  ;;  %322 = vst.msk [vmem:[#allocation3] sm:$0x3] (!%p1396_p4), %vm321_vm0, %v1581_v0 }
  0x10   : > { %s1645_s12 = scalar_lea.vmem %s2041_s0, %s1457_s30  ;;  %s1650_s15 = scalar_lea.vmem %s2047_s6, %s1458_s9 }
  0x11   : > { %s1655_s18 = scalar_lea.vmem %s2048_s7, %s1458_s9 }
  0x15 PF: > { %v1661_v1 = vld [vmem:[%s2042_s1] ss:$0 sm:$0xff]  ;;  %s1582_s21 = smov 4   ;;  %v1674_v5 = vld [vmem:[%s1645_s12 + $0x10] sm:$0xff]  ;;  %v1682_v7 = vld [vmem:[%s2042_s1 + $0x1] ss:$0 sm:$0xff] }
  0x16   : > { %v1664_v2 = vld [vmem:[%s1645_s12] sm:$0xff]  ;;  %435 = vrot.lane.b32.xlu0 %v1661_v1, %s1582_s21  ;;  %v357_v9 = vmul.f32 %v1661_v1, %v1674_v5  ;;  %v1691_v11 = vld [vmem:[%s1645_s12 + $0x30] sm:$0xff]  ;;  %v1710_v22 = vld [vmem:[%s1645_s12 + $0x8] sm:$0xff]  ;;  %vm323_vm1 = vcmask 97280   ;;  %vm417_vm2 = vcmask 64544   ;;  %s1584_s24 = smov 124  }
  0x17   : > { %v356_v3 = vmul.f32 %v1661_v1, %v1664_v2  ;;  %v1671_v4 = vld [vmem:[%s1645_s12 + $0x20] sm:$0xff]  ;;  %v359_v14 = vmul.f32 %v1661_v1, %v1691_v11  ;;  %v1702_v17 = vld [vmem:[%s1645_s12 + $0x50] sm:$0xff]  ;;  %v549_v29 = vmul.f32 %v1710_v22, %v1661_v1  ;;  %v1724_v30 = vld [vmem:[%s1645_s12 + $0x28] sm:$0xff]  ;;  %vm764_vm3 = vcmask 1045504   ;;  %p1454_p5 = scmp.ne.s32.totalorder %s1636_s28, 1 }
  0x18   : > { %v1677_v6 = vld [vmem:[%s1645_s12 + $0x40] sm:$0xff]  ;;  %v358_v8 = vmul.f32 %v1661_v1, %v1671_v4  ;;  %v369_v16 = vadd.f32 %v1682_v7, %v357_v9  ;;  %v361_v25 = vmul.f32 %v1661_v1, %v1702_v17  ;;  %v1717_v26 = vld [vmem:[%s1645_s12 + $0x70] sm:$0xff]  ;;  %v1731_v34 = vld [vmem:[%s1645_s12 + $0x18] sm:$0xff]  ;;  %v551_v37 = vmul.f32 %v1724_v30, %v1661_v1 }
  0x19   : > { %v360_v10 = vmul.f32 %v1661_v1, %v1677_v6  ;;  %v1694_v12 = vld [vmem:[%s1645_s12 + $0x60] sm:$0xff]  ;;  %v368_v13 = vadd.f32 %v1682_v7, %v356_v3  ;;  %v371_v24 = vadd.f32 %v1682_v7, %v359_v14  ;;  %v363_v33 = vmul.f32 %v1661_v1, %v1717_v26  ;;  %v1738_v38 = vld [vmem:[%s1645_s12 + $0x48] sm:$0xff]  ;;  %v1745_v42 = vld [vmem:[%s1645_s12 + $0x38] sm:$0xff] }
  0x1a   : > { %v370_v15 = vadd.f32 %v1682_v7, %v358_v8  ;;  %447 = vrot.lane.b32.xlu0 %v1682_v7, %s1582_s21  ;;  %v362_v20 = vmul.f32 %v1661_v1, %v1694_v12  ;;  %v377_v23 = vmax.f32 %v369_v16, 0.0  ;;  %v373_v32 = vadd.f32 %v1682_v7, %v361_v25  ;;  %v1752_v46 = vld [vmem:[%s1645_s12 + $0x68] sm:$0xff]  ;;  %v1759_v50 = vld [vmem:[%s1645_s12 + $0x58] sm:$0xff] }
  0x1b   : > { %v376_v18 = vmax.f32 %v368_v13, 0.0  ;;  %v372_v19 = vadd.f32 %v1682_v7, %v360_v10  ;;  %v379_v31 = vmax.f32 %v371_v24, 0.0  ;;  %v557_v36 = vadd.f32 %v1682_v7, %v549_v29  ;;  %v1778_v63 = vld [vmem:[%s1645_s12 + $0x78] sm:$0xff]  ;;  %v1568_v25 = vld [vmem:[%s2043_s2 + $0x8] sm:$0x3f]  }
  0x1c   : > { %v378_v21 = vmax.f32 %v370_v15, 0.0  ;;  %v374_v28 = vadd.f32 %v1682_v7, %v362_v20  ;;  %v381_v39 = vmax.f32 %v373_v32, 0.0  ;;  %v375_v40 = vadd.f32 %v1682_v7, %v363_v33  ;;  %1552 = vmatprep.subr.msk.bf16.mxu1 %vm764_vm3, %v1568_v25 }
  0x1d   : > { %392 = vrot.lane.b32.xlu1 %v376_v18, %s1582_s21  ;;  %v380_v27 = vmax.f32 %v372_v19, 0.0  ;;  %v550_v41 = vmul.f32 %v1731_v34, %v1661_v1  ;;  %v565_v43 = vmax.f32 %v557_v36, 0.0  ;;  %v559_v44 = vadd.f32 %v1682_v7, %v551_v37 }
  0x1e   : > { %396 = vrot.lane.b32.xlu0 %v378_v21, %s1582_s21  ;;  %v382_v35 = vmax.f32 %v374_v28, 0.0  ;;  %v553_v45 = vmul.f32 %v1738_v38, %v1661_v1  ;;  %v383_v47 = vmax.f32 %v375_v40, 0.0  ;;  %v552_v49 = vmul.f32 %v1745_v42, %v1661_v1 }
  0x1f   : > { %v558_v48 = vadd.f32 %v1682_v7, %v550_v41  ;;  %v567_v51 = vmax.f32 %v559_v44, 0.0  ;;  %v555_v53 = vmul.f32 %v1752_v46, %v1661_v1  ;;  %v554_v56 = vmul.f32 %v1759_v50, %v1661_v1 }
  0x20   : > { %v561_v52 = vadd.f32 %v1682_v7, %v553_v45  ;;  %v560_v55 = vadd.f32 %v1682_v7, %v552_v49  ;;  %v556_v0 = vmul.f32 %v1778_v63, %v1661_v1  ;;  %v1583_v8 = vmov 0.0  }
  0x21   : > { %394 = vrot.lane.b32.xlu1 %v377_v23, %s1582_s21  ;;  %v566_v54 = vmax.f32 %v558_v48, 0.0  ;;  %v563_v58 = vadd.f32 %v1682_v7, %v555_v53  ;;  %v562_v60 = vadd.f32 %v1682_v7, %v554_v56  ;;  %333 = vst.msk [vmem:[#allocation2 + $0x48] sm:$0xff] %vm323_vm1, %v1583_v8  ;;  %324 = vst.msk [vmem:[#allocation2] sm:$0xff] %vm323_vm1, %v1583_v8  ;;  %v766_v28 = vsel %vm764_vm3, %v1568_v25, 0 }
  0x22   : > { %400 = vrot.lane.b32.xlu0 %v380_v27, %s1582_s21  ;;  %v569_v57 = vmax.f32 %v561_v52, 0.0  ;;  %v568_v59 = vmax.f32 %v560_v55, 0.0  ;;  %v1783_v3 = vadd.f32 %v1682_v7, %v556_v0  ;;  %325 = vst.msk [vmem:[#allocation2 + $0x8] sm:$0xff] %vm323_vm1, %v1583_v8  ;;  %326 = vst.msk [vmem:[#allocation2 + $0x10] sm:$0xff] %vm323_vm1, %v1583_v8  ;;  %1497 = vmatpush3.bf16.msra.mxu1 %v766_v28  ;;  %vm1163_vm4 = vcmask 1041408  }
  0x23   : > { %v571_v61 = vmax.f32 %v563_v58, 0.0  ;;  %v570_v62 = vmax.f32 %v562_v60, 0.0  ;;  %327 = vst.msk [vmem:[#allocation2 + $0x18] sm:$0xff] %vm323_vm1, %v1583_v8  ;;  %328 = vst.msk [vmem:[#allocation2 + $0x20] sm:$0xff] %vm323_vm1, %v1583_v8  ;;  %vm498_vm5 = vcmask 30720   ;;  %vm531_vm6 = vcmask 97344  }
  0x24   : > { %329 = vst.msk [vmem:[#allocation2 + $0x28] sm:$0xff] %vm323_vm1, %v1583_v8  ;;  %330 = vst.msk [vmem:[#allocation2 + $0x30] sm:$0xff] %vm323_vm1, %v1583_v8  ;;  %vm1150_vm7 = vcmask 31744   ;;  %vm1116_vm8 = vcmask 60416   ;;  %vm1027_vm9 = vcmask 64512   ;;  %vm1050_vm10 = vcmask 57344  }
  0x25   : > { %398 = vrot.lane.b32.xlu1 %v379_v31, %s1582_s21  ;;  %331 = vst.msk [vmem:[#allocation2 + $0x38] sm:$0xff] %vm323_vm1, %v1583_v8  ;;  %332 = vst.msk [vmem:[#allocation2 + $0x40] sm:$0xff] %vm323_vm1, %v1583_v8 }
  0x26   : > { %404 = vrot.lane.b32.xlu0 %v382_v35, %s1582_s21  ;;  %334 = vst.msk [vmem:[#allocation2 + $0x50] sm:$0xff] %vm323_vm1, %v1583_v8  ;;  %335 = vst.msk [vmem:[#allocation2 + $0x58] sm:$0xff] %vm323_vm1, %v1583_v8 }
  0x27   : > { %336 = vst.msk [vmem:[#allocation2 + $0x60] sm:$0xff] %vm323_vm1, %v1583_v8  ;;  %337 = vst.msk [vmem:[#allocation2 + $0x68] sm:$0xff] %vm323_vm1, %v1583_v8 }
  0x28   : > { %338 = vst.msk [vmem:[#allocation2 + $0x70] sm:$0xff] %vm323_vm1, %v1583_v8  ;;  %339 = vst.msk [vmem:[#allocation2 + $0x78] sm:$0xff] %vm323_vm1, %v1583_v8 }
  0x29   : > { %402 = vrot.lane.b32.xlu1 %v381_v39, %s1582_s21  ;;  %340 = vst.msk [vmem:[#allocation2 + $0x80] sm:$0xff] %vm323_vm1, %v1583_v8 }
  0x2a   : > { %581 = vrot.lane.b32.xlu0 %v565_v43, %s1582_s21 }
  0x2d   : > { %406 = vrot.lane.b32.xlu1 %v383_v47, %s1582_s21 }
  0x2e   : > { %585 = vrot.lane.b32.xlu0 %v567_v51, %s1582_s21 }
  0x31   : > { %583 = vrot.lane.b32.xlu1 %v566_v54, %s1582_s21 }
  0x32   : > { %589 = vrot.lane.b32.xlu0 %v569_v57, %s1582_s21 }
  0x35   : > { %587 = vrot.lane.b32.xlu1 %v568_v59, %s1582_s21  ;;  %v1569_v59 = vld [vmem:[%s2043_s2] sm:$0x3f]  }
  0x36   : > { %593 = vrot.lane.b32.xlu0 %v571_v61, %s1582_s21  ;;  %1553 = vmatprep.subr.msk.bf16.mxu0 %vm764_vm3, %v1569_v59  ;;  %v851_v60 = vsel %vm764_vm3, %v1569_v59, 0 }
  0x37   : > { %1507 = vmatpush3.bf16.msra.mxu0 %v851_v60 }
  0x39   : > { %591 = vrot.lane.b32.xlu1 %v570_v62, %s1582_s21 }
  0x88   : > { %v1802_v1 = vpop.permute.xlu0 %435 }
  0x89   : > { %v438_v7 = vmul.f32 %v1802_v1, %v1664_v2  ;;  %v439_v9 = vmul.f32 %v1802_v1, %v1674_v5  ;;  %v440_v15 = vmul.f32 %v1802_v1, %v1671_v4  ;;  %v441_v16 = vmul.f32 %v1802_v1, %v1691_v11 }
  0x8a   : > { %v442_v31 = vmul.f32 %v1802_v1, %v1677_v6  ;;  %v443_v32 = vmul.f32 %v1802_v1, %v1702_v17  ;;  %v444_v6 = vmul.f32 %v1802_v1, %v1694_v12  ;;  %v445_v17 = vmul.f32 %v1802_v1, %v1717_v26 }
  0x8b   : > { %v623_v52 = vmul.f32 %v1731_v34, %v1802_v1  ;;  %v622_v53 = vmul.f32 %v1710_v22, %v1802_v1  ;;  %v624_v57 = vmul.f32 %v1724_v30, %v1802_v1  ;;  %v626_v30 = vmul.f32 %v1738_v38, %v1802_v1 }
  0x8c   : > { %v1808_v10 = vpop.permute.xlu0 %447  ;;  %v625_v62 = vmul.f32 %v1745_v42, %v1802_v1 }
  0x8d   : > { %v450_v13 = vadd.f32 %v1808_v10, %v438_v7  ;;  %v451_v14 = vadd.f32 %v1808_v10, %v439_v9  ;;  %v452_v2 = vadd.f32 %v1808_v10, %v440_v15  ;;  %v453_v5 = vadd.f32 %v1808_v10, %v441_v16 }
  0x8e   : > { %v454_v35 = vadd.f32 %v1808_v10, %v442_v31  ;;  %v455_v36 = vadd.f32 %v1808_v10, %v443_v32  ;;  %v456_v43 = vadd.f32 %v1808_v10, %v444_v6  ;;  %v457_v44 = vadd.f32 %v1808_v10, %v445_v17 }
  0x8f   : > { %v393_v18 = vpop.permute.xlu1 %392  ;;  %v458_v19 = vmax.f32 %v450_v13, 0.0  ;;  %v459_v20 = vmax.f32 %v451_v14, 0.0  ;;  %v460_v23 = vmax.f32 %v452_v2, 0.0  ;;  %v461_v11 = vmax.f32 %v453_v5, 0.0 }
  0x90   : > { %418 = vst.msk [vmem:[#allocation2 + $0x48] sm:$0xff] %vm417_vm2, %v393_v18  ;;  %v397_v21 = vpop.permute.xlu0 %396  ;;  %v462_v40 = vmax.f32 %v454_v35, 0.0  ;;  %v463_v41 = vmax.f32 %v455_v36, 0.0  ;;  %v464_v26 = vmax.f32 %v456_v43, 0.0  ;;  %v465_v47 = vmax.f32 %v457_v44, 0.0 }
  0x91   : > { %474 = vrot.lane.b32.xlu0 %v458_v19, %s1584_s24  ;;  %476 = vrot.lane.b32.xlu1 %v459_v20, %s1584_s24  ;;  %420 = vst.msk [vmem:[#allocation2 + $0x58] sm:$0xff] %vm417_vm2, %v397_v21  ;;  %v631_v55 = vadd.f32 %v623_v52, %v1808_v10  ;;  %v630_v56 = vadd.f32 %v622_v53, %v1808_v10  ;;  %v1570_v18 = vld [vmem:[%s2043_s2 + $0x10] sm:$0x3f]  }
  0x92   : > { %v632_v22 = vadd.f32 %v624_v57, %v1808_v10  ;;  %v634_v0 = vadd.f32 %v626_v30, %v1808_v10  ;;  %v633_v8 = vadd.f32 %v625_v62, %v1808_v10  ;;  %v628_v7 = vmul.f32 %v1752_v46, %v1802_v1  ;;  %1554 = vmatprep.subr.msk.bf16.mxu0 %vm764_vm3, %v1570_v18 }
  0x93   : > { %v395_v4 = vpop.permute.xlu1 %394  ;;  %v639_v34 = vmax.f32 %v631_v55, 0.0  ;;  %v638_v58 = vmax.f32 %v630_v56, 0.0  ;;  %v627_v9 = vmul.f32 %v1759_v50, %v1802_v1  ;;  %v629_v46 = vmul.f32 %v1778_v63, %v1802_v1  ;;  %v1137_v63 = vld [vmem:[%s2044_s3] sm:$0x3] }
  0x94   : > { %419 = vst.msk [vmem:[#allocation2 + $0x50] sm:$0xff] %vm417_vm2, %v395_v4  ;;  %v401_v24 = vpop.permute.xlu0 %400  ;;  %v640_v61 = vmax.f32 %v632_v22, 0.0  ;;  %v642_v13 = vmax.f32 %v634_v0, 0.0  ;;  %v641_v14 = vmax.f32 %v633_v8, 0.0  ;;  %v636_v38 = vadd.f32 %v628_v7, %v1808_v10  ;;  %1555 = vmatprep.subr.msk.bf16.mxu1 %vm1163_vm4, %v1137_v63 }
  0x95   : > { %478 = vrot.lane.b32.xlu0 %v460_v23, %s1584_s24  ;;  %480 = vrot.lane.b32.xlu1 %v461_v11, %s1584_s24  ;;  %422 = vst.msk [vmem:[#allocation2 + $0x68] sm:$0xff] %vm417_vm2, %v401_v24  ;;  %v635_v42 = vadd.f32 %v627_v9, %v1808_v10  ;;  %v637_v50 = vadd.f32 %v629_v46, %v1808_v10  ;;  %v1165_v1 = vsel %vm1163_vm4, %v1137_v63, 0 }
  0x96   : > { %v644_v15 = vmax.f32 %v636_v38, 0.0 }
  0x97   : > { %v399_v27 = vpop.permute.xlu1 %398  ;;  %v643_v16 = vmax.f32 %v635_v42, 0.0  ;;  %v645_v2 = vmax.f32 %v637_v50, 0.0 }
  0x98   : > { %421 = vst.msk [vmem:[#allocation2 + $0x60] sm:$0xff] %vm417_vm2, %v399_v27  ;;  %v405_v29 = vpop.permute.xlu0 %404 }
  0x99   : > { %507 = vrot.lane.b32.xlu0 %v458_v19, %s1582_s21  ;;  %509 = vrot.lane.b32.xlu1 %v459_v20, %s1582_s21  ;;  %424 = vst.msk [vmem:[#allocation2 + $0x78] sm:$0xff] %vm417_vm2, %v405_v29  ;;  %v572_v19 = vmax.f32 %v1783_v3, 0.0  ;;  %v1914_v20 = vsel %vm764_vm3, %v1570_v18, 0 }
  0x9b   : > { %v403_v33 = vpop.permute.xlu1 %402 }
  0x9c   : > { %423 = vst.msk [vmem:[#allocation2 + $0x70] sm:$0xff] %vm417_vm2, %v403_v33  ;;  %v582_v37 = vpop.permute.xlu0 %581 }
  0x9d   : > { %511 = vrot.lane.b32.xlu0 %v460_v23, %s1582_s21  ;;  %513 = vrot.lane.b32.xlu1 %v461_v11, %s1582_s21  ;;  %606 = vst.msk [vmem:[#allocation2 + $0x8] sm:$0xff] %vm417_vm2, %v582_v37 }
  0x9f   : > { %v407_v39 = vpop.permute.xlu1 %406 }
  0xa0   : > { %425 = vst.msk [vmem:[#allocation2 + $0x80] sm:$0xff] %vm417_vm2, %v407_v39  ;;  %v586_v45 = vpop.permute.xlu0 %585 }
  0xa1   : > { %482 = vrot.lane.b32.xlu0 %v462_v40, %s1584_s24  ;;  %484 = vrot.lane.b32.xlu1 %v463_v41, %s1584_s24  ;;  %608 = vst.msk [vmem:[#allocation2 + $0x18] sm:$0xff] %vm417_vm2, %v586_v45 }
  0xa3   : > { %v584_v12 = vpop.permute.xlu1 %583 }
  0xa4   : > { %607 = vst.msk [vmem:[#allocation2 + $0x10] sm:$0xff] %vm417_vm2, %v584_v12  ;;  %v590_v48 = vpop.permute.xlu0 %589 }
  0xa5   : > { %486 = vrot.lane.b32.xlu0 %v464_v26, %s1584_s24  ;;  %488 = vrot.lane.b32.xlu1 %v465_v47, %s1584_s24  ;;  %610 = vst.msk [vmem:[#allocation2 + $0x28] sm:$0xff] %vm417_vm2, %v590_v48 }
  0xa7   : > { %v588_v49 = vpop.permute.xlu1 %587 }
  0xa8   : > { %609 = vst.msk [vmem:[#allocation2 + $0x20] sm:$0xff] %vm417_vm2, %v588_v49  ;;  %v594_v51 = vpop.permute.xlu0 %593 }
  0xa9   : > { %515 = vrot.lane.b32.xlu0 %v462_v40, %s1582_s21  ;;  %517 = vrot.lane.b32.xlu1 %v463_v41, %s1582_s21  ;;  %612 = vst.msk [vmem:[#allocation2 + $0x38] sm:$0xff] %vm417_vm2, %v594_v51 }
  0xab   : > { %v592_v54 = vpop.permute.xlu1 %591 }
  0xac   : > { %611 = vst.msk [vmem:[#allocation2 + $0x30] sm:$0xff] %vm417_vm2, %v592_v54  ;;  %v718_v54 = vld [vmem:[#allocation2] sm:$0xff] }
  0xad   : > { %519 = vrot.lane.b32.xlu0 %v464_v26, %s1582_s21  ;;  %521 = vrot.lane.b32.xlu1 %v465_v47, %s1582_s21 }
  0xb1   : > { %656 = vrot.lane.b32.xlu0 %v639_v34, %s1584_s24  ;;  %654 = vrot.lane.b32.xlu1 %v638_v58, %s1584_s24 }
  0xb5   : > { %686 = vrot.lane.b32.xlu0 %v638_v58, %s1582_s21  ;;  %658 = vrot.lane.b32.xlu1 %v640_v61, %s1584_s24 }
  0xb9   : > { %690 = vrot.lane.b32.xlu0 %v640_v61, %s1582_s21  ;;  %688 = vrot.lane.b32.xlu1 %v639_v34, %s1582_s21 }
  0xbd   : > { %662 = vrot.lane.b32.xlu0 %v642_v13, %s1584_s24  ;;  %660 = vrot.lane.b32.xlu1 %v641_v14, %s1584_s24 }
  0xc1   : > { %666 = vrot.lane.b32.xlu0 %v644_v15, %s1584_s24  ;;  %664 = vrot.lane.b32.xlu1 %v643_v16, %s1584_s24 }
  0xc5   : > { %694 = vrot.lane.b32.xlu0 %v642_v13, %s1582_s21  ;;  %692 = vrot.lane.b32.xlu1 %v641_v14, %s1582_s21 }
  0xc9   : > { %698 = vrot.lane.b32.xlu0 %v644_v15, %s1582_s21  ;;  %696 = vrot.lane.b32.xlu1 %v643_v16, %s1582_s21 }
  0xcd   : > { %668 = vrot.lane.b32.xlu0 %v645_v2, %s1584_s24  ;;  %595 = vrot.lane.b32.xlu1 %v572_v19, %s1582_s21 }
  0xd1   : > { %700 = vrot.lane.b32.xlu1 %v645_v2, %s1582_s21 }
 0x103   : > { %v475_v3 = vpop.permute.xlu0 %474  ;;  %v477_v10 = vpop.permute.xlu1 %476 }
 0x104   : > { %499 = vst.msk [vmem:[#allocation2 + $0x49] sm:$0x7f] %vm498_vm5, %v475_v3  ;;  %500 = vst.msk [vmem:[#allocation2 + $0x51] sm:$0x7f] %vm498_vm5, %v477_v10 }
 0x107   : > { %v479_v5 = vpop.permute.xlu0 %478  ;;  %v481_v21 = vpop.permute.xlu1 %480 }
 0x108   : > { %501 = vst.msk [vmem:[#allocation2 + $0x59] sm:$0x7f] %vm498_vm5, %v479_v5  ;;  %502 = vst.msk [vmem:[#allocation2 + $0x61] sm:$0x7f] %vm498_vm5, %v481_v21 }
 0x10b   : > { %v508_v4 = vpop.permute.xlu0 %507  ;;  %v510_v23 = vpop.permute.xlu1 %509 }
 0x10c   : > { %532 = vst.msk [vmem:[#allocation2 + $0x48] sm:$0xff] %vm531_vm6, %v508_v4  ;;  %533 = vst.msk [vmem:[#allocation2 + $0x50] sm:$0xff] %vm531_vm6, %v510_v23 }
 0x10f   : > { %v512_v11 = vpop.permute.xlu0 %511  ;;  %v514_v24 = vpop.permute.xlu1 %513 }
 0x110   : > { %534 = vst.msk [vmem:[#allocation2 + $0x58] sm:$0xff] %vm531_vm6, %v512_v11  ;;  %535 = vst.msk [vmem:[#allocation2 + $0x60] sm:$0xff] %vm531_vm6, %v514_v24 }
 0x113   : > { %v483_v25 = vpop.permute.xlu0 %482  ;;  %v485_v27 = vpop.permute.xlu1 %484  ;;  %v1125_v28 = vld [vmem:[#allocation2 + $0x48] sm:$0xff]  ;;  %v1126_v29 = vld [vmem:[#allocation2 + $0x50] sm:$0xff] }
 0x114   : > { %503 = vst.msk [vmem:[#allocation2 + $0x69] sm:$0x7f] %vm498_vm5, %v483_v25  ;;  %504 = vst.msk [vmem:[#allocation2 + $0x71] sm:$0x7f] %vm498_vm5, %v485_v27  ;;  %v1133_v31 = vpack.c.bf16 %v1126_v29, %v1125_v28 }
 0x116   : > { %1142 = vrot.lane.b32.xlu0 %v1133_v31, %s1584_s24  ;;  %1498 = vmatprep.mubr.msk.bf16.mxu1 %vm323_vm1, %v1133_v31 }
 0x117   : > { %v487_v32 = vpop.permute.xlu0 %486  ;;  %v489_v33 = vpop.permute.xlu1 %488  ;;  %v1127_v35 = vld [vmem:[#allocation2 + $0x58] sm:$0xff]  ;;  %v1128_v36 = vld [vmem:[#allocation2 + $0x60] sm:$0xff] }
 0x118   : > { %505 = vst.msk [vmem:[#allocation2 + $0x79] sm:$0x7f] %vm498_vm5, %v487_v32  ;;  %506 = vst.msk [vmem:[#allocation2 + $0x81] sm:$0x7f] %vm498_vm5, %v489_v33  ;;  %v1134_v37 = vpack.c.bf16 %v1128_v36, %v1127_v35 }
 0x11a   : > { %1144 = vrot.lane.b32.xlu1 %v1134_v37, %s1584_s24  ;;  %1499 = vmatmul.mubr.msk.bf16.vlgmr.msra.gmra.mrb[0].mxu1 %vm323_vm1, %v1134_v37 }
 0x11b   : > { %v516_v6 = vpop.permute.xlu0 %515  ;;  %v518_v17 = vpop.permute.xlu1 %517  ;;  %1527 = vmatpush3.bf16.msra.mxu1 %v1165_v1 }
 0x11c   : > { %536 = vst.msk [vmem:[#allocation2 + $0x68] sm:$0xff] %vm531_vm6, %v516_v6  ;;  %537 = vst.msk [vmem:[#allocation2 + $0x70] sm:$0xff] %vm531_vm6, %v518_v17 }
 0x11f   : > { %v520_v39 = vpop.permute.xlu0 %519  ;;  %v522_v40 = vpop.permute.xlu1 %521 }
 0x120   : > { %538 = vst.msk [vmem:[#allocation2 + $0x78] sm:$0xff] %vm531_vm6, %v520_v39  ;;  %539 = vst.msk [vmem:[#allocation2 + $0x80] sm:$0xff] %vm531_vm6, %v522_v40 }
 0x123   : > { %v657_v41 = vpop.permute.xlu0 %656  ;;  %v655_v43 = vpop.permute.xlu1 %654  ;;  %v1129_v44 = vld [vmem:[#allocation2 + $0x68] sm:$0xff]  ;;  %v1130_v45 = vld [vmem:[#allocation2 + $0x70] sm:$0xff] }
 0x124   : > { %679 = vst.msk [vmem:[#allocation2 + $0x11] sm:$0x7f] %vm498_vm5, %v657_v41  ;;  %678 = vst.msk [vmem:[#allocation2 + $0x9] sm:$0x7f] %vm498_vm5, %v655_v43  ;;  %v1135_v12 = vpack.c.bf16 %v1130_v45, %v1129_v44 }
 0x126   : > { %1146 = vrot.lane.b32.xlu0 %v1135_v12, %s1584_s24  ;;  %1502 = vmatprep.mubr.msk.bf16.mxu1 %vm323_vm1, %v1135_v12 }
 0x127   : > { %v687_v26 = vpop.permute.xlu0 %686  ;;  %v659_v47 = vpop.permute.xlu1 %658  ;;  %v1131_v48 = vld [vmem:[#allocation2 + $0x78] sm:$0xff]  ;;  %v1132_v49 = vld [vmem:[#allocation2 + $0x80] sm:$0xff] }
 0x128   : > { %710 = vst.msk [vmem:[#allocation2 + $0x8] sm:$0xff] %vm531_vm6, %v687_v26  ;;  %v1136_v51 = vpack.c.bf16 %v1132_v49, %v1131_v48 }
 0x129   : > { %680 = vst.msk [vmem:[#allocation2 + $0x19] sm:$0x7f] %vm498_vm5, %v659_v47 }
 0x12a   : > { %1148 = vrot.lane.b32.xlu1 %v1136_v51, %s1584_s24  ;;  %1503 = vmatmul.mubr.msk.bf16.gmra.mrb[4].mxu1 %vm323_vm1, %v1136_v51 }
 0x12b   : > { %v691_v52 = vpop.permute.xlu0 %690  ;;  %v689_v53 = vpop.permute.xlu1 %688 }
 0x12c   : > { %712 = vst.msk [vmem:[#allocation2 + $0x18] sm:$0xff] %vm531_vm6, %v691_v52  ;;  %711 = vst.msk [vmem:[#allocation2 + $0x10] sm:$0xff] %vm531_vm6, %v689_v53 }
 0x12f   : > { %v663_v55 = vpop.permute.xlu0 %662  ;;  %v661_v56 = vpop.permute.xlu1 %660  ;;  %v719_v57 = vld [vmem:[#allocation2 + $0x8] sm:$0xff] }
 0x130   : > { %682 = vst.msk [vmem:[#allocation2 + $0x29] sm:$0x7f] %vm498_vm5, %v663_v55  ;;  %681 = vst.msk [vmem:[#allocation2 + $0x21] sm:$0x7f] %vm498_vm5, %v661_v56  ;;  %v726_v34 = vpack.c.bf16 %v719_v57, %v718_v54 }
 0x132   : > { %1508 = vmatprep.mubr.msk.bf16.mxu0 %vm323_vm1, %v726_v34 }
 0x133   : > { %v667_v58 = vpop.permute.xlu0 %666  ;;  %v665_v22 = vpop.permute.xlu1 %664  ;;  %v720_v59 = vld [vmem:[#allocation2 + $0x10] sm:$0xff]  ;;  %v721_v60 = vld [vmem:[#allocation2 + $0x18] sm:$0xff] }
 0x134   : > { %684 = vst.msk [vmem:[#allocation2 + $0x39] sm:$0x7f] %vm498_vm5, %v667_v58  ;;  %683 = vst.msk [vmem:[#allocation2 + $0x31] sm:$0x7f] %vm498_vm5, %v665_v22  ;;  %v727_v61 = vpack.c.bf16 %v721_v60, %v720_v59  ;;  %v926_v50 = vpack.c.bf16 %v720_v59, %v719_v57 }
 0x136   : > { %1509 = vmatmul.mubr.msk.bf16.vlgmr.msra.gmra.mrb[0].mxu0 %vm323_vm1, %v727_v61 }
 0x137   : > { %v695_v30 = vpop.permute.xlu0 %694  ;;  %v693_v62 = vpop.permute.xlu1 %692  ;;  %1517 = vmatpush3.bf16.msra.mxu0 %v1914_v20 }
 0x138   : > { %714 = vst.msk [vmem:[#allocation2 + $0x28] sm:$0xff] %vm531_vm6, %v695_v30  ;;  %713 = vst.msk [vmem:[#allocation2 + $0x20] sm:$0xff] %vm531_vm6, %v693_v62 }
 0x13b   : > { %v699_v0 = vpop.permute.xlu0 %698  ;;  %v697_v8 = vpop.permute.xlu1 %696 }
 0x13c   : > { %716 = vst.msk [vmem:[#allocation2 + $0x38] sm:$0xff] %vm531_vm6, %v699_v0  ;;  %715 = vst.msk [vmem:[#allocation2 + $0x30] sm:$0xff] %vm531_vm6, %v697_v8 }
 0x13f   : > { %v669_v7 = vpop.permute.xlu0 %668  ;;  %v596_v9 = vpop.permute.xlu1 %595  ;;  %v722_v13 = vld [vmem:[#allocation2 + $0x20] sm:$0xff]  ;;  %v723_v14 = vld [vmem:[#allocation2 + $0x28] sm:$0xff] }
 0x140   : > { %613 = vst.msk [vmem:[#allocation2 + $0x40] sm:$0xff] %vm417_vm2, %v596_v9  ;;  %v728_v38 = vpack.c.bf16 %v723_v14, %v722_v13  ;;  %v927_v18 = vpack.c.bf16 %v722_v13, %v721_v60 }
 0x141   : > { %685 = vst.msk [vmem:[#allocation2 + $0x41] sm:$0x7f] %vm498_vm5, %v669_v7 }
 0x142   : > { %1512 = vmatprep.mubr.msk.bf16.mxu0 %vm323_vm1, %v728_v38 }
 0x143   : > { %v701_v42 = vpop.permute.xlu1 %700  ;;  %v724_v15 = vld [vmem:[#allocation2 + $0x30] sm:$0xff]  ;;  %v725_v16 = vld [vmem:[#allocation2 + $0x38] sm:$0xff] }
 0x144   : > { %717 = vst.msk [vmem:[#allocation2 + $0x40] sm:$0xff] %vm531_vm6, %v701_v42  ;;  %v729_v46 = vpack.c.bf16 %v725_v16, %v724_v15  ;;  %v928_v19 = vpack.c.bf16 %v724_v15, %v723_v14 }
 0x146   : > { %1513 = vmatmul.mubr.msk.bf16.gmra.mrb[4].mxu0 %vm323_vm1, %v729_v46 }
 0x147   : > { %1518 = vmatprep.mubr.msk.bf16.mxu0 %vm323_vm1, %v926_v50 }
 0x14b   : > { %v925_v20 = vld [vmem:[#allocation2 + $0x40] sm:$0xff] }
 0x14c   : > { %v929_v2 = vpack.c.bf16 %v925_v20, %v725_v16 }
 0x14e   : > { %1519 = vmatmul.mubr.msk.bf16.vlgmr.msra.gmra.mrb[0].mxu0 %vm323_vm1, %v927_v18 }
 0x14f   : > { %1522 = vmatprep.mubr.msk.bf16.mxu0 %vm323_vm1, %v928_v19 }
 0x156   : > { %1523 = vmatmul.mubr.msk.bf16.gmra.mrb[4].mxu0 %vm323_vm1, %v929_v2 }
 0x188   : > { %v1143_v63 = vpop.permute.xlu0 %1142 }
 0x189   : > { %1528 = vmatprep.mubr.msk.bf16.mxu1 %vm1150_vm7, %v1143_v63 }
 0x18c   : > { %v1145_v1 = vpop.permute.xlu1 %1144 }
 0x18d   : > { %1529 = vmatmul.mubr.msk.bf16.vlgmr.msra.gmra.mrb[8].mxu1 %vm1150_vm7, %v1145_v1 }
 0x198   : > { %v1147_v3 = vpop.permute.xlu0 %1146 }
 0x199   : > { %1532 = vmatprep.mubr.msk.bf16.mxu1 %vm1150_vm7, %v1147_v3 }
 0x19c   : > { %v1149_v10 = vpop.permute.xlu1 %1148 }
 0x19d   : > { %1533 = vmatmul.mubr.msk.bf16.gmra.mrb[12].mxu1 %vm1150_vm7, %v1149_v10 }
 0x1ed   : > { %v1500_v5 = vpop.f32.mrb[0].mxu1 }
 0x1ee   : > { %v802_v21 = vpop.f32.mrb[1].mxu1 }
 0x1ef   : > { %v1501_v4 = vpop.f32.mrb[2].mxu1 }
 0x1f0   : > { %v805_v23 = vpop.f32.mrb[3].mxu1 }
 0x1fd   : > { %v1504_v11 = vpop.f32.mrb[4].mxu1 }
 0x1fe   : > { %v818_v24 = vpop.f32.mrb[5].mxu1 }
 0x1ff   : > { %v1505_v25 = vpop.f32.mrb[6].mxu1 }
 0x200   : > { %v821_v27 = vpop.f32.mrb[7].mxu1 }
 0x221   : > { %v1520_v28 = vpop.f32.mrb[0].mxu0 }
 0x222   : > { %v1536_v29 = vadd.f32 %v1520_v28, %v1500_v5  ;;  %v987_v31 = vpop.f32.mrb[1].mxu0 }
 0x223   : > { %v1537_v32 = vadd.f32 %v987_v31, %v802_v21  ;;  %v1521_v33 = vpop.f32.mrb[2].mxu0 }
 0x224   : > { %v1462_v35 = vpack.c.bf16 %v1536_v29, %v1536_v29  ;;  %v1538_v36 = vadd.f32 %v1521_v33, %v1501_v4  ;;  %v990_v37 = vpop.f32.mrb[3].mxu0  ;;  %v1055_v40 = vmul.f32 %v1536_v29, %v1536_v29  ;;  %v1031_v48 = vsel %vm1027_vm9, %v1536_v29, 0.0 }
 0x225   : > { %v1053_v6 = vmul.f32 %v1537_v32, %v1537_v32  ;;  %v1460_v17 = vpack.c.bf16 %v1537_v32, %v1537_v32  ;;  %v1539_v39 = vadd.f32 %v990_v37, %v805_v23  ;;  %v1028_v43 = vsel %vm1027_vm9, %v1537_v32, 0.0  ;;  %v1026_v37 = vld [vmem:[#allocation3] sm:$0x1] }
 0x226   : > { %1119 = vst.msk [vmem:[%s1650_s15 + $0x8] sm:$0xf] %vm1116_vm8, %v1462_v35  ;;  %v1463_v41 = vpack.c.bf16 %v1538_v36, %v1538_v36  ;;  %v1056_v26 = vmul.f32 %v1538_v36, %v1538_v36  ;;  %v1064_v57 = vsel %vm1027_vm9, %v1055_v40, 0.0  ;;  %v1033_v22 = vsel %vm1027_vm9, %v1538_v36, 0.0 }
 0x227   : > { %1117 = vst.msk [vmem:[%s1650_s15] sm:$0xf] %vm1116_vm8, %v1460_v17  ;;  %v1029_v44 = vsel %vm1027_vm9, %v1539_v39, 0.0  ;;  %v1054_v45 = vmul.f32 %v1539_v39, %v1539_v39  ;;  %v1461_v12 = vpack.c.bf16 %v1539_v39, %v1539_v39  ;;  %v1061_v49 = vsel %vm1027_vm9, %v1053_v6, 0.0  ;;  %v1052_v39 = vld [vmem:[#allocation3 + $0x1] sm:$0x1] }
 0x228   : > { %1120 = vst.msk [vmem:[%s1650_s15 + $0xc] sm:$0xf] %vm1116_vm8, %v1463_v41  ;;  %v1030_v47 = vadd.f32 %v1029_v44, %v1028_v43  ;;  %v1066_v59 = vsel %vm1027_vm9, %v1056_v26, 0.0 }
 0x229   : > { %v1062_v51 = vsel %vm1027_vm9, %v1054_v45, 0.0  ;;  %1118 = vst.msk [vmem:[%s1650_s15 + $0x4] sm:$0xf] %vm1116_vm8, %v1461_v12  ;;  %v1524_v52 = vpop.f32.mrb[4].mxu0 }
 0x22a   : > { %v1032_v53 = vadd.f32 %v1031_v48, %v1030_v47  ;;  %v1063_v54 = vadd.f32 %v1062_v51, %v1061_v49  ;;  %v1540_v55 = vadd.f32 %v1524_v52, %v1504_v11  ;;  %v1003_v56 = vpop.f32.mrb[5].mxu0 }
 0x22b   : > { %v1541_v34 = vadd.f32 %v1003_v56, %v818_v24  ;;  %v1525_v58 = vpop.f32.mrb[6].mxu0 }
 0x22c   : > { %v1065_v60 = vadd.f32 %v1064_v57, %v1063_v54  ;;  %v1466_v61 = vpack.c.bf16 %v1540_v55, %v1540_v55  ;;  %v1006_v30 = vpop.f32.mrb[7].mxu0  ;;  %v1034_v62 = vadd.f32 %v1033_v22, %v1032_v53  ;;  %v1542_v13 = vadd.f32 %v1525_v58, %v1505_v25 }
 0x22d   : > { %v1035_v0 = vsel %vm1027_vm9, %v1541_v34, 0.0  ;;  %v1057_v8 = vmul.f32 %v1541_v34, %v1541_v34  ;;  %v1464_v7 = vpack.c.bf16 %v1541_v34, %v1541_v34  ;;  %v1543_v14 = vadd.f32 %v1006_v30, %v821_v27 }
 0x22e   : > { %1123 = vst.msk [vmem:[%s1650_s15 + $0x18] sm:$0xf] %vm1116_vm8, %v1466_v61  ;;  %v1067_v9 = vadd.f32 %v1066_v59, %v1065_v60  ;;  %v1036_v38 = vadd.f32 %v1035_v0, %v1034_v62  ;;  %v1467_v16 = vpack.c.bf16 %v1542_v13, %v1542_v13  ;;  %v1059_v46 = vmul.f32 %v1540_v55, %v1540_v55 }
 0x22f   : > { %v1068_v42 = vsel %vm1027_vm9, %v1057_v8, 0.0  ;;  %1121 = vst.msk [vmem:[%s1650_s15 + $0x10] sm:$0xf] %vm1116_vm8, %v1464_v7  ;;  %v1037_v50 = vsel %vm1027_vm9, %v1543_v14, 0.0  ;;  %v1058_v18 = vmul.f32 %v1543_v14, %v1543_v14  ;;  %v1465_v19 = vpack.c.bf16 %v1543_v14, %v1543_v14  ;;  %v1282_v8 = vld [vmem:[%s2045_s4] sm:$0x1] (!%p1454_p5) }
 0x230   : > { %v1069_v15 = vadd.f32 %v1068_v42, %v1067_v9  ;;  %1124 = vst.msk [vmem:[%s1650_s15 + $0x1c] sm:$0xf] %vm1116_vm8, %v1467_v16  ;;  %v1038_v20 = vadd.f32 %v1037_v50, %v1036_v38  ;;  %v1039_v2 = vsel %vm1027_vm9, %v1540_v55, 0.0  ;;  %v1060_v63 = vmul.f32 %v1542_v13, %v1542_v13 }
 0x231   : > { %v1070_v1 = vsel %vm1027_vm9, %v1058_v18, 0.0  ;;  %1122 = vst.msk [vmem:[%s1650_s15 + $0x14] sm:$0xf] %vm1116_vm8, %v1465_v19  ;;  %v1072_v5 = vsel %vm1027_vm9, %v1059_v46, 0.0  ;;  %v1041_v21 = vsel %vm1027_vm9, %v1542_v13, 0.0 }
 0x232   : > { %v1040_v3 = vadd.f32 %v1039_v2, %v1038_v20  ;;  %v1071_v10 = vadd.f32 %v1070_v1, %v1069_v15  ;;  %v1074_v11 = vsel %vm1027_vm9, %v1060_v63, 0.0  ;;  %v1287_v13 = vld [vmem:[%s2046_s5] sm:$0x1] (!%p1454_p5) }
 0x234   : > { %v1042_v4 = vadd.f32 %v1041_v21, %v1040_v3  ;;  %v1073_v23 = vadd.f32 %v1072_v5, %v1071_v10 }
 0x236   : > { %v1043_v24 = vrot.slane %v1042_v4, 4  ;;  %v1075_v25 = vadd.f32 %v1074_v11, %v1073_v23 }
 0x238   : > { %v1044_v27 = vadd.f32 %v1043_v24, %v1042_v4  ;;  %v1076_v28 = vrot.slane %v1075_v25, 4 }
 0x23a   : > { %v1045_v29 = vrot.slane %v1044_v27, 2  ;;  %v1077_v31 = vadd.f32 %v1076_v28, %v1075_v25 }
 0x23c   : > { %v1046_v32 = vadd.f32 %v1045_v29, %v1044_v27  ;;  %v1078_v33 = vrot.slane %v1077_v31, 2 }
 0x23e   : > { %v1047_v35 = vrot.slane %v1046_v32, 1  ;;  %v1079_v36 = vadd.f32 %v1078_v33, %v1077_v31 }
 0x240   : > { %v1048_v6 = vadd.f32 %v1047_v35, %v1046_v32  ;;  %v1080_v17 = vrot.slane %v1079_v36, 1 }
 0x242   : > { %v1049_v40 = vadd.f32 %v1048_v6, %v1026_v37  ;;  %v1081_v41 = vadd.f32 %v1080_v17, %v1079_v36 }
 0x244   : > { %1051 = vst.msk [vmem:[#allocation3] sm:$0x1] %vm1050_vm10, %v1049_v40  ;;  %v1082_v43 = vadd.f32 %v1081_v41, %v1052_v39 }
 0x246   : > { %1083 = vst.msk [vmem:[#allocation3 + $0x1] sm:$0x1] %vm1050_vm10, %v1082_v43 }
 0x24b   : > { %v1276_v22 = vld [vmem:[#allocation3] sm:$0x1] (!%p1454_p5) }
 0x24c   : > { %v1277_v60 = vmul.f32 (!%p1454_p5), 0.0078125, %v1276_v22 }
 0x24d   : > { %v1278_v59 = vld [vmem:[#allocation3 + $0x1] sm:$0x1] (!%p1454_p5) }
 0x24e   : > { %v1279_v61 = vmul.f32 (!%p1454_p5), 0.0078125, %v1278_v59  ;;  %v1280_v30 = vmul.f32 (!%p1454_p5), %v1277_v60, %v1277_v60 }
 0x250   : > { %v1281_v62 = vsub.f32 (!%p1454_p5), %v1279_v61, %v1280_v30 }
 0x252   : > { %v1283_v0 = vadd.f32 (!%p1454_p5), 1e-05, %v1281_v62 }
 0x254   : > { %1571 = vrsqrt.f32 (!%p1454_p5), %v1283_v0 }
 0x25e   : > { %v1572_v7 = vpop.eup (!%p1454_p5), %1571 }
 0x25f   : > { %v1285_v9 = vmul.f32 (!%p1454_p5), %v1572_v7, %v1282_v8 }
 0x260   : > { %v1530_v44 = vpop.f32.mrb[8].mxu1 }
 0x261   : > { %v1470_v45 = vpack.c.bf16 %v1530_v44, %v1530_v44  ;;  %v1201_v12 = vpop.f32.mrb[9].mxu1  ;;  %1286 = vst.msk [vmem:[%s2049_s8] sm:$0x1] (!%p1454_p5), %vm1050_vm10, %v1285_v9  ;;  %v1288_v14 = vmul.f32 (!%p1454_p5), %v1285_v9, %v1277_v60 }
 0x262   : > { %v1468_v26 = vpack.c.bf16 %v1201_v12, %v1201_v12  ;;  %v1531_v47 = vpop.f32.mrb[10].mxu1 }
 0x263   : > { %1266 = vst.msk [vmem:[%s1655_s18 + $0x8] sm:$0xf] %vm1116_vm8, %v1470_v45  ;;  %v1471_v48 = vpack.c.bf16 %v1531_v47, %v1531_v47  ;;  %v1204_v49 = vpop.f32.mrb[11].mxu1  ;;  %v1289_v38 = vsub.f32 (!%p1454_p5), %v1287_v13, %v1288_v14 }
 0x264   : > { %1264 = vst.msk [vmem:[%s1655_s18] sm:$0xf] %vm1116_vm8, %v1468_v26  ;;  %v1469_v51 = vpack.c.bf16 %v1204_v49, %v1204_v49 }
 0x265   : > { %1267 = vst.msk [vmem:[%s1655_s18 + $0xc] sm:$0xf] %vm1116_vm8, %v1471_v48 }
 0x266   : > { %1265 = vst.msk [vmem:[%s1655_s18 + $0x4] sm:$0xf] %vm1116_vm8, %v1469_v51 }
 0x267   : > { %1290 = vst.msk [vmem:[%s2049_s8 + $0x1] sm:$0x1] (!%p1454_p5), %vm1050_vm10, %v1289_v38 }
 0x270   : > { %v1534_v52 = vpop.f32.mrb[12].mxu1  ;;  %1275 = sbr.rel (%p1454_p5) target bundleno = 631 (0x277), region = 52 }
 0x271   : > { %v1474_v53 = vpack.c.bf16 %v1534_v52, %v1534_v52  ;;  %v1217_v54 = vpop.f32.mrb[13].mxu1 }
 0x272   : > { %v1472_v55 = vpack.c.bf16 %v1217_v54, %v1217_v54  ;;  %v1535_v56 = vpop.f32.mrb[14].mxu1 }
 0x273   : > { %1270 = vst.msk [vmem:[%s1655_s18 + $0x18] sm:$0xf] %vm1116_vm8, %v1474_v53  ;;  %v1475_v57 = vpack.c.bf16 %v1535_v56, %v1535_v56  ;;  %v1220_v34 = vpop.f32.mrb[15].mxu1 }
 0x274   : > { %1268 = vst.msk [vmem:[%s1655_s18 + $0x10] sm:$0xf] %vm1116_vm8, %v1472_v55  ;;  %v1473_v58 = vpack.c.bf16 %v1220_v34, %v1220_v34 }
 0x275   : > { %1271 = vst.msk [vmem:[%s1655_s18 + $0x1c] sm:$0xf] %vm1116_vm8, %v1475_v57 }
 0x276   : > { %1269 = vst.msk [vmem:[%s1655_s18 + $0x14] sm:$0xf] %vm1116_vm8, %v1473_v58 }
 0x277 PF: > { %s19_s27 = sadd.s32 1, %s1579_s27  }
 0x278   : > { %p16_p6 = scmp.ge.s32.totalorder %s19_s27, 4  }
 0x27a   :  { %18 = sbr.rel (!%p16_p6) target bundleno = 1 (0x1), region = 107 }

// kernel: meta_network_block_forward.9
= control target key start
LH: loop header
LB: loop body
LE: loop exit
PB: predicated region body
PF: predicated region fallthrough
CT: control target
= control target key end

     0   :  { %s972_s15 = smov 0   ;;  %s1124_s0 = inlined_call_operand.vmem [shape: bf16[2,8,1,8,8], index: 0, kind: input, shape index: {}]   ;;  %s1125_s1 = inlined_call_operand.vmem [shape: f32[2,8], index: 1, kind: input, shape index: {}]   ;;  %s1126_s2 = inlined_call_operand.vmem [shape: bf16[3,24,8], index: 2, kind: input, shape index: {}]   ;;  %s1127_s3 = inlined_call_operand.vmem [shape: f32[2,64,8], index: 3, kind: input, shape index: {}]   ;;  %s1128_s4 = inlined_call_operand.vmem [shape: f32[2,64,8], index: 4, kind: output, shape index: {}]  }
   0x1 LB: > { %s780_s16 = sadd.s32 4294967295, %s942_s15   ;;  %p784_p0 = scmp.ge.s32.totalorder %s942_s15, 1  ;;  %s942_s15 = sphi %s972_s15, %s14_s15  }
   0x2   : > { %p172_p1 = scmp.lt.s32.totalorder %s942_s15, 3 }
   0x4   : > { %p173_p2 = pnand %p784_p0, %p172_p1 }
   0x5   : > { %p203_p3 = scmp.lt.s32.totalorder (!%p173_p2), %s780_s16, 1  ;;  %vm219_vm0 = vcmask (!%p173_p2), 195584   ;;  %v944_v0 = vmov (!%p173_p2), 0.0   ;;  %v791_v1 = vld [vmem:[%s1125_s1] ss:$0 sm:$0xff] (!%p173_p2)  ;;  %vm281_vm1 = vcmask (!%p173_p2), 63488  }
   0x6   : > { %176 = sbr.rel (%p173_p2) target bundleno = 410 (0x19a), region = 36  ;;  %223 = vst.msk [vmem:[#allocation2 + $0x18] sm:$0xff] (!%p173_p2), %vm219_vm0, %v944_v0  ;;  %220 = vst.msk [vmem:[#allocation2] sm:$0xff] (!%p173_p2), %vm219_vm0, %v944_v0  ;;  %v792_v10 = vld [vmem:[%s1125_s1 + $0x1] ss:$0 sm:$0xff] (!%p173_p2)  ;;  %v930_v39 = vld [vmem:[%s1126_s2 + $0xc] sm:$0xff] (!%p173_p2)  }
   0x7   : > { %221 = vst.msk [vmem:[#allocation2 + $0x8] sm:$0xff] (!%p173_p2), %vm219_vm0, %v944_v0  ;;  %222 = vst.msk [vmem:[#allocation2 + $0x10] sm:$0xff] (!%p173_p2), %vm219_vm0, %v944_v0  ;;  %v1008_v40 = vld [vmem:[%s1126_s2] sm:$0xff] (!%p173_p2)   ;;  %s945_s29 = smov (!%p173_p2), 8   ;;  %859 = vmatprep.subr.bf16.mxu1 (!%p173_p2), %v930_v39  ;;  %v932_v41 = vld [vmem:[%s1126_s2 + $0x14] ss:$0 sps:$4 sm:$0xff] (!%p173_p2)  }
   0x8   : > { %224 = vst.msk [vmem:[#allocation2 + $0x20] sm:$0xff] (!%p173_p2), %vm219_vm0, %v944_v0  ;;  %225 = vst.msk [vmem:[#allocation2 + $0x28] sm:$0xff] (!%p173_p2), %vm219_vm0, %v944_v0  ;;  %871 = vmatprep.subr.bf16.mxu0 (!%p173_p2), %v1008_v40  ;;  %860 = vmatpush3.bf16.msra.mxu1 (!%p173_p2), %v930_v39  ;;  %vm416_vm2 = vcmask (!%p173_p2), 1043456   ;;  %v1028_v42 = vld [vmem:[%s1126_s2 + $0x8] ss:$0 sps:$4 sm:$0xff] (!%p173_p2)   ;;  %s946_s8 = smov (!%p173_p2), 16  }
   0x9   : > { %226 = vst.msk [vmem:[#allocation2 + $0x30] sm:$0xff] (!%p173_p2), %vm219_vm0, %v944_v0  ;;  %227 = vst.msk [vmem:[#allocation2 + $0x38] sm:$0xff] (!%p173_p2), %vm219_vm0, %v944_v0  ;;  %872 = vmatpush3.bf16.msra.mxu0 (!%p173_p2), %v1008_v40  ;;  %915 = vmatprep.subr.msk.bf16.mxu1 (!%p173_p2), %vm416_vm2, %v932_v41  ;;  %v418_v43 = vsel (!%p173_p2), %vm416_vm2, %v932_v41, 0  ;;  %v1038_v44 = vsel (!%p173_p2), %vm416_vm2, %v1028_v42, 0  ;;  %v934_v45 = vld [vmem:[%s1126_s2 + $0x18] sm:$0xff] (!%p173_p2)   ;;  %vm322_vm3 = vcmask (!%p173_p2), 130112  }
   0xa   : > { %228 = vst.msk [vmem:[#allocation2 + $0x40] sm:$0xff] (!%p173_p2), %vm219_vm0, %v944_v0  ;;  %229 = vst.msk [vmem:[#allocation2 + $0x48] sm:$0xff] (!%p173_p2), %vm219_vm0, %v944_v0  ;;  %916 = vmatprep.subr.msk.bf16.mxu0 (!%p173_p2), %vm416_vm2, %v1028_v42  ;;  %vm355_vm4 = vcmask (!%p173_p2), 195713   ;;  %vm704_vm5 = vcmask (!%p173_p2), 64512  }
   0xc   : > { %862 = vmatpush3.bf16.msra.mxu1 (!%p173_p2), %v418_v43 }
   0xd   : > { %s1130_s16 = smov (!%p203_p3, %s780_s16), 1  ;;  %874 = vmatpush3.bf16.msra.mxu0 %v1038_v44  ;;  %895 = vmatprep.subr.bf16.mxu1 %v1008_v40  ;;  %v364_v54 = vld [vmem:[#allocation2] sm:$0xff] }
   0xe   : > { %s819_s17 = sshll.u32 %s1130_s16, 5  ;;  %883 = vmatprep.subr.bf16.mxu0 %v934_v45  ;;  %s820_s13 = sshll.u32 %s1130_s16, 6 }
   0xf   : > { %s207_s20 = scalar_lea.vmem %s1124_s0, %s819_s17  ;;  %s1090_s18 = scalar_lea.vmem %s1127_s3, %s820_s13 }
  0x10   : > { %v838_v2 = vld [vmem:[%s207_s20 + $0x8] sm:$0xff]   ;;  %v823_v3 = vld [vmem:[%s207_s20] sm:$0xff]   ;;  %v839_v4 = vld [vmem:[%s207_s20 + $0x10] sm:$0xff]   ;;  %s1097_s21 = scalar_lea.vmem %s1128_s4, %s820_s13 }
  0x11   : > { %v828_v5 = vunpack.c.l.bf16 %v838_v2  ;;  %v824_v6 = vunpack.c.l.bf16 %v823_v3  ;;  %v829_v7 = vunpack.c.h.bf16 %v838_v2  ;;  %v825_v8 = vunpack.c.h.bf16 %v823_v3  ;;  %v840_v9 = vld [vmem:[%s207_s20 + $0x18] sm:$0xff]   ;;  %v935_v3 = vld [vmem:[%s1126_s2 + $0x20] ss:$0 sps:$4 sm:$0xff]  }
  0x12   : > { %v833_v11 = vunpack.c.h.bf16 %v839_v4  ;;  %v832_v12 = vunpack.c.l.bf16 %v839_v4  ;;  %v837_v13 = vunpack.c.h.bf16 %v840_v9  ;;  %v836_v14 = vunpack.c.l.bf16 %v840_v9 }
  0x13   : > { %v254_v15 = vmul.f32 %v828_v5, %v791_v1  ;;  %v252_v16 = vmul.f32 %v824_v6, %v791_v1  ;;  %v255_v17 = vmul.f32 %v829_v7, %v791_v1  ;;  %v253_v18 = vmul.f32 %v825_v8, %v791_v1 }
  0x14   : > { %v257_v19 = vmul.f32 %v833_v11, %v791_v1  ;;  %v256_v20 = vmul.f32 %v832_v12, %v791_v1  ;;  %v259_v21 = vmul.f32 %v837_v13, %v791_v1  ;;  %v258_v22 = vmul.f32 %v836_v14, %v791_v1 }
  0x15   : > { %v266_v23 = vadd.f32 %v792_v10, %v254_v15  ;;  %v264_v24 = vadd.f32 %v792_v10, %v252_v16  ;;  %v267_v25 = vadd.f32 %v792_v10, %v255_v17  ;;  %v265_v26 = vadd.f32 %v792_v10, %v253_v18  ;;  %v582_v17 = vld [vmem:[#allocation2 + $0x48] sm:$0xff] }
  0x16   : > { %v269_v27 = vadd.f32 %v792_v10, %v257_v19  ;;  %v268_v28 = vadd.f32 %v792_v10, %v256_v20  ;;  %v271_v29 = vadd.f32 %v792_v10, %v259_v21  ;;  %v270_v30 = vadd.f32 %v792_v10, %v258_v22 }
  0x17   : > { %v274_v31 = vmax.f32 %v266_v23, 0.0  ;;  %v272_v32 = vmax.f32 %v264_v24, 0.0  ;;  %v275_v33 = vmax.f32 %v267_v25, 0.0  ;;  %v273_v34 = vmax.f32 %v265_v26, 0.0  ;;  %v690_v24 = vld [vmem:[%s1090_s18 + $0x10] sm:$0xff] }
  0x18   : > { %v277_v35 = vmax.f32 %v269_v27, 0.0  ;;  %v276_v36 = vmax.f32 %v268_v28, 0.0  ;;  %v279_v37 = vmax.f32 %v271_v29, 0.0  ;;  %v278_v38 = vmax.f32 %v270_v30, 0.0  ;;  %v688_v27 = vld [vmem:[%s1090_s18] sm:$0xff]  ;;  %v691_v30 = vld [vmem:[%s1090_s18 + $0x18] sm:$0xff] }
  0x19   : > { %302 = vrot.lane.b32.xlu1 %v274_v31, %s945_s29  ;;  %298 = vrot.lane.b32.xlu0 %v272_v32, %s945_s29  ;;  %284 = vst.msk [vmem:[#allocation2 + $0x19] sm:$0x7f] %vm281_vm1, %v274_v31  ;;  %282 = vst.msk [vmem:[#allocation2 + $0x9] sm:$0x7f] %vm281_vm1, %v272_v32  ;;  %v613_v6 = vsel %vm416_vm2, %v935_v3, 0 }
  0x1a   : > { %283 = vst.msk [vmem:[#allocation2 + $0x11] sm:$0x7f] %vm281_vm1, %v273_v34  ;;  %285 = vst.msk [vmem:[#allocation2 + $0x21] sm:$0x7f] %vm281_vm1, %v275_v33 }
  0x1b   : > { %286 = vst.msk [vmem:[#allocation2 + $0x29] sm:$0x7f] %vm281_vm1, %v276_v36  ;;  %287 = vst.msk [vmem:[#allocation2 + $0x31] sm:$0x7f] %vm281_vm1, %v277_v35 }
  0x1c   : > { %288 = vst.msk [vmem:[#allocation2 + $0x39] sm:$0x7f] %vm281_vm1, %v278_v38  ;;  %289 = vst.msk [vmem:[#allocation2 + $0x41] sm:$0x7f] %vm281_vm1, %v279_v37 }
  0x1d   : > { %304 = vrot.lane.b32.xlu1 %v275_v33, %s945_s29  ;;  %300 = vrot.lane.b32.xlu0 %v273_v34, %s945_s29 }
  0x21   : > { %333 = vrot.lane.b32.xlu1 %v273_v34, %s946_s8  ;;  %331 = vrot.lane.b32.xlu0 %v272_v32, %s946_s8  ;;  %v689_v34 = vld [vmem:[%s1090_s18 + $0x8] sm:$0xff] }
  0x25   : > { %337 = vrot.lane.b32.xlu1 %v275_v33, %s946_s8  ;;  %335 = vrot.lane.b32.xlu0 %v274_v31, %s946_s8 }
  0x29   : > { %308 = vrot.lane.b32.xlu1 %v277_v35, %s945_s29  ;;  %306 = vrot.lane.b32.xlu0 %v276_v36, %s945_s29 }
  0x2d   : > { %312 = vrot.lane.b32.xlu1 %v279_v37, %s945_s29  ;;  %310 = vrot.lane.b32.xlu0 %v278_v38, %s945_s29 }
  0x31   : > { %341 = vrot.lane.b32.xlu1 %v277_v35, %s946_s8  ;;  %339 = vrot.lane.b32.xlu0 %v276_v36, %s946_s8 }
  0x35   : > { %345 = vrot.lane.b32.xlu1 %v279_v37, %s946_s8  ;;  %343 = vrot.lane.b32.xlu0 %v278_v38, %s946_s8 }
  0x8b   : > { %v303_v46 = vpop.permute.xlu1 %302  ;;  %v299_v47 = vpop.permute.xlu0 %298 }
  0x8c   : > { %325 = vst.msk [vmem:[#allocation2 + $0x18] sm:$0xff] %vm322_vm3, %v303_v46  ;;  %323 = vst.msk [vmem:[#allocation2 + $0x8] sm:$0xff] %vm322_vm3, %v299_v47  ;;  %v692_v47 = vld [vmem:[%s1090_s18 + $0x20] sm:$0xff] }
  0x8f   : > { %v305_v48 = vpop.permute.xlu1 %304  ;;  %v301_v49 = vpop.permute.xlu0 %300 }
  0x90   : > { %326 = vst.msk [vmem:[#allocation2 + $0x20] sm:$0xff] %vm322_vm3, %v305_v48  ;;  %324 = vst.msk [vmem:[#allocation2 + $0x10] sm:$0xff] %vm322_vm3, %v301_v49 }
  0x93   : > { %v334_v50 = vpop.permute.xlu1 %333  ;;  %v332_v51 = vpop.permute.xlu0 %331 }
  0x94   : > { %357 = vst.msk [vmem:[#allocation2 + $0xf] sm:$0xfe] %vm355_vm4, %v334_v50  ;;  %356 = vst.msk [vmem:[#allocation2 + $0x7] sm:$0xfe] %vm355_vm4, %v332_v51  ;;  %v695_v50 = vld [vmem:[%s1090_s18 + $0x38] sm:$0xff] }
  0x97   : > { %v338_v52 = vpop.permute.xlu1 %337  ;;  %v336_v53 = vpop.permute.xlu0 %335 }
  0x98   : > { %359 = vst.msk [vmem:[#allocation2 + $0x1f] sm:$0xfe] %vm355_vm4, %v338_v52  ;;  %358 = vst.msk [vmem:[#allocation2 + $0x17] sm:$0xfe] %vm355_vm4, %v336_v53 }
  0x9b   : > { %v309_v55 = vpop.permute.xlu1 %308  ;;  %v307_v56 = vpop.permute.xlu0 %306  ;;  %v379_v57 = vld [vmem:[#allocation2 + $0x8] sm:$0xff]  ;;  %v380_v58 = vld [vmem:[#allocation2 + $0x10] sm:$0xff] }
  0x9c   : > { %328 = vst.msk [vmem:[#allocation2 + $0x30] sm:$0xff] %vm322_vm3, %v309_v55  ;;  %327 = vst.msk [vmem:[#allocation2 + $0x28] sm:$0xff] %vm322_vm3, %v307_v56  ;;  %v387_v59 = vpack.c.bf16 %v380_v58, %v379_v57  ;;  %v372_v60 = vpack.c.bf16 %v379_v57, %v364_v54  ;;  %v693_v54 = vld [vmem:[%s1090_s18 + $0x28] sm:$0xff] }
  0x9e   : > { %863 = vmatprep.mubr.msk.bf16.mxu1 %vm219_vm0, %v387_v59  ;;  %875 = vmatprep.mubr.msk.bf16.mxu0 %vm219_vm0, %v372_v60 }
  0x9f   : > { %v313_v61 = vpop.permute.xlu1 %312  ;;  %v311_v62 = vpop.permute.xlu0 %310  ;;  %v381_v63 = vld [vmem:[#allocation2 + $0x18] sm:$0xff]  ;;  %v382_v0 = vld [vmem:[#allocation2 + $0x20] sm:$0xff] }
  0xa0   : > { %330 = vst.msk [vmem:[#allocation2 + $0x40] sm:$0xff] %vm322_vm3, %v313_v61  ;;  %329 = vst.msk [vmem:[#allocation2 + $0x38] sm:$0xff] %vm322_vm3, %v311_v62  ;;  %v388_v1 = vpack.c.bf16 %v382_v0, %v381_v63  ;;  %v373_v2 = vpack.c.bf16 %v381_v63, %v380_v58 }
  0xa2   : > { %864 = vmatmul.mubr.msk.bf16.vlgmr.msra.gmra.mrb[0].mxu1 %vm219_vm0, %v388_v1  ;;  %876 = vmatmul.mubr.msk.bf16.vlgmr.msra.gmra.mrb[0].mxu0 %vm219_vm0, %v373_v2 }
  0xa3   : > { %v342_v4 = vpop.permute.xlu1 %341  ;;  %v340_v5 = vpop.permute.xlu0 %339  ;;  %887 = vmatprep.mubr.msk.bf16.mxu0 %vm219_vm0, %v373_v2  ;;  %884 = vmatpush3.bf16.msra.mxu0 %v934_v45 }
  0xa4   : > { %361 = vst.msk [vmem:[#allocation2 + $0x2f] sm:$0xfe] %vm355_vm4, %v342_v4  ;;  %360 = vst.msk [vmem:[#allocation2 + $0x27] sm:$0xfe] %vm355_vm4, %v340_v5  ;;  %897 = vmatpush3.bf16.msra.mxu1 %v1008_v40  ;;  %918 = vmatprep.subr.msk.bf16.mxu0 %vm416_vm2, %v935_v3 }
  0xa5   : > { %917 = vmatprep.subr.msk.bf16.mxu1 %vm416_vm2, %v1028_v42 }
  0xa7   : > { %v346_v7 = vpop.permute.xlu1 %345  ;;  %v344_v8 = vpop.permute.xlu0 %343  ;;  %886 = vmatpush3.bf16.msra.mxu0 %v613_v6 }
  0xa8   : > { %363 = vst.msk [vmem:[#allocation2 + $0x3f] sm:$0xfe] %vm355_vm4, %v346_v7  ;;  %362 = vst.msk [vmem:[#allocation2 + $0x37] sm:$0xfe] %vm355_vm4, %v344_v8  ;;  %898 = vmatpush3.bf16.msra.mxu1 %v1038_v44  ;;  %v694_v44 = vld [vmem:[%s1090_s18 + $0x30] sm:$0xff] }
  0xab   : > { %v383_v9 = vld [vmem:[#allocation2 + $0x28] sm:$0xff]  ;;  %v384_v10 = vld [vmem:[#allocation2 + $0x30] sm:$0xff] }
  0xac   : > { %v389_v11 = vpack.c.bf16 %v384_v10, %v383_v9  ;;  %v584_v12 = vpack.c.bf16 %v383_v9, %v382_v0 }
  0xae   : > { %867 = vmatprep.mubr.msk.bf16.mxu1 %vm219_vm0, %v389_v11  ;;  %888 = vmatmul.mubr.msk.bf16.vlgmr.msra.gmra.mrb[0].mxu0 %vm219_vm0, %v584_v12 }
  0xaf   : > { %v385_v13 = vld [vmem:[#allocation2 + $0x38] sm:$0xff]  ;;  %v386_v14 = vld [vmem:[#allocation2 + $0x40] sm:$0xff] }
  0xb0   : > { %v390_v15 = vpack.c.bf16 %v386_v14, %v385_v13  ;;  %v585_v16 = vpack.c.bf16 %v385_v13, %v384_v10  ;;  %v586_v18 = vpack.c.bf16 %v582_v17, %v386_v14 }
  0xb2   : > { %868 = vmatmul.mubr.msk.bf16.gmra.mrb[4].mxu1 %vm219_vm0, %v390_v15  ;;  %891 = vmatprep.mubr.msk.bf16.mxu0 %vm219_vm0, %v585_v16 }
  0xb3   : > { %879 = vmatprep.mubr.msk.bf16.mxu1 %vm219_vm0, %v584_v12 }
  0xb6   : > { %892 = vmatmul.mubr.msk.bf16.gmra.mrb[4].mxu0 %vm219_vm0, %v586_v18 }
  0xbe   : > { %880 = vmatmul.mubr.msk.bf16.vlgmr.msra.gmra.mrb[4].mxu1 %vm219_vm0, %v585_v16 }
 0x175   : > { %v865_v19 = vpop.f32.mrb[0].mxu1 }
 0x176   : > { %v454_v20 = vpop.f32.mrb[1].mxu1 }
 0x177   : > { %v866_v21 = vpop.f32.mrb[2].mxu1 }
 0x178   : > { %v457_v22 = vpop.f32.mrb[3].mxu1 }
 0x181   : > { %v889_v23 = vpop.f32.mrb[0].mxu0 }
 0x182   : > { %v899_v25 = vadd.f32 %v889_v23, %v865_v19  ;;  %v649_v26 = vpop.f32.mrb[1].mxu0 }
 0x183   : > { %v900_v28 = vadd.f32 %v649_v26, %v454_v20  ;;  %v890_v29 = vpop.f32.mrb[2].mxu0 }
 0x184   : > { %v698_v31 = vadd.f32 %v899_v25, %v690_v24  ;;  %v901_v32 = vadd.f32 %v890_v29, %v866_v21  ;;  %v652_v33 = vpop.f32.mrb[3].mxu0 }
 0x185   : > { %v696_v35 = vadd.f32 %v900_v28, %v688_v27  ;;  %v902_v36 = vadd.f32 %v652_v33, %v457_v22 }
 0x186   : > { %707 = vst.msk [vmem:[%s1097_s21 + $0x10] sm:$0xff] %vm704_vm5, %v698_v31  ;;  %v699_v37 = vadd.f32 %v901_v32, %v691_v30 }
 0x187   : > { %705 = vst.msk [vmem:[%s1097_s21] sm:$0xff] %vm704_vm5, %v696_v35  ;;  %v697_v38 = vadd.f32 %v902_v36, %v689_v34 }
 0x188   : > { %708 = vst.msk [vmem:[%s1097_s21 + $0x18] sm:$0xff] %vm704_vm5, %v699_v37 }
 0x189   : > { %706 = vst.msk [vmem:[%s1097_s21 + $0x8] sm:$0xff] %vm704_vm5, %v697_v38  ;;  %v893_v39 = vpop.f32.mrb[4].mxu0 }
 0x18a   : > { %v665_v40 = vpop.f32.mrb[5].mxu0 }
 0x18b   : > { %v894_v41 = vpop.f32.mrb[6].mxu0 }
 0x18c   : > { %v668_v42 = vpop.f32.mrb[7].mxu0 }
 0x191   : > { %v881_v43 = vpop.f32.mrb[4].mxu1 }
 0x192   : > { %v903_v45 = vadd.f32 %v893_v39, %v881_v43  ;;  %v559_v46 = vpop.f32.mrb[5].mxu1 }
 0x193   : > { %v904_v48 = vadd.f32 %v665_v40, %v559_v46  ;;  %v882_v49 = vpop.f32.mrb[6].mxu1 }
 0x194   : > { %v702_v51 = vadd.f32 %v903_v45, %v694_v44  ;;  %v905_v52 = vadd.f32 %v894_v41, %v882_v49  ;;  %v562_v53 = vpop.f32.mrb[7].mxu1 }
 0x195   : > { %v700_v55 = vadd.f32 %v904_v48, %v692_v47  ;;  %v906_v56 = vadd.f32 %v668_v42, %v562_v53 }
 0x196   : > { %711 = vst.msk [vmem:[%s1097_s21 + $0x30] sm:$0xff] %vm704_vm5, %v702_v51  ;;  %v703_v57 = vadd.f32 %v905_v52, %v695_v50 }
 0x197   : > { %709 = vst.msk [vmem:[%s1097_s21 + $0x20] sm:$0xff] %vm704_vm5, %v700_v55  ;;  %v701_v58 = vadd.f32 %v906_v56, %v693_v54 }
 0x198   : > { %712 = vst.msk [vmem:[%s1097_s21 + $0x38] sm:$0xff] %vm704_vm5, %v703_v57 }
 0x199   : > { %710 = vst.msk [vmem:[%s1097_s21 + $0x28] sm:$0xff] %vm704_vm5, %v701_v58 }
 0x19a PF: > { %s14_s15 = sadd.s32 1, %s942_s15  }
 0x19b   : > { %p11_p4 = scmp.ge.s32.totalorder %s14_s15, 4  }
 0x19d   :  { %13 = sbr.rel (!%p11_p4) target bundleno = 1 (0x1), region = 73 }

</bundles_post_ra>
